<compile_context>
chip_gen: v7x
topology: tpu7x:2x2x1
jax: 0.10.0
libtpu: 0.0.40
codegen_flags: <defaults>
</compile_context>

<pallas_src>
import functools

import jax
import jax.numpy as jnp
from jax.experimental import pallas as pl
from jax.experimental.pallas import tpu as pltpu

LEAKY_SLOPE = 0.2
BN_EPS = 1e-5


def _round_up(x, m):
    return (x + m - 1) // m * m


# ------------------------------ tiling policy ------------------------------ #

def _tiles(M, K, N):
    """Pick (M, K, N) padding and tile sizes (lane-dense, MXU-aligned, VMEM-safe)."""
    Np = _round_up(N, 128)
    if Np % 512 == 0:
        tn = 512
    elif Np % 256 == 0:
        tn = 256
    else:
        tn = 128

    Kp = _round_up(K, 128)
    # Single K step whenever the (Kp, tn) bf16 weight tile is small: weights are
    # then streamed once per M row and there is no accumulator bookkeeping.
    if Kp <= 4096 and Kp * tn * 2 <= 4 * 1024 * 1024:
        tk = Kp
    else:
        tk = 128
        for cand in (2048, 1024, 512, 256):
            if Kp % cand == 0:
                tk = cand
                break

    # bf16 blocks want sublane multiples of 16; large M prefers 256-aligned rows
    # (full MXU pushes on v6e/v7x) capped at 1024 rows per tile.
    if M > 256:
        tm = min(1024, _round_up(M, 256))
    else:
        tm = _round_up(M, 16)
    Mp = _round_up(M, tm)

    # Keep >= 2 tiles across the parallel (M, N) axes when cheap so both v7x
    # TensorCores get work even on layers whose grid would otherwise be 1x1.
    if Mp // tm == 1 and Np // tn == 1 and Mp >= 64 and Mp % 32 == 0:
        tm = Mp // 2

    return Mp, Kp, Np, tm, tk, tn


def _vmem_limit(tm, tn, tk, norm):
    """Scoped-VMEM request: double-buffered tiles + f32 accumulator + headroom,
    capped below v7x's 64 MiB physical VMEM."""
    in_tiles = (tm * tk + tk * tn) * 2           # bf16 x / w tiles
    out_tiles = tm * tn * 2                      # bf16 output tile
    stats = (2 * tn * 4) if norm else 0
    acc = tm * tn * 4
    est = 2 * (in_tiles + out_tiles + stats) + acc
    return int(min(48 * 1024 * 1024, max(2 * est, 8 * 1024 * 1024)))


def _row_tile(Mp, cap=2048):
    r = min(Mp, cap)
    r -= r % 16
    r = max(r, 16)
    while Mp % r:
        r -= 16
    return r


# ----------------------------- Pallas kernels ------------------------------ #

def _conv_mm_kernel(x_ref, w_ref, b_ref, *rest, act, norm, has_bias, nk, tm,
                    m_real, need_mask):
    """Tiled matmul (+ bias, + LeakyReLU) with optional partial-BN-stats epilogue.

    x: (tm, tk) bf16, w: (tk, tn) bf16, b: (1, tn) f32,
    o: (tm, tn) bf16, [sum/ssq: (1, 1, tn) f32 partial column stats per M tile].
    """
    if norm:
        o_ref, sum_ref, ssq_ref = rest[0], rest[1], rest[2]
        scratch = rest[3:]
    else:
        o_ref, sum_ref, ssq_ref = rest[0], None, None
        scratch = rest[1:]

    # All pl.program_id binds stay at kernel top level (interpret-mode safe).
    m_base = pl.program_id(0) * tm if (norm and need_mask) else None

    def epilogue(acc):
        y = acc
        if has_bias:
            y = y + b_ref[...]                              # f32 epilogue math
        if act and not norm:
            y = jnp.where(y > 0.0, y, LEAKY_SLOPE * y)      # LeakyReLU(0.2)
        o_ref[...] = y.astype(o_ref.dtype)
        if norm:
            ym = y
            if need_mask:                                   # drop padded rows from stats
                row = jax.lax.broadcasted_iota(jnp.int32, y.shape, 0) + m_base
                ym = jnp.where(row < m_real, y, 0.0)
            sum_ref[...] = jnp.sum(ym, axis=0).reshape(1, 1, -1)
            ssq_ref[...] = jnp.sum(ym * ym, axis=0).reshape(1, 1, -1)

    if nk == 1:
        epilogue(jnp.dot(x_ref[...], w_ref[...],
                         preferred_element_type=jnp.float32))
    else:
        acc_ref = scratch[0]
        k = pl.program_id(2)

        @pl.when(k == 0)
        def _():
            acc_ref[...] = jnp.zeros_like(acc_ref)

        acc_ref[...] += jnp.dot(x_ref[...], w_ref[...],
                                preferred_element_type=jnp.float32)

        @pl.when(k == nk - 1)
        def _():
            epilogue(acc_ref[...])


def conv_mm(patches, wmat, bvec, *, act, norm, has_bias, tm, tn, tk, m_real):
    Mp, Kp = patches.shape
    Np = wmat.shape[1]
    mt, nt, nk = Mp // tm, Np // tn, Kp // tk
    need_mask = Mp != m_real

    kern = functools.partial(_conv_mm_kernel, act=act, norm=norm,
                             has_bias=has_bias, nk=nk, tm=tm,
                             m_real=m_real, need_mask=need_mask)

    if nk == 1:
        grid = (mt, nt)
        in_specs = [pl.BlockSpec((tm, tk), lambda m, n: (m, 0)),
                    pl.BlockSpec((tk, tn), lambda m, n: (0, n)),
                    pl.BlockSpec((1, tn), lambda m, n: (0, n))]
        out_specs = [pl.BlockSpec((tm, tn), lambda m, n: (m, n))]
        stat_spec = pl.BlockSpec((1, 1, tn), lambda m, n: (m, 0, n))
        scratch = []
        sem = ("parallel", "parallel")
    else:
        grid = (mt, nt, nk)
        in_specs = [pl.BlockSpec((tm, tk), lambda m, n, k: (m, k)),
                    pl.BlockSpec((tk, tn), lambda m, n, k: (k, n)),
                    pl.BlockSpec((1, tn), lambda m, n, k: (0, n))]
        out_specs = [pl.BlockSpec((tm, tn), lambda m, n, k: (m, n))]
        stat_spec = pl.BlockSpec((1, 1, tn), lambda m, n, k: (m, 0, n))
        scratch = [pltpu.VMEM((tm, tn), jnp.float32)]
        sem = ("parallel", "parallel", "arbitrary")

    out_shape = [jax.ShapeDtypeStruct((Mp, Np), jnp.bfloat16)]
    if norm:
        out_shape += [jax.ShapeDtypeStruct((mt, 1, Np), jnp.float32)] * 2
        out_specs += [stat_spec, stat_spec]

    res = pl.pallas_call(
        kern,
        out_shape=tuple(out_shape),
        grid=grid,
        in_specs=in_specs,
        out_specs=out_specs,
        scratch_shapes=scratch,
        compiler_params=pltpu.CompilerParams(
            dimension_semantics=sem,
            vmem_limit_bytes=_vmem_limit(tm, tn, tk, norm)),
    )(patches, wmat, bvec)

    if norm:
        y, sums, ssqs = res
        return y, sums, ssqs
    y = res[0] if isinstance(res, (tuple, list)) else res
    return y, None, None


def _scale_shift_act_kernel(x_ref, scale_ref, shift_ref, o_ref, *, act):
    # BatchNorm apply (scale/shift from batch stats) + LeakyReLU; f32 math.
    y = x_ref[...].astype(jnp.float32) * scale_ref[...] + shift_ref[...]
    if act:
        y = jnp.where(y > 0.0, y, LEAKY_SLOPE * y)
    o_ref[...] = y.astype(o_ref.dtype)


def scale_shift_act(x, scale, shift, *, act):
    Mp, Np = x.shape
    rows = _row_tile(Mp)
    return pl.pallas_call(
        functools.partial(_scale_shift_act_kernel, act=act),
        out_shape=jax.ShapeDtypeStruct((Mp, Np), jnp.bfloat16),
        grid=(Mp // rows,),
        in_specs=[pl.BlockSpec((rows, Np), lambda i: (i, 0)),
                  pl.BlockSpec((1, Np), lambda i: (0, 0)),
                  pl.BlockSpec((1, Np), lambda i: (0, 0))],
        out_specs=pl.BlockSpec((rows, Np), lambda i: (i, 0)),
        compiler_params=pltpu.CompilerParams(
            dimension_semantics=("parallel",)),
    )(x, scale, shift)


# ------------------------------- glue (JAX) -------------------------------- #

def im2col_nhwc(x, k, s, p):
    """x: (B, H, W, C) -> patches (B*Ho*Wo, k*k*C), K ordered (kh, kw, c)."""
    B, H, W, C = x.shape
    xp = jnp.pad(x, ((0, 0), (p, p), (p, p), (0, 0)))
    Ho = (H + 2 * p - k) // s + 1
    Wo = (W + 2 * p - k) // s + 1
    taps = []
    for i in range(k):
        for j in range(k):
            taps.append(xp[:, i:i + s * Ho:s, j:j + s * Wo:s, :])  # (B,Ho,Wo,C)
    pat = jnp.stack(taps, axis=3)                                  # (B,Ho,Wo,kk,C)
    return pat.reshape(B * Ho * Wo, k * k * C), (Ho, Wo)


def conv_layer(x, p):
    """One get_layers(...) block on NHWC bf16 input with (zero) padded channels."""
    B, H, W, Cp = x.shape
    w, bias, gamma, beta = p["w"], p["b"], p["gamma"], p["beta"]
    stride, norm, act = p["stride"], p["norm"], p["act"]
    Nf, Cin = w.shape[0], w.shape[1]

    # TODO(synk): replace this XLA-side im2col with an in-kernel 16-tap streaming
    # reduction (strided DMA per tap from the NHWC activation kept in HBM).
    patches, (Ho, Wo) = im2col_nhwc(x, 4, stride, 1)              # (M, 16*Cp) bf16
    M, K = patches.shape

    # Weight -> (K, N) with tap-major (kh, kw, c) rows matching the patches;
    # pad input channels up to Cp (the padded activation channels are zero).
    wk = w.transpose(0, 2, 3, 1)                                  # (Nf, 4, 4, Cin)
    if Cp > Cin:
        wk = jnp.pad(wk, ((0, 0), (0, 0), (0, 0), (0, Cp - Cin)))
    wmat = wk.reshape(Nf, K).T.astype(jnp.bfloat16)               # (K, Nf)

    Mp, Kp, Np, tm, tk, tn = _tiles(M, K, Nf)
    if (Mp, Kp) != (M, K):
        patches = jnp.pad(patches, ((0, Mp - M), (0, Kp - K)))
    if (Kp, Np) != (K, Nf):
        wmat = jnp.pad(wmat, ((0, Kp - K), (0, Np - Nf)))

    bvec = jnp.zeros((1, Np), jnp.float32)
    if bias is not None:
        bvec = bvec.at[0, :Nf].set(bias.astype(jnp.float32))

    y, sums, ssqs = conv_mm(patches, wmat, bvec, act=act, norm=norm,
                            has_bias=bias is not None,
                            tm=tm, tn=tn, tk=tk, m_real=M)

    if norm:
        # Training-mode BatchNorm2d from the in-kernel partial stats.
        cnt = jnp.float32(M)
        mean = jnp.sum(sums, axis=(0, 1)) / cnt
        var = jnp.maximum(jnp.sum(ssqs, axis=(0, 1)) / cnt - mean * mean, 0.0)
        g = jnp.zeros((Np,), jnp.float32).at[:Nf].set(gamma)
        bt = jnp.zeros((Np,), jnp.float32).at[:Nf].set(beta)
        scale = g / jnp.sqrt(var + BN_EPS)
        shift = bt - mean * scale
        # TODO(synk): fuse this BN-apply + LeakyReLU into the consumer conv once
        # in-kernel im2col lands (padding handling needs the in-kernel path).
        y = scale_shift_act(y, scale.reshape(1, Np), shift.reshape(1, Np), act=act)

    return y[:M].reshape(B, Ho, Wo, Np)       # NHWC, channels padded to Np


def init_params(key, input_c, num_filters=64, n_down=3):
    specs = [(input_c, num_filters, 2, False, True)]
    for i in range(n_down):
        s = 1 if i == n_down - 1 else 2
        specs.append((num_filters * 2 ** i, num_filters * 2 ** (i + 1), s, True, True))
    specs.append((num_filters * 2 ** n_down, 1, 1, False, False))

    params = []
    for (ni, nf, s, norm, act) in specs:
        key, wk, bk = jax.random.split(key, 3)
        w = 0.02 * jax.random.normal(wk, (nf, ni, 4, 4), jnp.float32)
        b = None if norm else 0.02 * jax.random.normal(bk, (nf,), jnp.float32)
        params.append(dict(
            w=w, b=b,
            gamma=jnp.ones((nf,), jnp.float32) if norm else None,
            beta=jnp.zeros((nf,), jnp.float32) if norm else None,
            stride=s, norm=norm, act=act))
    return params


def patch_discriminator(x_nchw, params):
    x = jnp.transpose(x_nchw, (0, 2, 3, 1)).astype(jnp.bfloat16)  # NHWC bf16
    for p in params:
        x = conv_layer(x, p)
    n_last = params[-1]["w"].shape[0]
    x = x[..., :n_last].astype(jnp.float32)
    return jnp.transpose(x, (0, 3, 1, 2))                         # back to NCHW


# Pure-JAX reference (lax.conv, f32) for a correctness sanity check.
def reference(x, params):
    for p in params:
        y = jax.lax.conv_general_dilated(
            x, p["w"], (p["stride"],) * 2, [(1, 1), (1, 1)],
            dimension_numbers=("NCHW", "OIHW", "NCHW"))
        if p["b"] is not None:
            y = y + p["b"][None, :, None, None]
        if p["norm"]:
            mean = y.mean(axis=(0, 2, 3), keepdims=True)
            var = ((y - mean) ** 2).mean(axis=(0, 2, 3), keepdims=True)
            y = (y - mean) / jnp.sqrt(var + BN_EPS)
            y = y * p["gamma"][None, :, None, None] + p["beta"][None, :, None, None]
        if p["act"]:
            y = jnp.where(y > 0, y, LEAKY_SLOPE * y)
        x = y
    return x


if __name__ == "__main__":
    key = jax.random.PRNGKey(0)
    kx, kp = jax.random.split(key)

    # 4x4/stride-2 stack with the final two stride-1 layers needs spatial >= 32
    # for a non-empty output; final map is 2x2.
    B, C, H, W = 2, 3, 32, 32
    x = jax.random.normal(kx, (B, C, H, W), jnp.float32)
    params = init_params(kp, input_c=C, num_filters=16, n_down=3)

    fwd = jax.jit(lambda xx: patch_discriminator(xx, params))
    out = jax.block_until_ready(fwd(x))

    assert out.shape == (B, 1, 2, 2), out.shape
    ref = reference(x, params)
    err = float(jnp.max(jnp.abs(out - ref)))
    assert bool(jnp.allclose(out, ref, atol=5e-2, rtol=5e-2)), err
    print("KERNEL_OK")
</pallas_src>

<mosaic_0001>
module attributes {stable_mosaic.version = 11 : i64} {
  func.func @_conv_mm_kernel(%arg0: i32, %arg1: i32, %arg2: memref<256x128xbf16, #tpu.memory_space<vmem>>, %arg3: memref<128x128xbf16, #tpu.memory_space<vmem>>, %arg4: memref<1x128xf32, #tpu.memory_space<vmem>>, %arg5: memref<256x128xbf16, #tpu.memory_space<vmem>>) attributes {dimension_semantics = [#tpu.dimension_semantics<parallel>, #tpu.dimension_semantics<parallel>], iteration_bounds = array<i64: 2, 1>, scalar_prefetch = 0 : i64, scratch_operands = 0 : i64, tpu.core_type = #tpu.core_type<tc>, window_params = [{transform_indices = @transform_0, window_bounds = array<i64: 256, 128>}, {transform_indices = @transform_1, window_bounds = array<i64: 128, 128>}, {transform_indices = @transform_2, window_bounds = array<i64: 1, 128>}, {transform_indices = @transform_3, window_bounds = array<i64: 256, 128>}]} {
    %c0 = arith.constant 0 : index
    %c0_0 = arith.constant 0 : index
    %0 = vector.load %arg2[%c0, %c0_0] : memref<256x128xbf16, #tpu.memory_space<vmem>>, vector<256x128xbf16>
    %c0_1 = arith.constant 0 : index
    %c0_2 = arith.constant 0 : index
    %1 = vector.load %arg3[%c0_1, %c0_2] : memref<128x128xbf16, #tpu.memory_space<vmem>>, vector<128x128xbf16>
    %cst = arith.constant dense<0.000000e+00> : vector<256x128xf32>
    %2 = tpu.matmul %0, %1, %cst {dimension_numbers = #tpu.dot_dimension_numbers<[1], [0], [0], [1], [0, 0, 1, 1], [], []>} : vector<256x128xbf16>, vector<128x128xbf16>, vector<256x128xf32> -> vector<256x128xf32>
    %c0_3 = arith.constant 0 : index
    %c0_4 = arith.constant 0 : index
    %3 = vector.load %arg4[%c0_3, %c0_4] : memref<1x128xf32, #tpu.memory_space<vmem>>, vector<1x128xf32>
    %4 = vector.broadcast %3 : vector<1x128xf32> to vector<256x128xf32>
    %5 = arith.addf %2, %4 : vector<256x128xf32>
    %cst_5 = arith.constant 0.000000e+00 : f32
    %6 = vector.broadcast %cst_5 : f32 to vector<256x128xf32>
    %7 = arith.cmpf ogt, %5, %6 : vector<256x128xf32>
    %cst_6 = arith.constant 2.000000e-01 : f32
    %8 = vector.broadcast %cst_6 : f32 to vector<256x128xf32>
    %9 = arith.mulf %8, %5 : vector<256x128xf32>
    %10 = arith.select %7, %5, %9 : vector<256x128xi1>, vector<256x128xf32>
    %11 = arith.truncf %10 : vector<256x128xf32> to vector<256x128xbf16>
    %c0_7 = arith.constant 0 : index
    %c0_8 = arith.constant 0 : index
    %12 = vector.load %arg5[%c0_7, %c0_8] : memref<256x128xbf16, #tpu.memory_space<vmem>>, vector<256x128xbf16>
    tpu.vector_store %arg5[%c0_7, %c0_8], %11 {strides = array<i32>} : memref<256x128xbf16, #tpu.memory_space<vmem>>, vector<256x128xbf16>,
    return
  }
  func.func @transform_0(%arg0: i32, %arg1: i32) -> (i32, i32) {
    %c0_i32 = arith.constant 0 : i32
    %c0_i32_0 = arith.constant 0 : i32
    return %arg0, %c0_i32 : i32, i32
  }
  func.func @transform_1(%arg0: i32, %arg1: i32) -> (i32, i32) {
    %c0_i32 = arith.constant 0 : i32
    %c0_i32_0 = arith.constant 0 : i32
    return %c0_i32, %arg1 : i32, i32
  }
  func.func @transform_2(%arg0: i32, %arg1: i32) -> (i32, i32) {
    %c0_i32 = arith.constant 0 : i32
    %c0_i32_0 = arith.constant 0 : i32
    return %c0_i32, %arg1 : i32, i32
  }
  func.func @transform_3(%arg0: i32, %arg1: i32) -> (i32, i32) {
    %c0_i32 = arith.constant 0 : i32
    return %arg0, %arg1 : i32, i32
  }
}

module attributes {stable_mosaic.version = 11 : i64} {
  func.func @_scale_shift_act_kernel(%arg0: i32, %arg1: memref<128x128xbf16, #tpu.memory_space<vmem>>, %arg2: memref<1x128xf32, #tpu.memory_space<vmem>>, %arg3: memref<1x128xf32, #tpu.memory_space<vmem>>, %arg4: memref<128x128xbf16, #tpu.memory_space<vmem>>) attributes {dimension_semantics = [#tpu.dimension_semantics<parallel>], iteration_bounds = array<i64: 1>, scalar_prefetch = 0 : i64, scratch_operands = 0 : i64, tpu.core_type = #tpu.core_type<tc>, window_params = [{transform_indices = @transform_0, window_bounds = array<i64: 128, 128>}, {pipeline_mode = #tpu.pipeline_mode<synchronous>, transform_indices = @transform_1, window_bounds = array<i64: 1, 128>}, {pipeline_mode = #tpu.pipeline_mode<synchronous>, transform_indices = @transform_2, window_bounds = array<i64: 1, 128>}, {transform_indices = @transform_3, window_bounds = array<i64: 128, 128>}]} {
    %c0 = arith.constant 0 : index
    %c0_0 = arith.constant 0 : index
    %0 = vector.load %arg1[%c0, %c0_0] : memref<128x128xbf16, #tpu.memory_space<vmem>>, vector<128x128xbf16>
    %1 = arith.extf %0 : vector<128x128xbf16> to vector<128x128xf32>
    %c0_1 = arith.constant 0 : index
    %c0_2 = arith.constant 0 : index
    %2 = vector.load %arg2[%c0_1, %c0_2] : memref<1x128xf32, #tpu.memory_space<vmem>>, vector<1x128xf32>
    %3 = vector.broadcast %2 : vector<1x128xf32> to vector<128x128xf32>
    %4 = arith.mulf %1, %3 : vector<128x128xf32>
    %c0_3 = arith.constant 0 : index
    %c0_4 = arith.constant 0 : index
    %5 = vector.load %arg3[%c0_3, %c0_4] : memref<1x128xf32, #tpu.memory_space<vmem>>, vector<1x128xf32>
    %6 = vector.broadcast %5 : vector<1x128xf32> to vector<128x128xf32>
    %7 = arith.addf %4, %6 : vector<128x128xf32>
    %cst = arith.constant 0.000000e+00 : f32
    %8 = vector.broadcast %cst : f32 to vector<128x128xf32>
    %9 = arith.cmpf ogt, %7, %8 : vector<128x128xf32>
    %cst_5 = arith.constant 2.000000e-01 : f32
    %10 = vector.broadcast %cst_5 : f32 to vector<128x128xf32>
    %11 = arith.mulf %10, %7 : vector<128x128xf32>
    %12 = arith.select %9, %7, %11 : vector<128x128xi1>, vector<128x128xf32>
    %13 = arith.truncf %12 : vector<128x128xf32> to vector<128x128xbf16>
    %c0_6 = arith.constant 0 : index
    %c0_7 = arith.constant 0 : index
    %14 = vector.load %arg4[%c0_6, %c0_7] : memref<128x128xbf16, #tpu.memory_space<vmem>>, vector<128x128xbf16>
    tpu.vector_store %arg4[%c0_6, %c0_7], %13 {strides = array<i32>} : memref<128x128xbf16, #tpu.memory_space<vmem>>, vector<128x128xbf16>,
    return
  }
  func.func @transform_0(%arg0: i32) -> (i32, i32) {
    %c0_i32 = arith.constant 0 : i32
    %c0_i32_0 = arith.constant 0 : i32
    return %arg0, %c0_i32 : i32, i32
  }
  func.func @transform_1(%arg0: i32) -> (i32, i32) {
    %c0_i32 = arith.constant 0 : i32
    %c0_i32_0 = arith.constant 0 : i32
    %c0_i32_1 = arith.constant 0 : i32
    return %c0_i32, %c0_i32_0 : i32, i32
  }
  func.func @transform_2(%arg0: i32) -> (i32, i32) {
    %c0_i32 = arith.constant 0 : i32
    %c0_i32_0 = arith.constant 0 : i32
    %c0_i32_1 = arith.constant 0 : i32
    return %c0_i32, %c0_i32_0 : i32, i32
  }
  func.func @transform_3(%arg0: i32) -> (i32, i32) {
    %c0_i32 = arith.constant 0 : i32
    %c0_i32_0 = arith.constant 0 : i32
    return %arg0, %c0_i32 : i32, i32
  }
}

module attributes {stable_mosaic.version = 11 : i64} {
  func.func @_conv_mm_kernel(%arg0: i32, %arg1: i32, %arg2: memref<64x2048xbf16, #tpu.memory_space<vmem>>, %arg3: memref<2048x128xbf16, #tpu.memory_space<vmem>>, %arg4: memref<1x128xf32, #tpu.memory_space<vmem>>, %arg5: memref<64x128xbf16, #tpu.memory_space<vmem>>, %arg6: memref<1x1x128xf32, #tpu.memory_space<vmem>>, %arg7: memref<1x1x128xf32, #tpu.memory_space<vmem>>) attributes {dimension_semantics = [#tpu.dimension_semantics<parallel>, #tpu.dimension_semantics<parallel>], iteration_bounds = array<i64: 2, 1>, scalar_prefetch = 0 : i64, scratch_operands = 0 : i64, tpu.core_type = #tpu.core_type<tc>, window_params = [{transform_indices = @transform_0, window_bounds = array<i64: 64, 2048>}, {transform_indices = @transform_1, window_bounds = array<i64: 2048, 128>}, {transform_indices = @transform_2, window_bounds = array<i64: 1, 128>}, {transform_indices = @transform_3, window_bounds = array<i64: 64, 128>}, {transform_indices = @transform_4, window_bounds = array<i64: 1, 1, 128>}, {transform_indices = @transform_5, window_bounds = array<i64: 1, 1, 128>}]} {
    %c0 = arith.constant 0 : index
    %c0_0 = arith.constant 0 : index
    %0 = vector.load %arg2[%c0, %c0_0] : memref<64x2048xbf16, #tpu.memory_space<vmem>>, vector<64x2048xbf16>
    %c0_1 = arith.constant 0 : index
    %c0_2 = arith.constant 0 : index
    %1 = vector.load %arg3[%c0_1, %c0_2] : memref<2048x128xbf16, #tpu.memory_space<vmem>>, vector<2048x128xbf16>
    %cst = arith.constant dense<0.000000e+00> : vector<64x128xf32>
    %2 = tpu.matmul %0, %1, %cst {dimension_numbers = #tpu.dot_dimension_numbers<[1], [0], [0], [1], [0, 0, 1, 1], [], []>} : vector<64x2048xbf16>, vector<2048x128xbf16>, vector<64x128xf32> -> vector<64x128xf32>
    %3 = arith.truncf %2 : vector<64x128xf32> to vector<64x128xbf16>
    %c0_3 = arith.constant 0 : index
    %c0_4 = arith.constant 0 : index
    %4 = vector.load %arg5[%c0_3, %c0_4] : memref<64x128xbf16, #tpu.memory_space<vmem>>, vector<64x128xbf16>
    tpu.vector_store %arg5[%c0_3, %c0_4], %3 {strides = array<i32>} : memref<64x128xbf16, #tpu.memory_space<vmem>>, vector<64x128xbf16>,
    %cst_5 = arith.constant dense<0.000000e+00> : vector<128xf32>
    %5 = vector.multi_reduction <add>, %2, %cst_5 [0] : vector<64x128xf32> to vector<128xf32>
    %6 = vector.shape_cast %5 : vector<128xf32> to vector<1x1x128xf32>
    %c0_6 = arith.constant 0 : index
    %c0_7 = arith.constant 0 : index
    %c0_8 = arith.constant 0 : index
    %7 = vector.load %arg6[%c0_6, %c0_7, %c0_8] : memref<1x1x128xf32, #tpu.memory_space<vmem>>, vector<1x1x128xf32>
    tpu.vector_store %arg6[%c0_6, %c0_7, %c0_8], %6 {strides = array<i32>} : memref<1x1x128xf32, #tpu.memory_space<vmem>>, vector<1x1x128xf32>,
    %8 = arith.mulf %2, %2 : vector<64x128xf32>
    %cst_9 = arith.constant dense<0.000000e+00> : vector<128xf32>
    %9 = vector.multi_reduction <add>, %8, %cst_9 [0] : vector<64x128xf32> to vector<128xf32>
    %10 = vector.shape_cast %9 : vector<128xf32> to vector<1x1x128xf32>
    %c0_10 = arith.constant 0 : index
    %c0_11 = arith.constant 0 : index
    %c0_12 = arith.constant 0 : index
    %11 = vector.load %arg7[%c0_10, %c0_11, %c0_12] : memref<1x1x128xf32, #tpu.memory_space<vmem>>, vector<1x1x128xf32>
    tpu.vector_store %arg7[%c0_10, %c0_11, %c0_12], %10 {strides = array<i32>} : memref<1x1x128xf32, #tpu.memory_space<vmem>>, vector<1x1x128xf32>,
    return
  }
  func.func @transform_0(%arg0: i32, %arg1: i32) -> (i32, i32) {
    %c0_i32 = arith.constant 0 : i32
    %c0_i32_0 = arith.constant 0 : i32
    return %arg0, %c0_i32 : i32, i32
  }
  func.func @transform_1(%arg0: i32, %arg1: i32) -> (i32, i32) {
    %c0_i32 = arith.constant 0 : i32
    %c0_i32_0 = arith.constant 0 : i32
    return %c0_i32, %arg1 : i32, i32
  }
  func.func @transform_2(%arg0: i32, %arg1: i32) -> (i32, i32) {
    %c0_i32 = arith.constant 0 : i32
    %c0_i32_0 = arith.constant 0 : i32
    return %c0_i32, %arg1 : i32, i32
  }
  func.func @transform_3(%arg0: i32, %arg1: i32) -> (i32, i32) {
    %c0_i32 = arith.constant 0 : i32
    return %arg0, %arg1 : i32, i32
  }
  func.func @transform_4(%arg0: i32, %arg1: i32) -> (i32, i32, i32) {
    %c0_i32 = arith.constant 0 : i32
    %c0_i32_0 = arith.constant 0 : i32
    return %arg0, %c0_i32, %arg1 : i32, i32, i32
  }
  func.func @transform_5(%arg0: i32, %arg1: i32) -> (i32, i32, i32) {
    %c0_i32 = arith.constant 0 : i32
    %c0_i32_0 = arith.constant 0 : i32
    return %arg0, %c0_i32, %arg1 : i32, i32, i32
  }
}

module attributes {stable_mosaic.version = 11 : i64} {
  func.func @_conv_mm_kernel(%arg0: i32, %arg1: i32, %arg2: memref<32x2048xbf16, #tpu.memory_space<vmem>>, %arg3: memref<2048x128xbf16, #tpu.memory_space<vmem>>, %arg4: memref<1x128xf32, #tpu.memory_space<vmem>>, %arg5: memref<32x128xbf16, #tpu.memory_space<vmem>>, %arg6: memref<1x1x128xf32, #tpu.memory_space<vmem>>, %arg7: memref<1x1x128xf32, #tpu.memory_space<vmem>>) attributes {dimension_semantics = [#tpu.dimension_semantics<parallel>, #tpu.dimension_semantics<parallel>], iteration_bounds = array<i64: 1, 1>, scalar_prefetch = 0 : i64, scratch_operands = 0 : i64, tpu.core_type = #tpu.core_type<tc>, window_params = [{transform_indices = @transform_0, window_bounds = array<i64: 32, 2048>}, {transform_indices = @transform_1, window_bounds = array<i64: 2048, 128>}, {transform_indices = @transform_2, window_bounds = array<i64: 1, 128>}, {transform_indices = @transform_3, window_bounds = array<i64: 32, 128>}, {transform_indices = @transform_4, window_bounds = array<i64: 1, 1, 128>}, {transform_indices = @transform_5, window_bounds = array<i64: 1, 1, 128>}]} {
    %c0 = arith.constant 0 : index
    %c0_0 = arith.constant 0 : index
    %0 = vector.load %arg2[%c0, %c0_0] : memref<32x2048xbf16, #tpu.memory_space<vmem>>, vector<32x2048xbf16>
    %c0_1 = arith.constant 0 : index
    %c0_2 = arith.constant 0 : index
    %1 = vector.load %arg3[%c0_1, %c0_2] : memref<2048x128xbf16, #tpu.memory_space<vmem>>, vector<2048x128xbf16>
    %cst = arith.constant dense<0.000000e+00> : vector<32x128xf32>
    %2 = tpu.matmul %0, %1, %cst {dimension_numbers = #tpu.dot_dimension_numbers<[1], [0], [0], [1], [0, 0, 1, 1], [], []>} : vector<32x2048xbf16>, vector<2048x128xbf16>, vector<32x128xf32> -> vector<32x128xf32>
    %3 = arith.truncf %2 : vector<32x128xf32> to vector<32x128xbf16>
    %c0_3 = arith.constant 0 : index
    %c0_4 = arith.constant 0 : index
    %4 = vector.load %arg5[%c0_3, %c0_4] : memref<32x128xbf16, #tpu.memory_space<vmem>>, vector<32x128xbf16>
    tpu.vector_store %arg5[%c0_3, %c0_4], %3 {strides = array<i32>} : memref<32x128xbf16, #tpu.memory_space<vmem>>, vector<32x128xbf16>,
    %cst_5 = arith.constant dense<0.000000e+00> : vector<128xf32>
    %5 = vector.multi_reduction <add>, %2, %cst_5 [0] : vector<32x128xf32> to vector<128xf32>
    %6 = vector.shape_cast %5 : vector<128xf32> to vector<1x1x128xf32>
    %c0_6 = arith.constant 0 : index
    %c0_7 = arith.constant 0 : index
    %c0_8 = arith.constant 0 : index
    %7 = vector.load %arg6[%c0_6, %c0_7, %c0_8] : memref<1x1x128xf32, #tpu.memory_space<vmem>>, vector<1x1x128xf32>
    tpu.vector_store %arg6[%c0_6, %c0_7, %c0_8], %6 {strides = array<i32>} : memref<1x1x128xf32, #tpu.memory_space<vmem>>, vector<1x1x128xf32>,
    %8 = arith.mulf %2, %2 : vector<32x128xf32>
    %cst_9 = arith.constant dense<0.000000e+00> : vector<128xf32>
    %9 = vector.multi_reduction <add>, %8, %cst_9 [0] : vector<32x128xf32> to vector<128xf32>
    %10 = vector.shape_cast %9 : vector<128xf32> to vector<1x1x128xf32>
    %c0_10 = arith.constant 0 : index
    %c0_11 = arith.constant 0 : index
    %c0_12 = arith.constant 0 : index
    %11 = vector.load %arg7[%c0_10, %c0_11, %c0_12] : memref<1x1x128xf32, #tpu.memory_space<vmem>>, vector<1x1x128xf32>
    tpu.vector_store %arg7[%c0_10, %c0_11, %c0_12], %10 {strides = array<i32>} : memref<1x1x128xf32, #tpu.memory_space<vmem>>, vector<1x1x128xf32>,
    return
  }
  func.func @transform_0(%arg0: i32, %arg1: i32) -> (i32, i32) {
    %c0_i32 = arith.constant 0 : i32
    %c0_i32_0 = arith.constant 0 : i32
    return %arg0, %c0_i32 : i32, i32
  }
  func.func @transform_1(%arg0: i32, %arg1: i32) -> (i32, i32) {
    %c0_i32 = arith.constant 0 : i32
    %c0_i32_0 = arith.constant 0 : i32
    return %c0_i32, %arg1 : i32, i32
  }
  func.func @transform_2(%arg0: i32, %arg1: i32) -> (i32, i32) {
    %c0_i32 = arith.constant 0 : i32
    %c0_i32_0 = arith.constant 0 : i32
    return %c0_i32, %arg1 : i32, i32
  }
  func.func @transform_3(%arg0: i32, %arg1: i32) -> (i32, i32) {
    %c0_i32 = arith.constant 0 : i32
    return %arg0, %arg1 : i32, i32
  }
  func.func @transform_4(%arg0: i32, %arg1: i32) -> (i32, i32, i32) {
    %c0_i32 = arith.constant 0 : i32
    %c0_i32_0 = arith.constant 0 : i32
    return %arg0, %c0_i32, %arg1 : i32, i32, i32
  }
  func.func @transform_5(%arg0: i32, %arg1: i32) -> (i32, i32, i32) {
    %c0_i32 = arith.constant 0 : i32
    %c0_i32_0 = arith.constant 0 : i32
    return %arg0, %c0_i32, %arg1 : i32, i32, i32
  }
}

module attributes {stable_mosaic.version = 11 : i64} {
  func.func @_scale_shift_act_kernel(%arg0: i32, %arg1: memref<32x128xbf16, #tpu.memory_space<vmem>>, %arg2: memref<1x128xf32, #tpu.memory_space<vmem>>, %arg3: memref<1x128xf32, #tpu.memory_space<vmem>>, %arg4: memref<32x128xbf16, #tpu.memory_space<vmem>>) attributes {dimension_semantics = [#tpu.dimension_semantics<parallel>], iteration_bounds = array<i64: 1>, scalar_prefetch = 0 : i64, scratch_operands = 0 : i64, tpu.core_type = #tpu.core_type<tc>, window_params = [{transform_indices = @transform_0, window_bounds = array<i64: 32, 128>}, {pipeline_mode = #tpu.pipeline_mode<synchronous>, transform_indices = @transform_1, window_bounds = array<i64: 1, 128>}, {pipeline_mode = #tpu.pipeline_mode<synchronous>, transform_indices = @transform_2, window_bounds = array<i64: 1, 128>}, {transform_indices = @transform_3, window_bounds = array<i64: 32, 128>}]} {
    %c0 = arith.constant 0 : index
    %c0_0 = arith.constant 0 : index
    %0 = vector.load %arg1[%c0, %c0_0] : memref<32x128xbf16, #tpu.memory_space<vmem>>, vector<32x128xbf16>
    %1 = arith.extf %0 : vector<32x128xbf16> to vector<32x128xf32>
    %c0_1 = arith.constant 0 : index
    %c0_2 = arith.constant 0 : index
    %2 = vector.load %arg2[%c0_1, %c0_2] : memref<1x128xf32, #tpu.memory_space<vmem>>, vector<1x128xf32>
    %3 = vector.broadcast %2 : vector<1x128xf32> to vector<32x128xf32>
    %4 = arith.mulf %1, %3 : vector<32x128xf32>
    %c0_3 = arith.constant 0 : index
    %c0_4 = arith.constant 0 : index
    %5 = vector.load %arg3[%c0_3, %c0_4] : memref<1x128xf32, #tpu.memory_space<vmem>>, vector<1x128xf32>
    %6 = vector.broadcast %5 : vector<1x128xf32> to vector<32x128xf32>
    %7 = arith.addf %4, %6 : vector<32x128xf32>
    %cst = arith.constant 0.000000e+00 : f32
    %8 = vector.broadcast %cst : f32 to vector<32x128xf32>
    %9 = arith.cmpf ogt, %7, %8 : vector<32x128xf32>
    %cst_5 = arith.constant 2.000000e-01 : f32
    %10 = vector.broadcast %cst_5 : f32 to vector<32x128xf32>
    %11 = arith.mulf %10, %7 : vector<32x128xf32>
    %12 = arith.select %9, %7, %11 : vector<32x128xi1>, vector<32x128xf32>
    %13 = arith.truncf %12 : vector<32x128xf32> to vector<32x128xbf16>
    %c0_6 = arith.constant 0 : index
    %c0_7 = arith.constant 0 : index
    %14 = vector.load %arg4[%c0_6, %c0_7] : memref<32x128xbf16, #tpu.memory_space<vmem>>, vector<32x128xbf16>
    tpu.vector_store %arg4[%c0_6, %c0_7], %13 {strides = array<i32>} : memref<32x128xbf16, #tpu.memory_space<vmem>>, vector<32x128xbf16>,
    return
  }
  func.func @transform_0(%arg0: i32) -> (i32, i32) {
    %c0_i32 = arith.constant 0 : i32
    %c0_i32_0 = arith.constant 0 : i32
    return %arg0, %c0_i32 : i32, i32
  }
  func.func @transform_1(%arg0: i32) -> (i32, i32) {
    %c0_i32 = arith.constant 0 : i32
    %c0_i32_0 = arith.constant 0 : i32
    %c0_i32_1 = arith.constant 0 : i32
    return %c0_i32, %c0_i32_0 : i32, i32
  }
  func.func @transform_2(%arg0: i32) -> (i32, i32) {
    %c0_i32 = arith.constant 0 : i32
    %c0_i32_0 = arith.constant 0 : i32
    %c0_i32_1 = arith.constant 0 : i32
    return %c0_i32, %c0_i32_0 : i32, i32
  }
  func.func @transform_3(%arg0: i32) -> (i32, i32) {
    %c0_i32 = arith.constant 0 : i32
    %c0_i32_0 = arith.constant 0 : i32
    return %arg0, %c0_i32 : i32, i32
  }
}

module attributes {stable_mosaic.version = 11 : i64} {
  func.func @_conv_mm_kernel(%arg0: i32, %arg1: i32, %arg2: memref<32x2048xbf16, #tpu.memory_space<vmem>>, %arg3: memref<2048x128xbf16, #tpu.memory_space<vmem>>, %arg4: memref<1x128xf32, #tpu.memory_space<vmem>>, %arg5: memref<32x128xbf16, #tpu.memory_space<vmem>>, %arg6: memref<1x1x128xf32, #tpu.memory_space<vmem>>, %arg7: memref<1x1x128xf32, #tpu.memory_space<vmem>>) attributes {dimension_semantics = [#tpu.dimension_semantics<parallel>, #tpu.dimension_semantics<parallel>], iteration_bounds = array<i64: 1, 1>, scalar_prefetch = 0 : i64, scratch_operands = 0 : i64, tpu.core_type = #tpu.core_type<tc>, window_params = [{transform_indices = @transform_0, window_bounds = array<i64: 32, 2048>}, {transform_indices = @transform_1, window_bounds = array<i64: 2048, 128>}, {transform_indices = @transform_2, window_bounds = array<i64: 1, 128>}, {transform_indices = @transform_3, window_bounds = array<i64: 32, 128>}, {transform_indices = @transform_4, window_bounds = array<i64: 1, 1, 128>}, {transform_indices = @transform_5, window_bounds = array<i64: 1, 1, 128>}]} {
    %c32_i32 = arith.constant 32 : i32
    %0 = arith.muli %arg0, %c32_i32 : i32
    %c0 = arith.constant 0 : index
    %c0_0 = arith.constant 0 : index
    %1 = vector.load %arg2[%c0, %c0_0] : memref<32x2048xbf16, #tpu.memory_space<vmem>>, vector<32x2048xbf16>
    %c0_1 = arith.constant 0 : index
    %c0_2 = arith.constant 0 : index
    %2 = vector.load %arg3[%c0_1, %c0_2] : memref<2048x128xbf16, #tpu.memory_space<vmem>>, vector<2048x128xbf16>
    %cst = arith.constant dense<0.000000e+00> : vector<32x128xf32>
    %3 = tpu.matmul %1, %2, %cst {dimension_numbers = #tpu.dot_dimension_numbers<[1], [0], [0], [1], [0, 0, 1, 1], [], []>} : vector<32x2048xbf16>, vector<2048x128xbf16>, vector<32x128xf32> -> vector<32x128xf32>
    %4 = arith.truncf %3 : vector<32x128xf32> to vector<32x128xbf16>
    %c0_3 = arith.constant 0 : index
    %c0_4 = arith.constant 0 : index
    %5 = vector.load %arg5[%c0_3, %c0_4] : memref<32x128xbf16, #tpu.memory_space<vmem>>, vector<32x128xbf16>
    tpu.vector_store %arg5[%c0_3, %c0_4], %4 {strides = array<i32>} : memref<32x128xbf16, #tpu.memory_space<vmem>>, vector<32x128xbf16>,
    %6 = tpu.iota {dimensions = array<i32: 0>} : vector<32x128xi32>
    %7 = vector.broadcast %0 : i32 to vector<32x128xi32>
    %8 = arith.addi %6, %7 : vector<32x128xi32>
    %c18_i32 = arith.constant 18 : i32
    %9 = vector.broadcast %c18_i32 : i32 to vector<32x128xi32>
    %10 = arith.cmpi slt, %8, %9 : vector<32x128xi32>
    %cst_5 = arith.constant 0.000000e+00 : f32
    %11 = vector.broadcast %cst_5 : f32 to vector<32x128xf32>
    %12 = arith.select %10, %3, %11 : vector<32x128xi1>, vector<32x128xf32>
    %cst_6 = arith.constant dense<0.000000e+00> : vector<128xf32>
    %13 = vector.multi_reduction <add>, %12, %cst_6 [0] : vector<32x128xf32> to vector<128xf32>
    %14 = vector.shape_cast %13 : vector<128xf32> to vector<1x1x128xf32>
    %c0_7 = arith.constant 0 : index
    %c0_8 = arith.constant 0 : index
    %c0_9 = arith.constant 0 : index
    %15 = vector.load %arg6[%c0_7, %c0_8, %c0_9] : memref<1x1x128xf32, #tpu.memory_space<vmem>>, vector<1x1x128xf32>
    tpu.vector_store %arg6[%c0_7, %c0_8, %c0_9], %14 {strides = array<i32>} : memref<1x1x128xf32, #tpu.memory_space<vmem>>, vector<1x1x128xf32>,
    %16 = arith.mulf %12, %12 : vector<32x128xf32>
    %cst_10 = arith.constant dense<0.000000e+00> : vector<128xf32>
    %17 = vector.multi_reduction <add>, %16, %cst_10 [0] : vector<32x128xf32> to vector<128xf32>
    %18 = vector.shape_cast %17 : vector<128xf32> to vector<1x1x128xf32>
    %c0_11 = arith.constant 0 : index
    %c0_12 = arith.constant 0 : index
    %c0_13 = arith.constant 0 : index
    %19 = vector.load %arg7[%c0_11, %c0_12, %c0_13] : memref<1x1x128xf32, #tpu.memory_space<vmem>>, vector<1x1x128xf32>
    tpu.vector_store %arg7[%c0_11, %c0_12, %c0_13], %18 {strides = array<i32>} : memref<1x1x128xf32, #tpu.memory_space<vmem>>, vector<1x1x128xf32>,
    return
  }
  func.func @transform_0(%arg0: i32, %arg1: i32) -> (i32, i32) {
    %c0_i32 = arith.constant 0 : i32
    %c0_i32_0 = arith.constant 0 : i32
    return %arg0, %c0_i32 : i32, i32
  }
  func.func @transform_1(%arg0: i32, %arg1: i32) -> (i32, i32) {
    %c0_i32 = arith.constant 0 : i32
    %c0_i32_0 = arith.constant 0 : i32
    return %c0_i32, %arg1 : i32, i32
  }
  func.func @transform_2(%arg0: i32, %arg1: i32) -> (i32, i32) {
    %c0_i32 = arith.constant 0 : i32
    %c0_i32_0 = arith.constant 0 : i32
    return %c0_i32, %arg1 : i32, i32
  }
  func.func @transform_3(%arg0: i32, %arg1: i32) -> (i32, i32) {
    %c0_i32 = arith.constant 0 : i32
    return %arg0, %arg1 : i32, i32
  }
  func.func @transform_4(%arg0: i32, %arg1: i32) -> (i32, i32, i32) {
    %c0_i32 = arith.constant 0 : i32
    %c0_i32_0 = arith.constant 0 : i32
    return %arg0, %c0_i32, %arg1 : i32, i32, i32
  }
  func.func @transform_5(%arg0: i32, %arg1: i32) -> (i32, i32, i32) {
    %c0_i32 = arith.constant 0 : i32
    %c0_i32_0 = arith.constant 0 : i32
    return %arg0, %c0_i32, %arg1 : i32, i32, i32
  }
}

module attributes {stable_mosaic.version = 11 : i64} {
  func.func @_conv_mm_kernel(%arg0: i32, %arg1: i32, %arg2: memref<16x2048xbf16, #tpu.memory_space<vmem>>, %arg3: memref<2048x128xbf16, #tpu.memory_space<vmem>>, %arg4: memref<1x128xf32, #tpu.memory_space<vmem>>, %arg5: memref<16x128xbf16, #tpu.memory_space<vmem>>) attributes {dimension_semantics = [#tpu.dimension_semantics<parallel>, #tpu.dimension_semantics<parallel>], iteration_bounds = array<i64: 1, 1>, scalar_prefetch = 0 : i64, scratch_operands = 0 : i64, tpu.core_type = #tpu.core_type<tc>, window_params = [{transform_indices = @transform_0, window_bounds = array<i64: 16, 2048>}, {transform_indices = @transform_1, window_bounds = array<i64: 2048, 128>}, {transform_indices = @transform_2, window_bounds = array<i64: 1, 128>}, {transform_indices = @transform_3, window_bounds = array<i64: 16, 128>}]} {
    %c0 = arith.constant 0 : index
    %c0_0 = arith.constant 0 : index
    %0 = vector.load %arg2[%c0, %c0_0] : memref<16x2048xbf16, #tpu.memory_space<vmem>>, vector<16x2048xbf16>
    %c0_1 = arith.constant 0 : index
    %c0_2 = arith.constant 0 : index
    %1 = vector.load %arg3[%c0_1, %c0_2] : memref<2048x128xbf16, #tpu.memory_space<vmem>>, vector<2048x128xbf16>
    %cst = arith.constant dense<0.000000e+00> : vector<16x128xf32>
    %2 = tpu.matmul %0, %1, %cst {dimension_numbers = #tpu.dot_dimension_numbers<[1], [0], [0], [1], [0, 0, 1, 1], [], []>} : vector<16x2048xbf16>, vector<2048x128xbf16>, vector<16x128xf32> -> vector<16x128xf32>
    %c0_3 = arith.constant 0 : index
    %c0_4 = arith.constant 0 : index
    %3 = vector.load %arg4[%c0_3, %c0_4] : memref<1x128xf32, #tpu.memory_space<vmem>>, vector<1x128xf32>
    %4 = vector.broadcast %3 : vector<1x128xf32> to vector<16x128xf32>
    %5 = arith.addf %2, %4 : vector<16x128xf32>
    %6 = arith.truncf %5 : vector<16x128xf32> to vector<16x128xbf16>
    %c0_5 = arith.constant 0 : index
    %c0_6 = arith.constant 0 : index
    %7 = vector.load %arg5[%c0_5, %c0_6] : memref<16x128xbf16, #tpu.memory_space<vmem>>, vector<16x128xbf16>
    tpu.vector_store %arg5[%c0_5, %c0_6], %6 {strides = array<i32>} : memref<16x128xbf16, #tpu.memory_space<vmem>>, vector<16x128xbf16>,
    return
  }
  func.func @transform_0(%arg0: i32, %arg1: i32) -> (i32, i32) {
    %c0_i32 = arith.constant 0 : i32
    %c0_i32_0 = arith.constant 0 : i32
    return %arg0, %c0_i32 : i32, i32
  }
  func.func @transform_1(%arg0: i32, %arg1: i32) -> (i32, i32) {
    %c0_i32 = arith.constant 0 : i32
    %c0_i32_0 = arith.constant 0 : i32
    return %c0_i32, %arg1 : i32, i32
  }
  func.func @transform_2(%arg0: i32, %arg1: i32) -> (i32, i32) {
    %c0_i32 = arith.constant 0 : i32
    %c0_i32_0 = arith.constant 0 : i32
    return %c0_i32, %arg1 : i32, i32
  }
  func.func @transform_3(%arg0: i32, %arg1: i32) -> (i32, i32) {
    %c0_i32 = arith.constant 0 : i32
    return %arg0, %arg1 : i32, i32
  }
}

</mosaic_0001>

<bundles_post_ra>
// kernel: _lambda_.8
= control target key start
LH: loop header
LB: loop body
LE: loop exit
PB: predicated region body
PF: predicated region fallthrough
CT: control target
= control target key end

     0   :  { %s1321_s12 = smov 0   ;;  %s1323_s13 = smov 0   ;;  %s1464_s0 = inlined_call_operand.vmem [shape: bf16[512,128], index: 0, kind: input, shape index: {}]   ;;  %s1465_s1 = inlined_call_operand.vmem [shape: bf16[128,128], index: 1, kind: input, shape index: {}]   ;;  %s1466_s2 = inlined_call_operand.vmem [shape: f32[1,128], index: 2, kind: input, shape index: {}]   ;;  %s1467_s3 = inlined_call_operand.vmem [shape: bf16[512,128], index: 3, kind: output, shape index: {}]  }
   0x1   :  { %s1325_s14 = smov 0  }
   0x2 LB: > { %s25_s15 = sadd.s32 1, %s1295_s13  ;;  %p950_p0 = scmp.ge.s32.totalorder %s1299_s14, 1  ;;  %s1299_s14 = sphi %s1325_s14, %s13_s14   ;;  %s1295_s13 = sphi %s1323_s13, %s1469_s13   ;;  %s1291_s12 = sphi %s1321_s12, %s1468_s12  }
   0x3   : > { %p27_p1 = scmp.ge.s32.totalorder %s25_s15, 2  ;;  %p169_p2 = scmp.lt.s32.totalorder %s1299_s14, 3 }
   0x5   : > { %s1471_s15 = smov (%p27_p1, %s25_s15), 0  ;;  %p170_p3 = pnand %p950_p0, %p169_p2 }
   0x6   : > { %v1253_v0 = vld [vmem:[%s1465_s1] sm:$0xff] (!%p170_p3)   ;;  %s951_s18 = sshll.u32 (!%p170_p3), %s1291_s12, 5  ;;  %v1254_v1 = vld [vmem:[%s1465_s1 + $0x8] sm:$0xff] (!%p170_p3)   ;;  %v1255_v2 = vld [vmem:[%s1465_s1 + $0x10] sm:$0xff] (!%p170_p3)  }
   0x7   : > { %173 = sbr.rel (%p170_p3) target bundleno = 294 (0x126), region = 32  ;;  %p204_p4 = scmp.lt.s32.totalorder (!%p170_p3), %s951_s18, 63  ;;  %1165 = vmatprep.subr.bf16.mxu0 (!%p170_p3), %v1253_v0  ;;  %1213 = vmatprep.subr.bf16.mxu1 (!%p170_p3), %v1253_v0  ;;  %v1256_v3 = vld [vmem:[%s1465_s1 + $0x18] sm:$0xff] (!%p170_p3)   ;;  %v1257_v6 = vld [vmem:[%s1465_s1 + $0x20] sm:$0xff] (!%p170_p3)   ;;  %v1258_v7 = vld [vmem:[%s1465_s1 + $0x28] sm:$0xff] (!%p170_p3)  }
   0x8   : > { %1166 = vmatpush3.bf16.msra.mxu0 (!%p170_p3), %v1253_v0  ;;  %1221 = vmatpush3.bf16.msra.mxu1 (!%p170_p3), %v1253_v0  ;;  %v1259_v8 = vld [vmem:[%s1465_s1 + $0x30] sm:$0xff] (!%p170_p3)   ;;  %v1260_v9 = vld [vmem:[%s1465_s1 + $0x38] sm:$0xff] (!%p170_p3)   ;;  %v1392_v24 = vld [vmem:[%s1466_s2] ss:$0 sm:$0xff] (!%p170_p3) }
   0x9   : > { %1167 = vmatprep.subr.bf16.mxu0 (!%p170_p3), %v1254_v1  ;;  %1214 = vmatprep.subr.bf16.mxu1 (!%p170_p3), %v1254_v1 }
   0xc   : > { %1168 = vmatpush3.bf16.msra.mxu0 (!%p170_p3), %v1254_v1  ;;  %1222 = vmatpush3.bf16.msra.mxu1 (!%p170_p3), %v1254_v1 }
   0xd   : > { %1169 = vmatprep.subr.bf16.mxu0 (!%p170_p3), %v1255_v2  ;;  %1215 = vmatprep.subr.bf16.mxu1 (!%p170_p3), %v1255_v2 }
   0xe   : > { %s1473_s18 = smov (!%p204_p4, %s951_s18), 63 }
   0xf   : > { %s952_s23 = sshll.u32 %s1473_s18, 2 }
  0x10   : > { %s1356_s26 = scalar_lea.vmem %s1464_s0, %s952_s23  ;;  %1170 = vmatpush3.bf16.msra.mxu0 %v1255_v2  ;;  %1223 = vmatpush3.bf16.msra.mxu1 %v1255_v2  ;;  %s1409_s17 = scalar_lea.vmem %s1467_s3, %s952_s23 }
  0x11   : > { %v1261_v4 = vld [vmem:[%s1356_s26] sm:$0xff]   ;;  %1171 = vmatprep.subr.bf16.mxu0 %v1256_v3  ;;  %1216 = vmatprep.subr.bf16.mxu1 %v1256_v3  ;;  %v1263_v10 = vld [vmem:[%s1356_s26 + $0x8] sm:$0xff]   ;;  %v1265_v12 = vld [vmem:[%s1356_s26 + $0x10] sm:$0xff]  }
  0x12   : > { %v1262_v5 = vld [vmem:[%s1356_s26 + $0x40] sm:$0xff]   ;;  %1181 = vmatprep.mubr.bf16.mxu0 %v1261_v4  ;;  %v1264_v11 = vld [vmem:[%s1356_s26 + $0x48] sm:$0xff]   ;;  %v1266_v13 = vld [vmem:[%s1356_s26 + $0x50] sm:$0xff]  }
  0x13   : > { %1197 = vmatprep.mubr.bf16.mxu1 %v1262_v5  ;;  %v1267_v14 = vld [vmem:[%s1356_s26 + $0x18] sm:$0xff]   ;;  %v1269_v16 = vld [vmem:[%s1356_s26 + $0x20] sm:$0xff]   ;;  %v1271_v18 = vld [vmem:[%s1356_s26 + $0x28] sm:$0xff]  }
  0x14   : > { %1172 = vmatpush3.bf16.msra.mxu0 %v1256_v3  ;;  %1224 = vmatpush3.bf16.msra.mxu1 %v1256_v3  ;;  %v1268_v15 = vld [vmem:[%s1356_s26 + $0x58] sm:$0xff]   ;;  %v1270_v17 = vld [vmem:[%s1356_s26 + $0x60] sm:$0xff]   ;;  %v1272_v19 = vld [vmem:[%s1356_s26 + $0x68] sm:$0xff]  }
  0x15   : > { %1173 = vmatprep.subr.bf16.mxu0 %v1257_v6  ;;  %1217 = vmatprep.subr.bf16.mxu1 %v1257_v6  ;;  %v1273_v20 = vld [vmem:[%s1356_s26 + $0x30] sm:$0xff]   ;;  %v1275_v22 = vld [vmem:[%s1356_s26 + $0x38] sm:$0xff]  }
  0x16   : > { %v1274_v21 = vld [vmem:[%s1356_s26 + $0x70] sm:$0xff]   ;;  %v1276_v23 = vld [vmem:[%s1356_s26 + $0x78] sm:$0xff]  }
  0x18   : > { %1174 = vmatpush3.bf16.msra.mxu0 %v1257_v6  ;;  %1225 = vmatpush3.bf16.msra.mxu1 %v1257_v6 }
  0x19   : > { %1175 = vmatprep.subr.bf16.mxu0 %v1258_v7  ;;  %1218 = vmatprep.subr.bf16.mxu1 %v1258_v7 }
  0x1c   : > { %1176 = vmatpush3.bf16.msra.mxu0 %v1258_v7  ;;  %1226 = vmatpush3.bf16.msra.mxu1 %v1258_v7 }
  0x1d   : > { %1177 = vmatprep.subr.bf16.mxu0 %v1259_v8  ;;  %1219 = vmatprep.subr.bf16.mxu1 %v1259_v8 }
  0x20   : > { %1178 = vmatpush3.bf16.msra.mxu0 %v1259_v8  ;;  %1227 = vmatpush3.bf16.msra.mxu1 %v1259_v8 }
  0x21   : > { %1179 = vmatprep.subr.bf16.mxu0 %v1260_v9  ;;  %1220 = vmatprep.subr.bf16.mxu1 %v1260_v9 }
  0x24   : > { %1180 = vmatpush3.bf16.msra.mxu0 %v1260_v9  ;;  %1228 = vmatpush3.bf16.msra.mxu1 %v1260_v9 }
  0x27   : > { %1182 = vmatmul.mubr.bf16.vlgmr.msra.gmra.mrb[0].mxu0 %v1263_v10  ;;  %1198 = vmatmul.mubr.bf16.vlgmr.msra.gmra.mrb[0].mxu1 %v1264_v11 }
  0x28   : > { %1185 = vmatprep.mubr.bf16.mxu0 %v1265_v12  ;;  %1201 = vmatprep.mubr.bf16.mxu1 %v1266_v13 }
  0x2f   : > { %1186 = vmatmul.mubr.bf16.gmra.mrb[4].mxu0 %v1267_v14  ;;  %1202 = vmatmul.mubr.bf16.gmra.mrb[4].mxu1 %v1268_v15 }
  0x30   : > { %1189 = vmatprep.mubr.bf16.mxu0 %v1269_v16  ;;  %1205 = vmatprep.mubr.bf16.mxu1 %v1270_v17 }
  0x37   : > { %1190 = vmatmul.mubr.bf16.gmra.mrb[8].mxu0 %v1271_v18  ;;  %1206 = vmatmul.mubr.bf16.gmra.mrb[8].mxu1 %v1272_v19 }
  0x38   : > { %1193 = vmatprep.mubr.bf16.mxu0 %v1273_v20  ;;  %1209 = vmatprep.mubr.bf16.mxu1 %v1274_v21 }
  0x3f   : > { %1194 = vmatmul.mubr.bf16.gmra.mrb[12].mxu0 %v1275_v22  ;;  %1210 = vmatmul.mubr.bf16.gmra.mrb[12].mxu1 %v1276_v23 }
  0xfa   : > { %v1183_v25 = vpop.f32.mrb[0].mxu0  ;;  %v1199_v26 = vpop.f32.mrb[0].mxu1 }
  0xfb   : > { %v468_v27 = vadd.f32 %v1183_v25, %v1392_v24  ;;  %v532_v28 = vadd.f32 %v1199_v26, %v1392_v24  ;;  %v459_v29 = vpop.f32.mrb[1].mxu0  ;;  %v523_v30 = vpop.f32.mrb[1].mxu1 }
  0xfc   : > { %v460_v31 = vadd.f32 %v1392_v24, %v459_v29  ;;  %v524_v32 = vadd.f32 %v1392_v24, %v523_v30  ;;  %v1184_v33 = vpop.f32.mrb[2].mxu0  ;;  %v1200_v34 = vpop.f32.mrb[2].mxu1 }
  0xfd   : > { %vm588_vm0 = vcmp.gt.f32.partialorder %v468_v27, 0.0  ;;  %v620_v35 = vmul.f32 0.2, %v468_v27  ;;  %vm604_vm1 = vcmp.gt.f32.partialorder %v532_v28, 0.0  ;;  %v636_v36 = vmul.f32 0.2, %v532_v28 }
  0xfe   : > { %vm586_vm2 = vcmp.gt.f32.partialorder %v460_v31, 0.0  ;;  %v618_v37 = vmul.f32 0.2, %v460_v31  ;;  %vm602_vm3 = vcmp.gt.f32.partialorder %v524_v32, 0.0  ;;  %v634_v38 = vmul.f32 0.2, %v524_v32 }
  0xff   : > { %v471_v39 = vadd.f32 %v1184_v33, %v1392_v24  ;;  %v535_v40 = vadd.f32 %v1200_v34, %v1392_v24  ;;  %v462_v41 = vpop.f32.mrb[3].mxu0  ;;  %v526_v42 = vpop.f32.mrb[3].mxu1  ;;  %v652_v43 = vsel %vm588_vm0, %v468_v27, %v620_v35  ;;  %v668_v44 = vsel %vm604_vm1, %v532_v28, %v636_v36 }
 0x100   : > { %v463_v45 = vadd.f32 %v1392_v24, %v462_v41  ;;  %v527_v46 = vadd.f32 %v1392_v24, %v526_v42  ;;  %v650_v51 = vsel %vm586_vm2, %v460_v31, %v618_v37  ;;  %v666_v52 = vsel %vm602_vm3, %v524_v32, %v634_v38 }
 0x101   : > { %vm589_vm4 = vcmp.gt.f32.partialorder %v471_v39, 0.0  ;;  %v621_v47 = vmul.f32 0.2, %v471_v39  ;;  %vm605_vm5 = vcmp.gt.f32.partialorder %v535_v40, 0.0  ;;  %v637_v48 = vmul.f32 0.2, %v535_v40 }
 0x102   : > { %vm587_vm6 = vcmp.gt.f32.partialorder %v463_v45, 0.0  ;;  %v619_v49 = vmul.f32 0.2, %v463_v45  ;;  %vm603_vm7 = vcmp.gt.f32.partialorder %v527_v46, 0.0  ;;  %v635_v50 = vmul.f32 0.2, %v527_v46 }
 0x103   : > { %v653_v53 = vsel %vm589_vm4, %v471_v39, %v621_v47  ;;  %v669_v54 = vsel %vm605_vm5, %v535_v40, %v637_v48  ;;  %v1187_v55 = vpop.f32.mrb[4].mxu0  ;;  %v1203_v56 = vpop.f32.mrb[4].mxu1 }
 0x104   : > { %v1054_v57 = vpack.c.bf16 %v653_v53, %v652_v43  ;;  %v1094_v58 = vpack.c.bf16 %v669_v54, %v668_v44  ;;  %v651_v59 = vsel %vm587_vm6, %v463_v45, %v619_v49  ;;  %v667_v60 = vsel %vm603_vm7, %v527_v46, %v635_v50  ;;  %v475_v61 = vpop.f32.mrb[5].mxu0  ;;  %v539_v62 = vpop.f32.mrb[5].mxu1 }
 0x105   : > { %v1049_v63 = vpack.c.bf16 %v651_v59, %v650_v51  ;;  %v1089_v0 = vpack.c.bf16 %v667_v60, %v666_v52  ;;  %v484_v1 = vadd.f32 %v1187_v55, %v1392_v24  ;;  %v548_v2 = vadd.f32 %v1203_v56, %v1392_v24  ;;  %v1188_v3 = vpop.f32.mrb[6].mxu0  ;;  %v1204_v4 = vpop.f32.mrb[6].mxu1 }
 0x106   : > { %1126 = vst [vmem:[%s1409_s17 + $0x8] sm:$0xff] %v1054_v57   ;;  %1134 = vst [vmem:[%s1409_s17 + $0x48] sm:$0xff] %v1094_v58   ;;  %v476_v5 = vadd.f32 %v1392_v24, %v475_v61  ;;  %v540_v6 = vadd.f32 %v1392_v24, %v539_v62  ;;  %v487_v7 = vadd.f32 %v1188_v3, %v1392_v24  ;;  %v478_v9 = vpop.f32.mrb[7].mxu0  ;;  %v542_v10 = vpop.f32.mrb[7].mxu1 }
 0x107   : > { %v551_v8 = vadd.f32 %v1204_v4, %v1392_v24  ;;  %1050 = vst [vmem:[%s1409_s17] sm:$0xff] %v1049_v63   ;;  %1133 = vst [vmem:[%s1409_s17 + $0x40] sm:$0xff] %v1089_v0   ;;  %vm592_vm8 = vcmp.gt.f32.partialorder %v484_v1, 0.0  ;;  %v624_v11 = vmul.f32 0.2, %v484_v1  ;;  %vm608_vm9 = vcmp.gt.f32.partialorder %v548_v2, 0.0 }
 0x108   : > { %v640_v12 = vmul.f32 0.2, %v548_v2  ;;  %vm590_vm10 = vcmp.gt.f32.partialorder %v476_v5, 0.0  ;;  %v622_v13 = vmul.f32 0.2, %v476_v5  ;;  %vm606_vm11 = vcmp.gt.f32.partialorder %v540_v6, 0.0 }
 0x109   : > { %v656_v14 = vsel %vm592_vm8, %v484_v1, %v624_v11  ;;  %v638_v15 = vmul.f32 0.2, %v540_v6  ;;  %vm593_vm12 = vcmp.gt.f32.partialorder %v487_v7, 0.0  ;;  %v625_v16 = vmul.f32 0.2, %v487_v7 }
 0x10a   : > { %v672_v17 = vsel %vm608_vm9, %v548_v2, %v640_v12  ;;  %v654_v18 = vsel %vm590_vm10, %v476_v5, %v622_v13  ;;  %vm609_vm13 = vcmp.gt.f32.partialorder %v551_v8, 0.0  ;;  %v641_v19 = vmul.f32 0.2, %v551_v8  ;;  %v1191_v20 = vpop.f32.mrb[8].mxu0  ;;  %v1207_v21 = vpop.f32.mrb[8].mxu1 }
 0x10b   : > { %v657_v22 = vsel %vm593_vm12, %v487_v7, %v625_v16  ;;  %v479_v23 = vadd.f32 %v1392_v24, %v478_v9  ;;  %v543_v25 = vadd.f32 %v1392_v24, %v542_v10  ;;  %v500_v26 = vadd.f32 %v1191_v20, %v1392_v24  ;;  %v491_v27 = vpop.f32.mrb[9].mxu0  ;;  %v555_v28 = vpop.f32.mrb[9].mxu1 }
 0x10c   : > { %v1064_v29 = vpack.c.bf16 %v657_v22, %v656_v14  ;;  %v673_v30 = vsel %vm609_vm13, %v551_v8, %v641_v19  ;;  %v564_v31 = vadd.f32 %v1207_v21, %v1392_v24  ;;  %v492_v32 = vadd.f32 %v1392_v24, %v491_v27  ;;  %v1192_v33 = vpop.f32.mrb[10].mxu0  ;;  %v1208_v34 = vpop.f32.mrb[10].mxu1 }
 0x10d   : > { %v1104_v35 = vpack.c.bf16 %v673_v30, %v672_v17  ;;  %vm591_vm14 = vcmp.gt.f32.partialorder %v479_v23, 0.0  ;;  %v623_v36 = vmul.f32 0.2, %v479_v23  ;;  %vm607_vm15 = vcmp.gt.f32.partialorder %v543_v25, 0.0  ;;  %v494_v37 = vpop.f32.mrb[11].mxu0  ;;  %v558_v38 = vpop.f32.mrb[11].mxu1 }
 0x10e   : > { %1128 = vst [vmem:[%s1409_s17 + $0x18] sm:$0xff] %v1064_v29   ;;  %v639_v39 = vmul.f32 0.2, %v543_v25  ;;  %vm596_vm0 = vcmp.gt.f32.partialorder %v500_v26, 0.0  ;;  %v628_v40 = vmul.f32 0.2, %v500_v26  ;;  %v670_v41 = vsel %vm606_vm11, %v540_v6, %v638_v15 }
 0x10f   : > { %vm612_vm1 = vcmp.gt.f32.partialorder %v564_v31, 0.0  ;;  %1136 = vst [vmem:[%s1409_s17 + $0x58] sm:$0xff] %v1104_v35   ;;  %v655_v42 = vsel %vm591_vm14, %v479_v23, %v623_v36  ;;  %v644_v43 = vmul.f32 0.2, %v564_v31  ;;  %vm594_vm2 = vcmp.gt.f32.partialorder %v492_v32, 0.0 }
 0x110   : > { %v1059_v44 = vpack.c.bf16 %v655_v42, %v654_v18  ;;  %v671_v45 = vsel %vm607_vm15, %v543_v25, %v639_v39  ;;  %v626_v46 = vmul.f32 0.2, %v492_v32  ;;  %v556_v47 = vadd.f32 %v1392_v24, %v555_v28 }
 0x111   : > { %v1099_v48 = vpack.c.bf16 %v671_v45, %v670_v41  ;;  %v660_v49 = vsel %vm596_vm0, %v500_v26, %v628_v40  ;;  %v676_v50 = vsel %vm612_vm1, %v564_v31, %v644_v43  ;;  %v503_v51 = vadd.f32 %v1192_v33, %v1392_v24 }
 0x112   : > { %1127 = vst [vmem:[%s1409_s17 + $0x10] sm:$0xff] %v1059_v44   ;;  %vm610_vm3 = vcmp.gt.f32.partialorder %v556_v47, 0.0  ;;  %v642_v52 = vmul.f32 0.2, %v556_v47  ;;  %v567_v53 = vadd.f32 %v1208_v34, %v1392_v24  ;;  %v495_v54 = vadd.f32 %v1392_v24, %v494_v37  ;;  %v1195_v55 = vpop.f32.mrb[12].mxu0  ;;  %v1211_v56 = vpop.f32.mrb[12].mxu1 }
 0x113   : > { %1135 = vst [vmem:[%s1409_s17 + $0x50] sm:$0xff] %v1099_v48   ;;  %vm597_vm4 = vcmp.gt.f32.partialorder %v503_v51, 0.0  ;;  %v629_v57 = vmul.f32 0.2, %v503_v51  ;;  %v559_v58 = vadd.f32 %v1392_v24, %v558_v38  ;;  %v516_v59 = vadd.f32 %v1195_v55, %v1392_v24  ;;  %v507_v60 = vpop.f32.mrb[13].mxu0  ;;  %v571_v61 = vpop.f32.mrb[13].mxu1 }
 0x114   : > { %v658_v62 = vsel %vm594_vm2, %v492_v32, %v626_v46  ;;  %vm613_vm5 = vcmp.gt.f32.partialorder %v567_v53, 0.0  ;;  %v645_v63 = vmul.f32 0.2, %v567_v53  ;;  %vm595_vm6 = vcmp.gt.f32.partialorder %v495_v54, 0.0  ;;  %v1196_v0 = vpop.f32.mrb[14].mxu0  ;;  %v1212_v1 = vpop.f32.mrb[14].mxu1 }
 0x115   : > { %v661_v2 = vsel %vm597_vm4, %v503_v51, %v629_v57  ;;  %v627_v3 = vmul.f32 0.2, %v495_v54  ;;  %vm611_vm7 = vcmp.gt.f32.partialorder %v559_v58, 0.0  ;;  %v643_v4 = vmul.f32 0.2, %v559_v58  ;;  %v510_v5 = vpop.f32.mrb[15].mxu0 }
 0x116   : > { %v674_v6 = vsel %vm610_vm3, %v556_v47, %v642_v52  ;;  %v1074_v7 = vpack.c.bf16 %v661_v2, %v660_v49  ;;  %v677_v8 = vsel %vm613_vm5, %v567_v53, %v645_v63  ;;  %v632_v9 = vmul.f32 0.2, %v516_v59  ;;  %v574_v10 = vpop.f32.mrb[15].mxu1 }
 0x117   : > { %v1114_v11 = vpack.c.bf16 %v677_v8, %v676_v50  ;;  %v659_v12 = vsel %vm595_vm6, %v495_v54, %v627_v3  ;;  %v675_v13 = vsel %vm611_vm7, %v559_v58, %v643_v4  ;;  %v580_v14 = vadd.f32 %v1211_v56, %v1392_v24 }
 0x118   : > { %1130 = vst [vmem:[%s1409_s17 + $0x28] sm:$0xff] %v1074_v7   ;;  %v1069_v15 = vpack.c.bf16 %v659_v12, %v658_v62  ;;  %v1109_v16 = vpack.c.bf16 %v675_v13, %v674_v6  ;;  %vm600_vm8 = vcmp.gt.f32.partialorder %v516_v59, 0.0  ;;  %v508_v17 = vadd.f32 %v1392_v24, %v507_v60 }
 0x119   : > { %1138 = vst [vmem:[%s1409_s17 + $0x68] sm:$0xff] %v1114_v11   ;;  %vm616_vm9 = vcmp.gt.f32.partialorder %v580_v14, 0.0  ;;  %v648_v18 = vmul.f32 0.2, %v580_v14  ;;  %v572_v19 = vadd.f32 %v1392_v24, %v571_v61  ;;  %v519_v20 = vadd.f32 %v1196_v0, %v1392_v24 }
 0x11a   : > { %1129 = vst [vmem:[%s1409_s17 + $0x20] sm:$0xff] %v1069_v15   ;;  %1137 = vst [vmem:[%s1409_s17 + $0x60] sm:$0xff] %v1109_v16   ;;  %v630_v21 = vmul.f32 0.2, %v508_v17  ;;  %v583_v22 = vadd.f32 %v1212_v1, %v1392_v24  ;;  %v511_v23 = vadd.f32 %v1392_v24, %v510_v5  ;;  %v664_v25 = vsel %vm600_vm8, %v516_v59, %v632_v9 }
 0x11b   : > { %vm598_vm10 = vcmp.gt.f32.partialorder %v508_v17, 0.0  ;;  %vm601_vm11 = vcmp.gt.f32.partialorder %v519_v20, 0.0  ;;  %v680_v26 = vsel %vm616_vm9, %v580_v14, %v648_v18  ;;  %v633_v27 = vmul.f32 0.2, %v519_v20 }
 0x11c   : > { %vm617_vm12 = vcmp.gt.f32.partialorder %v583_v22, 0.0  ;;  %v649_v28 = vmul.f32 0.2, %v583_v22  ;;  %vm614_vm13 = vcmp.gt.f32.partialorder %v572_v19, 0.0  ;;  %vm599_vm14 = vcmp.gt.f32.partialorder %v511_v23, 0.0 }
 0x11d   : > { %v631_v29 = vmul.f32 0.2, %v511_v23  ;;  %v575_v30 = vadd.f32 %v1392_v24, %v574_v10  ;;  %v662_v31 = vsel %vm598_vm10, %v508_v17, %v630_v21  ;;  %v646_v32 = vmul.f32 0.2, %v572_v19 }
 0x11e   : > { %v665_v33 = vsel %vm601_vm11, %v519_v20, %v633_v27  ;;  %v681_v34 = vsel %vm617_vm12, %v583_v22, %v649_v28 }
 0x11f   : > { %v1084_v35 = vpack.c.bf16 %v665_v33, %v664_v25  ;;  %v1124_v36 = vpack.c.bf16 %v681_v34, %v680_v26  ;;  %v663_v37 = vsel %vm599_vm14, %v511_v23, %v631_v29  ;;  %vm615_vm15 = vcmp.gt.f32.partialorder %v575_v30, 0.0 }
 0x120   : > { %v1079_v38 = vpack.c.bf16 %v663_v37, %v662_v31  ;;  %v647_v39 = vmul.f32 0.2, %v575_v30  ;;  %v678_v40 = vsel %vm614_vm13, %v572_v19, %v646_v32 }
 0x121   : > { %1132 = vst [vmem:[%s1409_s17 + $0x38] sm:$0xff] %v1084_v35   ;;  %1140 = vst [vmem:[%s1409_s17 + $0x78] sm:$0xff] %v1124_v36  }
 0x122   : > { %1131 = vst [vmem:[%s1409_s17 + $0x30] sm:$0xff] %v1079_v38   ;;  %v679_v41 = vsel %vm615_vm15, %v575_v30, %v647_v39 }
 0x123   : > { %v1119_v42 = vpack.c.bf16 %v679_v41, %v678_v40 }
 0x125   : > { %1139 = vst [vmem:[%s1409_s17 + $0x70] sm:$0xff] %v1119_v42  }
 0x126 PF: > { %s13_s14 = sadd.s32 1, %s1299_s14   ;;  %s1468_s12 = smov %s1295_s13 }
 0x127   : > { %p10_p5 = scmp.ge.s32.totalorder %s13_s14, 4   ;;  %s1469_s13 = smov %s1471_s15 }
 0x129   :  { %12 = sbr.rel (!%p10_p5) target bundleno = 2 (0x2), region = 68 }

// kernel: _lambda_.10
= control target key start
LH: loop header
LB: loop body
LE: loop exit
PB: predicated region body
PF: predicated region fallthrough
CT: control target
= control target key end

     0   :  { %s455_s0 = inlined_call_operand.vmem [shape: bf16[128,128], index: 0, kind: input, shape index: {}]   ;;  %s456_s1 = inlined_call_operand.vmem [shape: f32[1,128], index: 1, kind: input, shape index: {}]   ;;  %s457_s2 = inlined_call_operand.vmem [shape: f32[1,128], index: 2, kind: input, shape index: {}]   ;;  %s458_s3 = inlined_call_operand.vmem [shape: bf16[128,128], index: 3, kind: output, shape index: {}]  }
   0x1   :  { %v259_v0 = vld [vmem:[%s455_s0] sm:$0xff]   ;;  %v330_v4 = vld [vmem:[%s455_s0 + $0x8] sm:$0xff]   ;;  %v331_v5 = vld [vmem:[%s455_s0 + $0x10] sm:$0xff]  }
   0x2   :  { %v370_v1 = vld [vmem:[%s456_s1] ss:$0 sm:$0xff]  ;;  %v260_v2 = vunpack.c.l.bf16 %v259_v0  ;;  %v261_v3 = vunpack.c.h.bf16 %v259_v0  ;;  %v332_v6 = vld [vmem:[%s455_s0 + $0x18] sm:$0xff]   ;;  %v264_v8 = vunpack.c.l.bf16 %v330_v4  ;;  %v265_v9 = vunpack.c.h.bf16 %v330_v4  ;;  %v334_v35 = vld [vmem:[%s455_s0 + $0x28] sm:$0xff]  }
   0x3   :  { %v384_v7 = vld [vmem:[%s457_s2] ss:$0 sm:$0xff]  ;;  %v268_v10 = vunpack.c.l.bf16 %v331_v5  ;;  %v269_v11 = vunpack.c.h.bf16 %v331_v5  ;;  %v272_v14 = vunpack.c.l.bf16 %v332_v6  ;;  %v273_v15 = vunpack.c.h.bf16 %v332_v6  ;;  %v335_v48 = vld [vmem:[%s455_s0 + $0x30] sm:$0xff]   ;;  %v336_v4 = vld [vmem:[%s455_s0 + $0x38] sm:$0xff]  }
   0x4   :  { %v53_v12 = vmul.f32 %v260_v2, %v370_v1  ;;  %v54_v13 = vmul.f32 %v261_v3, %v370_v1  ;;  %v55_v16 = vmul.f32 %v264_v8, %v370_v1  ;;  %v56_v17 = vmul.f32 %v265_v9, %v370_v1  ;;  %v333_v34 = vld [vmem:[%s455_s0 + $0x20] sm:$0xff]  }
   0x5   :  { %v57_v18 = vmul.f32 %v268_v10, %v370_v1  ;;  %v58_v19 = vmul.f32 %v269_v11, %v370_v1  ;;  %v59_v22 = vmul.f32 %v272_v14, %v370_v1  ;;  %v60_v23 = vmul.f32 %v273_v15, %v370_v1 }
   0x6   :  { %v76_v20 = vadd.f32 %v384_v7, %v53_v12  ;;  %v77_v21 = vadd.f32 %v384_v7, %v54_v13  ;;  %v78_v24 = vadd.f32 %v384_v7, %v55_v16  ;;  %v79_v25 = vadd.f32 %v384_v7, %v56_v17 }
   0x7   :  { %v80_v26 = vadd.f32 %v384_v7, %v57_v18  ;;  %v81_v27 = vadd.f32 %v384_v7, %v58_v19  ;;  %v82_v42 = vadd.f32 %v384_v7, %v59_v22  ;;  %v83_v43 = vadd.f32 %v384_v7, %v60_v23 }
   0x8   :  { %vm92_vm0 = vcmp.gt.f32.partialorder %v76_v20, 0.0  ;;  %vm93_vm1 = vcmp.gt.f32.partialorder %v77_v21, 0.0  ;;  %v108_v28 = vmul.f32 0.2, %v76_v20  ;;  %v109_v29 = vmul.f32 0.2, %v77_v21 }
   0x9   :  { %vm94_vm2 = vcmp.gt.f32.partialorder %v78_v24, 0.0  ;;  %vm95_vm3 = vcmp.gt.f32.partialorder %v79_v25, 0.0  ;;  %v110_v30 = vmul.f32 0.2, %v78_v24  ;;  %v111_v31 = vmul.f32 0.2, %v79_v25 }
   0xa   :  { %v124_v32 = vsel %vm92_vm0, %v76_v20, %v108_v28  ;;  %v125_v33 = vsel %vm93_vm1, %v77_v21, %v109_v29  ;;  %vm96_vm4 = vcmp.gt.f32.partialorder %v80_v26, 0.0  ;;  %vm97_vm5 = vcmp.gt.f32.partialorder %v81_v27, 0.0 }
   0xb   :  { %v293_v36 = vpack.c.bf16 %v125_v33, %v124_v32  ;;  %v126_v37 = vsel %vm94_vm2, %v78_v24, %v110_v30  ;;  %v127_v38 = vsel %vm95_vm3, %v79_v25, %v111_v31  ;;  %v112_v39 = vmul.f32 0.2, %v80_v26 }
   0xc   :  { %v298_v40 = vpack.c.bf16 %v127_v38, %v126_v37  ;;  %v113_v41 = vmul.f32 0.2, %v81_v27  ;;  %v276_v45 = vunpack.c.l.bf16 %v333_v34  ;;  %v277_v46 = vunpack.c.h.bf16 %v333_v34 }
   0xd   :  { %294 = vst [vmem:[%s458_s3] sm:$0xff] %v293_v36   ;;  %v128_v44 = vsel %vm96_vm4, %v80_v26, %v112_v39  ;;  %v280_v47 = vunpack.c.l.bf16 %v334_v35  ;;  %vm98_vm6 = vcmp.gt.f32.partialorder %v82_v42, 0.0  ;;  %vm99_vm7 = vcmp.gt.f32.partialorder %v83_v43, 0.0 }
   0xe   :  { %337 = vst [vmem:[%s458_s3 + $0x8] sm:$0xff] %v298_v40   ;;  %v129_v49 = vsel %vm97_vm5, %v81_v27, %v113_v41  ;;  %v114_v50 = vmul.f32 0.2, %v82_v42  ;;  %v115_v52 = vmul.f32 0.2, %v83_v43  ;;  %v61_v53 = vmul.f32 %v276_v45, %v370_v1 }
   0xf   :  { %v303_v51 = vpack.c.bf16 %v129_v49, %v128_v44  ;;  %v62_v54 = vmul.f32 %v277_v46, %v370_v1  ;;  %v281_v56 = vunpack.c.h.bf16 %v334_v35  ;;  %v63_v57 = vmul.f32 %v280_v47, %v370_v1 }
  0x10   :  { %v130_v55 = vsel %vm98_vm6, %v82_v42, %v114_v50  ;;  %v284_v58 = vunpack.c.l.bf16 %v335_v48  ;;  %v131_v59 = vsel %vm99_vm7, %v83_v43, %v115_v52  ;;  %v84_v60 = vadd.f32 %v384_v7, %v61_v53 }
  0x11   :  { %338 = vst [vmem:[%s458_s3 + $0x10] sm:$0xff] %v303_v51   ;;  %v85_v61 = vadd.f32 %v384_v7, %v62_v54  ;;  %v285_v62 = vunpack.c.h.bf16 %v335_v48  ;;  %v308_v63 = vpack.c.bf16 %v131_v59, %v130_v55  ;;  %v64_v0 = vmul.f32 %v281_v56, %v370_v1 }
  0x12   :  { %v86_v2 = vadd.f32 %v384_v7, %v63_v57  ;;  %v65_v3 = vmul.f32 %v284_v58, %v370_v1  ;;  %vm100_vm8 = vcmp.gt.f32.partialorder %v84_v60, 0.0  ;;  %v116_v5 = vmul.f32 0.2, %v84_v60 }
  0x13   :  { %vm101_vm9 = vcmp.gt.f32.partialorder %v85_v61, 0.0  ;;  %v117_v6 = vmul.f32 0.2, %v85_v61  ;;  %339 = vst [vmem:[%s458_s3 + $0x18] sm:$0xff] %v308_v63   ;;  %v87_v8 = vadd.f32 %v384_v7, %v64_v0  ;;  %v66_v10 = vmul.f32 %v285_v62, %v370_v1 }
  0x14   :  { %vm102_vm10 = vcmp.gt.f32.partialorder %v86_v2, 0.0  ;;  %v118_v9 = vmul.f32 0.2, %v86_v2  ;;  %v132_v11 = vsel %vm100_vm8, %v84_v60, %v116_v5  ;;  %v88_v13 = vadd.f32 %v384_v7, %v65_v3 }
  0x15   :  { %v133_v12 = vsel %vm101_vm9, %v85_v61, %v117_v6  ;;  %v288_v14 = vunpack.c.l.bf16 %v336_v4  ;;  %vm103_vm11 = vcmp.gt.f32.partialorder %v87_v8, 0.0  ;;  %v119_v16 = vmul.f32 0.2, %v87_v8 }
  0x16   :  { %v313_v15 = vpack.c.bf16 %v133_v12, %v132_v11  ;;  %v134_v17 = vsel %vm102_vm10, %v86_v2, %v118_v9  ;;  %v89_v18 = vadd.f32 %v384_v7, %v66_v10  ;;  %vm104_vm12 = vcmp.gt.f32.partialorder %v88_v13, 0.0 }
  0x17   :  { %v120_v19 = vmul.f32 0.2, %v88_v13  ;;  %v289_v20 = vunpack.c.h.bf16 %v336_v4  ;;  %v135_v21 = vsel %vm103_vm11, %v87_v8, %v119_v16  ;;  %v67_v22 = vmul.f32 %v288_v14, %v370_v1 }
  0x18   :  { %340 = vst [vmem:[%s458_s3 + $0x20] sm:$0xff] %v313_v15   ;;  %v318_v23 = vpack.c.bf16 %v135_v21, %v134_v17  ;;  %vm105_vm13 = vcmp.gt.f32.partialorder %v89_v18, 0.0  ;;  %v121_v24 = vmul.f32 0.2, %v89_v18 }
  0x19   :  { %v136_v25 = vsel %vm104_vm12, %v88_v13, %v120_v19  ;;  %v68_v26 = vmul.f32 %v289_v20, %v370_v1  ;;  %v90_v27 = vadd.f32 %v384_v7, %v67_v22 }
  0x1a   :  { %341 = vst [vmem:[%s458_s3 + $0x28] sm:$0xff] %v318_v23   ;;  %v137_v28 = vsel %vm105_vm13, %v89_v18, %v121_v24 }
  0x1b   :  { %v323_v29 = vpack.c.bf16 %v137_v28, %v136_v25  ;;  %v91_v30 = vadd.f32 %v384_v7, %v68_v26  ;;  %vm106_vm14 = vcmp.gt.f32.partialorder %v90_v27, 0.0  ;;  %v122_v31 = vmul.f32 0.2, %v90_v27 }
  0x1d   :  { %342 = vst [vmem:[%s458_s3 + $0x30] sm:$0xff] %v323_v29   ;;  %vm107_vm15 = vcmp.gt.f32.partialorder %v91_v30, 0.0  ;;  %v123_v32 = vmul.f32 0.2, %v91_v30  ;;  %v138_v33 = vsel %vm106_vm14, %v90_v27, %v122_v31 }
  0x1f   :  { %v139_v1 = vsel %vm107_vm15, %v91_v30, %v123_v32 }
  0x20   :  { %v328_v34 = vpack.c.bf16 %v139_v1, %v138_v33 }
  0x22   :  { %343 = vst [vmem:[%s458_s3 + $0x38] sm:$0xff] %v328_v34  }

// kernel: _lambda_.9
= control target key start
LH: loop header
LB: loop body
LE: loop exit
PB: predicated region body
PF: predicated region fallthrough
CT: control target
= control target key end

     0   :  { %s3264_s18 = smov 0   ;;  %s3266_s19 = smov 0   ;;  %s3804_s0 = inlined_call_operand.vmem [shape: bf16[128,2048], index: 0, kind: input, shape index: {}]   ;;  %s3805_s1 = inlined_call_operand.vmem [shape: bf16[2048,128], index: 1, kind: input, shape index: {}]   ;;  %s3806_s2 = inlined_call_operand.vmem [shape: f32[1,128], index: 2, kind: input, shape index: {}]   ;;  %s3807_s3 = inlined_call_operand.vmem [shape: bf16[128,128], index: 3, kind: output, shape index: {0}]   ;;  %s3808_s4 = inlined_call_operand.vmem [shape: f32[2,1,128], index: 4, kind: output, shape index: {1}]   ;;  %s3809_s5 = inlined_call_operand.vmem [shape: f32[2,1,128], index: 5, kind: output, shape index: {2}]  }
   0x1   :  { %s3268_s20 = smov 0  }
   0x2 LB: > { %s28_s2 = sadd.s32 1, %s3228_s19  ;;  %p2498_p0 = scmp.ge.s32.totalorder %s3232_s20, 1  ;;  %s3232_s20 = sphi %s3268_s20, %s16_s20   ;;  %s3228_s19 = sphi %s3266_s19, %s3811_s19   ;;  %s3224_s18 = sphi %s3264_s18, %s3810_s18  }
   0x3   : > { %p30_p1 = scmp.ge.s32.totalorder %s28_s2, 2  ;;  %p229_p2 = scmp.lt.s32.totalorder %s3232_s20, 3 }
   0x5   : > { %s3813_s2 = smov (%p30_p1, %s28_s2), 0  ;;  %p230_p3 = pnand %p2498_p0, %p229_p2 }
   0x6   : > { %v3082_v0 = vld [vmem:[%s3805_s1 + $0x40] sm:$0xff] (!%p230_p3)   ;;  %v3086_v4 = vld [vmem:[%s3805_s1 + $0x48] sm:$0xff] (!%p230_p3)   ;;  %v3090_v8 = vld [vmem:[%s3805_s1 + $0x50] sm:$0xff] (!%p230_p3)   ;;  %s2499_s6 = sshll.u32 (!%p230_p3), %s3224_s18, 3  ;;  %p303_p5 = scmp.lt.s32.totalorder (!%p230_p3), %s3224_s18, 1 }
   0x7   : > { %233 = sbr.rel (%p230_p3) target bundleno = 398 (0x18e), region = 32  ;;  %v3083_v1 = vld [vmem:[%s3805_s1 + $0xc0] sm:$0xff] (!%p230_p3)   ;;  %2738 = vmatprep.subr.bf16.mxu0 (!%p230_p3), %v3082_v0  ;;  %v3087_v5 = vld [vmem:[%s3805_s1 + $0xc8] sm:$0xff] (!%p230_p3)   ;;  %v3091_v9 = vld [vmem:[%s3805_s1 + $0xd0] sm:$0xff] (!%p230_p3)   ;;  %p281_p4 = scmp.lt.s32.totalorder (!%p230_p3), %s2499_s6, 15 }
   0x8   : > { %v3084_v2 = vld [vmem:[%s3805_s1] sm:$0xff] (!%p230_p3)   ;;  %2778 = vmatprep.subr.bf16.mxu1 (!%p230_p3), %v3083_v1  ;;  %v3088_v6 = vld [vmem:[%s3805_s1 + $0x8] sm:$0xff] (!%p230_p3)   ;;  %v3092_v10 = vld [vmem:[%s3805_s1 + $0x10] sm:$0xff] (!%p230_p3)  }
   0x9   : > { %v3085_v3 = vld [vmem:[%s3805_s1 + $0x80] sm:$0xff] (!%p230_p3)   ;;  %2739 = vmatpush3.bf16.msra.mxu0 (!%p230_p3), %v3084_v2  ;;  %v3089_v7 = vld [vmem:[%s3805_s1 + $0x88] sm:$0xff] (!%p230_p3)   ;;  %v3093_v11 = vld [vmem:[%s3805_s1 + $0x90] sm:$0xff] (!%p230_p3)  }
   0xa   : > { %2779 = vmatpush3.bf16.msra.mxu1 (!%p230_p3), %v3085_v3  ;;  %2740 = vmatprep.subr.bf16.mxu0 (!%p230_p3), %v3086_v4  ;;  %v3094_v12 = vld [vmem:[%s3805_s1 + $0x58] sm:$0xff] (!%p230_p3)   ;;  %v3098_v16 = vld [vmem:[%s3805_s1 + $0x60] sm:$0xff] (!%p230_p3)   ;;  %v3102_v20 = vld [vmem:[%s3805_s1 + $0x68] sm:$0xff] (!%p230_p3)  }
   0xb   : > { %2780 = vmatprep.subr.bf16.mxu1 (!%p230_p3), %v3087_v5  ;;  %v3095_v13 = vld [vmem:[%s3805_s1 + $0xd8] sm:$0xff] (!%p230_p3)   ;;  %v3099_v17 = vld [vmem:[%s3805_s1 + $0xe0] sm:$0xff] (!%p230_p3)   ;;  %v3103_v21 = vld [vmem:[%s3805_s1 + $0xe8] sm:$0xff] (!%p230_p3)  }
   0xc   : > { %v3096_v14 = vld [vmem:[%s3805_s1 + $0x18] sm:$0xff] (!%p230_p3)   ;;  %v3100_v18 = vld [vmem:[%s3805_s1 + $0x20] sm:$0xff] (!%p230_p3)   ;;  %v3104_v22 = vld [vmem:[%s3805_s1 + $0x28] sm:$0xff] (!%p230_p3)  }
   0xd   : > { %2741 = vmatpush3.bf16.msra.mxu0 (!%p230_p3), %v3088_v6  ;;  %v3097_v15 = vld [vmem:[%s3805_s1 + $0x98] sm:$0xff] (!%p230_p3)   ;;  %v3101_v19 = vld [vmem:[%s3805_s1 + $0xa0] sm:$0xff] (!%p230_p3)   ;;  %v3105_v23 = vld [vmem:[%s3805_s1 + $0xa8] sm:$0xff] (!%p230_p3)  }
   0xe   : > { %2781 = vmatpush3.bf16.msra.mxu1 %v3089_v7  ;;  %2742 = vmatprep.subr.bf16.mxu0 %v3090_v8  ;;  %s3815_s6 = smov (!%p281_p4, %s2499_s6), 15  ;;  %v3106_v24 = vld [vmem:[%s3805_s1 + $0x70] sm:$0xff]   ;;  %v3110_v28 = vld [vmem:[%s3805_s1 + $0x78] sm:$0xff]   ;;  %v3114_v40 = vld [vmem:[%s3805_s1 + $0x140] sm:$0xff]   ;;  %s3817_s18 = smov (!%p303_p5, %s3224_s18), 1 }
   0xf   : > { %2782 = vmatprep.subr.bf16.mxu1 %v3091_v9  ;;  %v3107_v25 = vld [vmem:[%s3805_s1 + $0xf0] sm:$0xff]   ;;  %s2706_s8 = sshll.u32 %s3815_s6, 6  ;;  %v3111_v29 = vld [vmem:[%s3805_s1 + $0xf8] sm:$0xff]   ;;  %v3115_v41 = vld [vmem:[%s3805_s1 + $0x1c0] sm:$0xff]   ;;  %s308_s21 = scalar_lea.vmem %s3808_s4, %s3817_s18 }
  0x10   : > { %v3108_v26 = vld [vmem:[%s3805_s1 + $0x30] sm:$0xff]   ;;  %s3381_s17 = scalar_lea.vmem %s3804_s0, %s2706_s8  ;;  %v3112_v30 = vld [vmem:[%s3805_s1 + $0x38] sm:$0xff]   ;;  %v3116_v42 = vld [vmem:[%s3805_s1 + $0x100] sm:$0xff]   ;;  %s314_s24 = scalar_lea.vmem %s3809_s5, %s3817_s18 }
  0x11   : > { %2743 = vmatpush3.bf16.msra.mxu0 %v3092_v10  ;;  %v3109_v27 = vld [vmem:[%s3805_s1 + $0xb0] sm:$0xff]   ;;  %v3113_v31 = vld [vmem:[%s3805_s1 + $0xb8] sm:$0xff]   ;;  %v316_v32 = vld [vmem:[%s3381_s17] sm:$0xff] }
  0x12   : > { %2783 = vmatpush3.bf16.msra.mxu1 %v3093_v11  ;;  %2744 = vmatprep.subr.bf16.mxu0 %v3094_v12  ;;  %v324_v33 = vld [vmem:[%s3381_s17 + $0x40] sm:$0xff]  ;;  %v317_v34 = vld [vmem:[%s3381_s17 + $0x8] sm:$0xff]  ;;  %v3122_v56 = vld [vmem:[%s3805_s1 + $0x150] sm:$0xff]  }
  0x13   : > { %2784 = vmatprep.subr.bf16.mxu1 %v3095_v13  ;;  %v2504_v35 = vcombine.low %v316_v32, %v324_v33  ;;  %v2505_v36 = vcombine.high %v316_v32, %v324_v33  ;;  %v325_v37 = vld [vmem:[%s3381_s17 + $0x48] sm:$0xff]  ;;  %v3117_v43 = vld [vmem:[%s3805_s1 + $0x180] sm:$0xff]   ;;  %v3123_v57 = vld [vmem:[%s3805_s1 + $0x1d0] sm:$0xff]  }
  0x14   : > { %v2506_v38 = vcombine.low %v317_v34, %v325_v37  ;;  %v2507_v39 = vcombine.high %v317_v34, %v325_v37  ;;  %v3118_v44 = vld [vmem:[%s3805_s1 + $0x148] sm:$0xff]   ;;  %v332_v48 = vld [vmem:[%s3381_s17 + $0x80] sm:$0xff]  ;;  %v3124_v58 = vld [vmem:[%s3805_s1 + $0x110] sm:$0xff]  }
  0x15   : > { %2745 = vmatpush3.bf16.msra.mxu0 %v3096_v14  ;;  %1756 = vmatprep.mubr.bf16.mxu0 %v2505_v36  ;;  %v3119_v45 = vld [vmem:[%s3805_s1 + $0x1c8] sm:$0xff]   ;;  %v340_v49 = vld [vmem:[%s3381_s17 + $0xc0] sm:$0xff]  ;;  %v3125_v59 = vld [vmem:[%s3805_s1 + $0x190] sm:$0xff]  }
  0x16   : > { %2785 = vmatpush3.bf16.msra.mxu1 %v3097_v15  ;;  %2746 = vmatprep.subr.bf16.mxu0 %v3098_v16  ;;  %v3120_v46 = vld [vmem:[%s3805_s1 + $0x108] sm:$0xff]   ;;  %v2521_v50 = vcombine.high %v332_v48, %v340_v49  ;;  %v2520_v53 = vcombine.low %v332_v48, %v340_v49  ;;  %v3126_v60 = vld [vmem:[%s3805_s1 + $0x158] sm:$0xff]   ;;  %v348_v0 = vld [vmem:[%s3381_s17 + $0x100] sm:$0xff] }
  0x17   : > { %2786 = vmatprep.subr.bf16.mxu1 %v3099_v17  ;;  %1821 = vmatprep.mubr.bf16.mxu1 %v2507_v39  ;;  %v3121_v47 = vld [vmem:[%s3805_s1 + $0x188] sm:$0xff]   ;;  %v3127_v61 = vld [vmem:[%s3805_s1 + $0x1d8] sm:$0xff]   ;;  %v356_v1 = vld [vmem:[%s3381_s17 + $0x140] sm:$0xff] }
  0x18   : > { %v333_v51 = vld [vmem:[%s3381_s17 + $0x88] sm:$0xff]  ;;  %v3128_v62 = vld [vmem:[%s3805_s1 + $0x118] sm:$0xff]   ;;  %v2537_v4 = vcombine.high %v348_v0, %v356_v1  ;;  %v2536_v6 = vcombine.low %v348_v0, %v356_v1  ;;  %v3130_v8 = vld [vmem:[%s3805_s1 + $0x160] sm:$0xff]  }
  0x19   : > { %2747 = vmatpush3.bf16.msra.mxu0 %v3100_v18  ;;  %v341_v52 = vld [vmem:[%s3381_s17 + $0xc8] sm:$0xff]  ;;  %v3129_v63 = vld [vmem:[%s3805_s1 + $0x198] sm:$0xff]   ;;  %v3131_v9 = vld [vmem:[%s3805_s1 + $0x1e0] sm:$0xff]  }
  0x1a   : > { %2787 = vmatpush3.bf16.msra.mxu1 %v3101_v19  ;;  %2748 = vmatprep.subr.bf16.mxu0 %v3102_v20  ;;  %v2523_v54 = vcombine.high %v333_v51, %v341_v52  ;;  %v2522_v55 = vcombine.low %v333_v51, %v341_v52  ;;  %v349_v2 = vld [vmem:[%s3381_s17 + $0x108] sm:$0xff]  ;;  %v3132_v10 = vld [vmem:[%s3805_s1 + $0x120] sm:$0xff]   ;;  %v318_v32 = vld [vmem:[%s3381_s17 + $0x10] sm:$0xff] }
  0x1b   : > { %2788 = vmatprep.subr.bf16.mxu1 %v3103_v21  ;;  %v357_v3 = vld [vmem:[%s3381_s17 + $0x148] sm:$0xff]  ;;  %v3133_v11 = vld [vmem:[%s3805_s1 + $0x1a0] sm:$0xff]   ;;  %v326_v33 = vld [vmem:[%s3381_s17 + $0x50] sm:$0xff] }
  0x1c   : > { %v2539_v5 = vcombine.high %v349_v2, %v357_v3  ;;  %v2538_v7 = vcombine.low %v349_v2, %v357_v3  ;;  %v3134_v12 = vld [vmem:[%s3805_s1 + $0x168] sm:$0xff]   ;;  %v364_v16 = vld [vmem:[%s3381_s17 + $0x180] sm:$0xff]  ;;  %v2508_v34 = vcombine.low %v318_v32, %v326_v33  ;;  %v319_v36 = vld [vmem:[%s3381_s17 + $0x18] sm:$0xff] }
  0x1d   : > { %2749 = vmatpush3.bf16.msra.mxu0 %v3104_v22  ;;  %v3135_v13 = vld [vmem:[%s3805_s1 + $0x1e8] sm:$0xff]   ;;  %v372_v17 = vld [vmem:[%s3381_s17 + $0x1c0] sm:$0xff]  ;;  %v327_v37 = vld [vmem:[%s3381_s17 + $0x58] sm:$0xff] }
  0x1e   : > { %2789 = vmatpush3.bf16.msra.mxu1 %v3105_v23  ;;  %2750 = vmatprep.subr.bf16.mxu0 %v3106_v24  ;;  %v3136_v14 = vld [vmem:[%s3805_s1 + $0x128] sm:$0xff]   ;;  %v2553_v19 = vcombine.high %v364_v16, %v372_v17  ;;  %v2552_v21 = vcombine.low %v364_v16, %v372_v17  ;;  %v3138_v24 = vld [vmem:[%s3805_s1 + $0x170] sm:$0xff]   ;;  %v2511_v39 = vcombine.high %v319_v36, %v327_v37  ;;  %v343_v51 = vld [vmem:[%s3381_s17 + $0xd8] sm:$0xff] }
  0x1f   : > { %2790 = vmatprep.subr.bf16.mxu1 %v3107_v25  ;;  %v3137_v15 = vld [vmem:[%s3805_s1 + $0x1a8] sm:$0xff]   ;;  %v3139_v25 = vld [vmem:[%s3805_s1 + $0x1f0] sm:$0xff]   ;;  %v351_v2 = vld [vmem:[%s3381_s17 + $0x118] sm:$0xff] }
  0x20   : > { %v365_v18 = vld [vmem:[%s3381_s17 + $0x188] sm:$0xff]  ;;  %v334_v48 = vld [vmem:[%s3381_s17 + $0x90] sm:$0xff] }
  0x21   : > { %2751 = vmatpush3.bf16.msra.mxu0 %v3108_v26  ;;  %v373_v20 = vld [vmem:[%s3381_s17 + $0x1c8] sm:$0xff]  ;;  %v3140_v26 = vld [vmem:[%s3805_s1 + $0x130] sm:$0xff]  }
  0x22   : > { %2791 = vmatpush3.bf16.msra.mxu1 %v3109_v27  ;;  %2752 = vmatprep.subr.bf16.mxu0 %v3110_v28  ;;  %v2555_v22 = vcombine.high %v365_v18, %v373_v20  ;;  %v2554_v23 = vcombine.low %v365_v18, %v373_v20  ;;  %v3141_v27 = vld [vmem:[%s3805_s1 + $0x1b0] sm:$0xff]   ;;  %v3142_v28 = vld [vmem:[%s3805_s1 + $0x178] sm:$0xff]  }
  0x23   : > { %2792 = vmatprep.subr.bf16.mxu1 %v3111_v29  ;;  %v3143_v29 = vld [vmem:[%s3805_s1 + $0x1f8] sm:$0xff]   ;;  %v342_v49 = vld [vmem:[%s3381_s17 + $0xd0] sm:$0xff] }
  0x24   : > { %v2525_v52 = vcombine.high %v334_v48, %v342_v49  ;;  %v350_v0 = vld [vmem:[%s3381_s17 + $0x110] sm:$0xff]  ;;  %v375_v20 = vld [vmem:[%s3381_s17 + $0x1d8] sm:$0xff] }
  0x25   : > { %2753 = vmatpush3.bf16.msra.mxu0 %v3112_v30  ;;  %v3144_v30 = vld [vmem:[%s3805_s1 + $0x138] sm:$0xff]   ;;  %v358_v1 = vld [vmem:[%s3381_s17 + $0x150] sm:$0xff] }
  0x26   : > { %2793 = vmatpush3.bf16.msra.mxu1 %v3113_v31  ;;  %2818 = vmatprep.subr.bf16.mxu0 %v3114_v40  ;;  %v3145_v31 = vld [vmem:[%s3805_s1 + $0x1b8] sm:$0xff]   ;;  %v3146_v40 = vld [vmem:[%s3805_s1 + $0x240] sm:$0xff]   ;;  %v2541_v3 = vcombine.high %v350_v0, %v358_v1  ;;  %v366_v16 = vld [vmem:[%s3381_s17 + $0x190] sm:$0xff] }
  0x27   : > { %2858 = vmatprep.subr.bf16.mxu1 %v3115_v41  ;;  %v3147_v41 = vld [vmem:[%s3805_s1 + $0x2c0] sm:$0xff]   ;;  %v374_v17 = vld [vmem:[%s3381_s17 + $0x1d0] sm:$0xff] }
  0x28   : > { %1757 = vmatmul.mubr.bf16.vlgmr.msra.gmra.mrb[0].mxu0 %v2504_v35  ;;  %v2509_v35 = vcombine.high %v318_v32, %v326_v33  ;;  %v2557_v18 = vcombine.high %v366_v16, %v374_v17  ;;  %v320_v32 = vld [vmem:[%s3381_s17 + $0x20] sm:$0xff] }
  0x29   : > { %1822 = vmatmul.mubr.bf16.vlgmr.msra.gmra.mrb[0].mxu1 %v2506_v38  ;;  %2819 = vmatpush3.bf16.msra.mxu0 %v3116_v42  ;;  %v2510_v38 = vcombine.low %v319_v36, %v327_v37  ;;  %v3148_v42 = vld [vmem:[%s3805_s1 + $0x200] sm:$0xff]  }
  0x2a   : > { %2859 = vmatpush3.bf16.msra.mxu1 %v3117_v43  ;;  %2820 = vmatprep.subr.bf16.mxu0 %v3118_v44  ;;  %v3149_v43 = vld [vmem:[%s3805_s1 + $0x280] sm:$0xff]   ;;  %v3150_v44 = vld [vmem:[%s3805_s1 + $0x248] sm:$0xff]  }
  0x2b   : > { %2860 = vmatprep.subr.bf16.mxu1 %v3119_v45  ;;  %1764 = vmatprep.mubr.bf16.mxu0 %v2521_v50  ;;  %v3151_v45 = vld [vmem:[%s3805_s1 + $0x2c8] sm:$0xff]   ;;  %v335_v50 = vld [vmem:[%s3381_s17 + $0x98] sm:$0xff]  ;;  %v328_v33 = vld [vmem:[%s3381_s17 + $0x60] sm:$0xff] }
  0x2c   : > { %1829 = vmatprep.mubr.bf16.mxu1 %v2523_v54  ;;  %v2524_v54 = vcombine.low %v334_v48, %v342_v49  ;;  %v2512_v36 = vcombine.low %v320_v32, %v328_v33  ;;  %v2513_v37 = vcombine.high %v320_v32, %v328_v33  ;;  %v336_v48 = vld [vmem:[%s3381_s17 + $0xa0] sm:$0xff]  ;;  %v322_v32 = vld [vmem:[%s3381_s17 + $0x30] sm:$0xff] }
  0x2d   : > { %2821 = vmatpush3.bf16.msra.mxu0 %v3120_v46  ;;  %v3152_v46 = vld [vmem:[%s3805_s1 + $0x208] sm:$0xff]   ;;  %v344_v49 = vld [vmem:[%s3381_s17 + $0xe0] sm:$0xff]  ;;  %v330_v33 = vld [vmem:[%s3381_s17 + $0x70] sm:$0xff] }
  0x2e   : > { %2861 = vmatpush3.bf16.msra.mxu1 %v3121_v47  ;;  %2822 = vmatprep.subr.bf16.mxu0 %v3122_v56  ;;  %v3153_v47 = vld [vmem:[%s3805_s1 + $0x288] sm:$0xff]   ;;  %v3154_v56 = vld [vmem:[%s3805_s1 + $0x250] sm:$0xff]  }
  0x2f   : > { %2862 = vmatprep.subr.bf16.mxu1 %v3123_v57  ;;  %v3155_v57 = vld [vmem:[%s3805_s1 + $0x2d0] sm:$0xff]  }
  0x30   : > { %1765 = vmatmul.mubr.bf16.gmra.mrb[4].mxu0 %v2520_v53  ;;  %v2527_v53 = vcombine.high %v335_v50, %v343_v51 }
  0x31   : > { %1830 = vmatmul.mubr.bf16.gmra.mrb[4].mxu1 %v2522_v55  ;;  %2823 = vmatpush3.bf16.msra.mxu0 %v3124_v58  ;;  %v2526_v55 = vcombine.low %v335_v50, %v343_v51  ;;  %v3156_v58 = vld [vmem:[%s3805_s1 + $0x210] sm:$0xff]   ;;  %v337_v50 = vld [vmem:[%s3381_s17 + $0xa8] sm:$0xff]  ;;  %v2529_v51 = vcombine.high %v336_v48, %v344_v49 }
  0x32   : > { %2863 = vmatpush3.bf16.msra.mxu1 %v3125_v59  ;;  %2824 = vmatprep.subr.bf16.mxu0 %v3126_v60  ;;  %v3157_v59 = vld [vmem:[%s3805_s1 + $0x290] sm:$0xff]   ;;  %v3158_v60 = vld [vmem:[%s3805_s1 + $0x258] sm:$0xff]  }
  0x33   : > { %2864 = vmatprep.subr.bf16.mxu1 %v3127_v61  ;;  %1772 = vmatprep.mubr.bf16.mxu0 %v2537_v4  ;;  %v3159_v61 = vld [vmem:[%s3805_s1 + $0x2d8] sm:$0xff]  }
  0x34   : > { %1837 = vmatprep.mubr.bf16.mxu1 %v2539_v5  ;;  %v359_v4 = vld [vmem:[%s3381_s17 + $0x158] sm:$0xff]  ;;  %v2540_v5 = vcombine.low %v350_v0, %v358_v1  ;;  %v352_v0 = vld [vmem:[%s3381_s17 + $0x120] sm:$0xff] }
  0x35   : > { %2825 = vmatpush3.bf16.msra.mxu0 %v3128_v62  ;;  %v3160_v62 = vld [vmem:[%s3805_s1 + $0x218] sm:$0xff]   ;;  %v360_v1 = vld [vmem:[%s3381_s17 + $0x160] sm:$0xff] }
  0x36   : > { %2865 = vmatpush3.bf16.msra.mxu1 %v3129_v63  ;;  %2826 = vmatprep.subr.bf16.mxu0 %v3130_v8  ;;  %v3161_v63 = vld [vmem:[%s3805_s1 + $0x298] sm:$0xff]   ;;  %v3162_v8 = vld [vmem:[%s3805_s1 + $0x260] sm:$0xff]  }
  0x37   : > { %2866 = vmatprep.subr.bf16.mxu1 %v3131_v9  ;;  %v3163_v9 = vld [vmem:[%s3805_s1 + $0x2e0] sm:$0xff]  }
  0x38   : > { %1773 = vmatmul.mubr.bf16.gmra.mrb[8].mxu0 %v2536_v6  ;;  %v2543_v6 = vcombine.high %v351_v2, %v359_v4 }
  0x39   : > { %1838 = vmatmul.mubr.bf16.gmra.mrb[8].mxu1 %v2538_v7  ;;  %2827 = vmatpush3.bf16.msra.mxu0 %v3132_v10  ;;  %v2542_v7 = vcombine.low %v351_v2, %v359_v4  ;;  %v3164_v10 = vld [vmem:[%s3805_s1 + $0x220] sm:$0xff]   ;;  %v2545_v2 = vcombine.high %v352_v0, %v360_v1  ;;  %v361_v4 = vld [vmem:[%s3381_s17 + $0x168] sm:$0xff] }
  0x3a   : > { %2867 = vmatpush3.bf16.msra.mxu1 %v3133_v11  ;;  %2828 = vmatprep.subr.bf16.mxu0 %v3134_v12  ;;  %v3165_v11 = vld [vmem:[%s3805_s1 + $0x2a0] sm:$0xff]   ;;  %v3166_v12 = vld [vmem:[%s3805_s1 + $0x268] sm:$0xff]  }
  0x3b   : > { %2868 = vmatprep.subr.bf16.mxu1 %v3135_v13  ;;  %1780 = vmatprep.mubr.bf16.mxu0 %v2553_v19  ;;  %v3167_v13 = vld [vmem:[%s3805_s1 + $0x2e8] sm:$0xff]   ;;  %v367_v19 = vld [vmem:[%s3381_s17 + $0x198] sm:$0xff] }
  0x3c   : > { %1845 = vmatprep.mubr.bf16.mxu1 %v2555_v22  ;;  %v2559_v22 = vcombine.high %v367_v19, %v375_v20 }
  0x3d   : > { %2829 = vmatpush3.bf16.msra.mxu0 %v3136_v14  ;;  %v3168_v14 = vld [vmem:[%s3805_s1 + $0x228] sm:$0xff]  }
  0x3e   : > { %2869 = vmatpush3.bf16.msra.mxu1 %v3137_v15  ;;  %2830 = vmatprep.subr.bf16.mxu0 %v3138_v24  ;;  %v3169_v15 = vld [vmem:[%s3805_s1 + $0x2a8] sm:$0xff]   ;;  %v3170_v24 = vld [vmem:[%s3805_s1 + $0x270] sm:$0xff]  }
  0x3f   : > { %2870 = vmatprep.subr.bf16.mxu1 %v3139_v25  ;;  %v3171_v25 = vld [vmem:[%s3805_s1 + $0x2f0] sm:$0xff]  }
  0x40   : > { %1781 = vmatmul.mubr.bf16.gmra.mrb[12].mxu0 %v2552_v21  ;;  %v2556_v21 = vcombine.low %v366_v16, %v374_v17  ;;  %v368_v16 = vld [vmem:[%s3381_s17 + $0x1a0] sm:$0xff] }
  0x41   : > { %1846 = vmatmul.mubr.bf16.gmra.mrb[12].mxu1 %v2554_v23  ;;  %2831 = vmatpush3.bf16.msra.mxu0 %v3140_v26  ;;  %v2558_v23 = vcombine.low %v367_v19, %v375_v20  ;;  %v3172_v26 = vld [vmem:[%s3805_s1 + $0x230] sm:$0xff]   ;;  %v376_v17 = vld [vmem:[%s3381_s17 + $0x1e0] sm:$0xff]  ;;  %v377_v19 = vld [vmem:[%s3381_s17 + $0x1e8] sm:$0xff] }
  0x42   : > { %2871 = vmatpush3.bf16.msra.mxu1 %v3141_v27  ;;  %2832 = vmatprep.subr.bf16.mxu0 %v3142_v28  ;;  %v3173_v27 = vld [vmem:[%s3805_s1 + $0x2b0] sm:$0xff]   ;;  %v3174_v28 = vld [vmem:[%s3805_s1 + $0x278] sm:$0xff]   ;;  %v2561_v20 = vcombine.high %v368_v16, %v376_v17 }
  0x43   : > { %2872 = vmatprep.subr.bf16.mxu1 %v3143_v29  ;;  %1886 = vmatprep.mubr.bf16.mxu0 %v2509_v35  ;;  %v3175_v29 = vld [vmem:[%s3805_s1 + $0x2f8] sm:$0xff]   ;;  %v329_v35 = vld [vmem:[%s3381_s17 + $0x68] sm:$0xff] }
  0x44   : > { %1951 = vmatprep.mubr.bf16.mxu1 %v2511_v39 }
  0x45   : > { %2833 = vmatpush3.bf16.msra.mxu0 %v3144_v30  ;;  %v3176_v30 = vld [vmem:[%s3805_s1 + $0x238] sm:$0xff]  }
  0x46   : > { %2873 = vmatpush3.bf16.msra.mxu1 %v3145_v31  ;;  %2898 = vmatprep.subr.bf16.mxu0 %v3146_v40  ;;  %v3177_v31 = vld [vmem:[%s3805_s1 + $0x2b8] sm:$0xff]   ;;  %v3178_v40 = vld [vmem:[%s3805_s1 + $0x340] sm:$0xff]  }
  0x47   : > { %2938 = vmatprep.subr.bf16.mxu1 %v3147_v41  ;;  %v3179_v41 = vld [vmem:[%s3805_s1 + $0x3c0] sm:$0xff]  }
  0x48   : > { %1887 = vmatmul.mubr.bf16.vlgmr.msra.gmra.mrb[16].mxu0 %v2508_v34  ;;  %v321_v34 = vld [vmem:[%s3381_s17 + $0x28] sm:$0xff] }
  0x49   : > { %1952 = vmatmul.mubr.bf16.vlgmr.msra.gmra.mrb[16].mxu1 %v2510_v38  ;;  %2899 = vmatpush3.bf16.msra.mxu0 %v3148_v42  ;;  %v2514_v38 = vcombine.low %v321_v34, %v329_v35  ;;  %v2515_v39 = vcombine.high %v321_v34, %v329_v35  ;;  %v3180_v42 = vld [vmem:[%s3805_s1 + $0x300] sm:$0xff]   ;;  %v323_v34 = vld [vmem:[%s3381_s17 + $0x38] sm:$0xff]  ;;  %v2516_v35 = vcombine.low %v322_v32, %v330_v33 }
  0x4a   : > { %2939 = vmatpush3.bf16.msra.mxu1 %v3149_v43  ;;  %2900 = vmatprep.subr.bf16.mxu0 %v3150_v44  ;;  %v3181_v43 = vld [vmem:[%s3805_s1 + $0x380] sm:$0xff]   ;;  %v3182_v44 = vld [vmem:[%s3805_s1 + $0x348] sm:$0xff]  }
  0x4b   : > { %2940 = vmatprep.subr.bf16.mxu1 %v3151_v45  ;;  %1894 = vmatprep.mubr.bf16.mxu0 %v2525_v52  ;;  %v3183_v45 = vld [vmem:[%s3805_s1 + $0x3c8] sm:$0xff]  }
  0x4c   : > { %1959 = vmatprep.mubr.bf16.mxu1 %v2527_v53  ;;  %v345_v52 = vld [vmem:[%s3381_s17 + $0xe8] sm:$0xff]  ;;  %v2528_v53 = vcombine.low %v336_v48, %v344_v49  ;;  %v355_v48 = vld [vmem:[%s3381_s17 + $0x138] sm:$0xff] }
  0x4d   : > { %2901 = vmatpush3.bf16.msra.mxu0 %v3152_v46  ;;  %v3184_v46 = vld [vmem:[%s3805_s1 + $0x308] sm:$0xff]   ;;  %v363_v49 = vld [vmem:[%s3381_s17 + $0x178] sm:$0xff] }
  0x4e   : > { %2941 = vmatpush3.bf16.msra.mxu1 %v3153_v47  ;;  %2902 = vmatprep.subr.bf16.mxu0 %v3154_v56  ;;  %v3185_v47 = vld [vmem:[%s3805_s1 + $0x388] sm:$0xff]   ;;  %v3186_v56 = vld [vmem:[%s3805_s1 + $0x350] sm:$0xff]  }
  0x4f   : > { %2942 = vmatprep.subr.bf16.mxu1 %v3155_v57  ;;  %v3187_v57 = vld [vmem:[%s3805_s1 + $0x3d0] sm:$0xff]  }
  0x50   : > { %1895 = vmatmul.mubr.bf16.gmra.mrb[20].mxu0 %v2524_v54  ;;  %v2531_v54 = vcombine.high %v337_v50, %v345_v52 }
  0x51   : > { %1960 = vmatmul.mubr.bf16.gmra.mrb[20].mxu1 %v2526_v55  ;;  %2903 = vmatpush3.bf16.msra.mxu0 %v3156_v58  ;;  %v2530_v55 = vcombine.low %v337_v50, %v345_v52  ;;  %v3188_v58 = vld [vmem:[%s3805_s1 + $0x310] sm:$0xff]  }
  0x52   : > { %2943 = vmatpush3.bf16.msra.mxu1 %v3157_v59  ;;  %2904 = vmatprep.subr.bf16.mxu0 %v3158_v60  ;;  %v3189_v59 = vld [vmem:[%s3805_s1 + $0x390] sm:$0xff]   ;;  %v3190_v60 = vld [vmem:[%s3805_s1 + $0x358] sm:$0xff]  }
  0x53   : > { %2944 = vmatprep.subr.bf16.mxu1 %v3159_v61  ;;  %1902 = vmatprep.mubr.bf16.mxu0 %v2541_v3  ;;  %v3191_v61 = vld [vmem:[%s3805_s1 + $0x3d8] sm:$0xff]   ;;  %v353_v3 = vld [vmem:[%s3381_s17 + $0x128] sm:$0xff] }
  0x54   : > { %1967 = vmatprep.mubr.bf16.mxu1 %v2543_v6  ;;  %v2547_v6 = vcombine.high %v353_v3, %v361_v4 }
  0x55   : > { %2905 = vmatpush3.bf16.msra.mxu0 %v3160_v62  ;;  %v3192_v62 = vld [vmem:[%s3805_s1 + $0x318] sm:$0xff]  }
  0x56   : > { %2945 = vmatpush3.bf16.msra.mxu1 %v3161_v63  ;;  %2906 = vmatprep.subr.bf16.mxu0 %v3162_v8  ;;  %v3193_v63 = vld [vmem:[%s3805_s1 + $0x398] sm:$0xff]   ;;  %v3194_v8 = vld [vmem:[%s3805_s1 + $0x360] sm:$0xff]  }
  0x57   : > { %2946 = vmatprep.subr.bf16.mxu1 %v3163_v9  ;;  %v3195_v9 = vld [vmem:[%s3805_s1 + $0x3e0] sm:$0xff]  }
  0x58   : > { %1903 = vmatmul.mubr.bf16.gmra.mrb[24].mxu0 %v2540_v5  ;;  %v2544_v5 = vcombine.low %v352_v0, %v360_v1 }
  0x59   : > { %1968 = vmatmul.mubr.bf16.gmra.mrb[24].mxu1 %v2542_v7  ;;  %2907 = vmatpush3.bf16.msra.mxu0 %v3164_v10  ;;  %v2546_v7 = vcombine.low %v353_v3, %v361_v4  ;;  %v3196_v10 = vld [vmem:[%s3805_s1 + $0x320] sm:$0xff]  }
  0x5a   : > { %2947 = vmatpush3.bf16.msra.mxu1 %v3165_v11  ;;  %2908 = vmatprep.subr.bf16.mxu0 %v3166_v12  ;;  %v3197_v11 = vld [vmem:[%s3805_s1 + $0x3a0] sm:$0xff]   ;;  %v3198_v12 = vld [vmem:[%s3805_s1 + $0x368] sm:$0xff]  }
  0x5b   : > { %2948 = vmatprep.subr.bf16.mxu1 %v3167_v13  ;;  %1910 = vmatprep.mubr.bf16.mxu0 %v2557_v18  ;;  %v3199_v13 = vld [vmem:[%s3805_s1 + $0x3e8] sm:$0xff]  }
  0x5c   : > { %1975 = vmatprep.mubr.bf16.mxu1 %v2559_v22  ;;  %v369_v18 = vld [vmem:[%s3381_s17 + $0x1a8] sm:$0xff]  ;;  %v2560_v22 = vcombine.low %v368_v16, %v376_v17 }
  0x5d   : > { %2909 = vmatpush3.bf16.msra.mxu0 %v3168_v14  ;;  %v3200_v14 = vld [vmem:[%s3805_s1 + $0x328] sm:$0xff]  }
  0x5e   : > { %2949 = vmatpush3.bf16.msra.mxu1 %v3169_v15  ;;  %2910 = vmatprep.subr.bf16.mxu0 %v3170_v24  ;;  %v3201_v15 = vld [vmem:[%s3805_s1 + $0x3a8] sm:$0xff]   ;;  %v3202_v24 = vld [vmem:[%s3805_s1 + $0x370] sm:$0xff]  }
  0x5f   : > { %2950 = vmatprep.subr.bf16.mxu1 %v3171_v25  ;;  %v3203_v25 = vld [vmem:[%s3805_s1 + $0x3f0] sm:$0xff]  }
  0x60   : > { %1911 = vmatmul.mubr.bf16.gmra.mrb[28].mxu0 %v2556_v21  ;;  %v2563_v21 = vcombine.high %v369_v18, %v377_v19 }
  0x61   : > { %1976 = vmatmul.mubr.bf16.gmra.mrb[28].mxu1 %v2558_v23  ;;  %2911 = vmatpush3.bf16.msra.mxu0 %v3172_v26  ;;  %v2562_v23 = vcombine.low %v369_v18, %v377_v19  ;;  %v3204_v26 = vld [vmem:[%s3805_s1 + $0x330] sm:$0xff]  }
  0x62   : > { %2951 = vmatpush3.bf16.msra.mxu1 %v3173_v27  ;;  %2912 = vmatprep.subr.bf16.mxu0 %v3174_v28  ;;  %v3205_v27 = vld [vmem:[%s3805_s1 + $0x3b0] sm:$0xff]   ;;  %v3206_v28 = vld [vmem:[%s3805_s1 + $0x378] sm:$0xff]  }
  0x63   : > { %2952 = vmatprep.subr.bf16.mxu1 %v3175_v29  ;;  %2016 = vmatprep.mubr.bf16.mxu0 %v2513_v37  ;;  %v3207_v29 = vld [vmem:[%s3805_s1 + $0x3f8] sm:$0xff]  }
  0x64   : > { %2081 = vmatprep.mubr.bf16.mxu1 %v2515_v39  ;;  %v331_v37 = vld [vmem:[%s3381_s17 + $0x78] sm:$0xff]  ;;  %v346_v39 = vld [vmem:[%s3381_s17 + $0xf0] sm:$0xff] }
  0x65   : > { %2913 = vmatpush3.bf16.msra.mxu0 %v3176_v30  ;;  %v3208_v30 = vld [vmem:[%s3805_s1 + $0x338] sm:$0xff]  }
  0x66   : > { %2953 = vmatpush3.bf16.msra.mxu1 %v3177_v31  ;;  %2978 = vmatprep.subr.bf16.mxu0 %v3178_v40  ;;  %v3209_v31 = vld [vmem:[%s3805_s1 + $0x3b8] sm:$0xff]   ;;  %v2518_v40 = vcombine.low %v323_v34, %v331_v37 }
  0x67   : > { %3018 = vmatprep.subr.bf16.mxu1 %v3179_v41  ;;  %v2519_v41 = vcombine.high %v323_v34, %v331_v37 }
  0x68   : > { %2017 = vmatmul.mubr.bf16.vlgmr.msra.gmra.mrb[32].mxu0 %v2512_v36  ;;  %v2517_v36 = vcombine.high %v322_v32, %v330_v33 }
  0x69   : > { %2082 = vmatmul.mubr.bf16.vlgmr.msra.gmra.mrb[32].mxu1 %v2514_v38  ;;  %2979 = vmatpush3.bf16.msra.mxu0 %v3180_v42  ;;  %v338_v38 = vld [vmem:[%s3381_s17 + $0xb0] sm:$0xff] }
  0x6a   : > { %3019 = vmatpush3.bf16.msra.mxu1 %v3181_v43  ;;  %2980 = vmatprep.subr.bf16.mxu0 %v3182_v44  ;;  %v2533_v42 = vcombine.high %v338_v38, %v346_v39  ;;  %v339_v43 = vld [vmem:[%s3381_s17 + $0xb8] sm:$0xff]  ;;  %v2532_v50 = vcombine.low %v338_v38, %v346_v39 }
  0x6b   : > { %3020 = vmatprep.subr.bf16.mxu1 %v3183_v45  ;;  %2024 = vmatprep.mubr.bf16.mxu0 %v2529_v51  ;;  %v347_v44 = vld [vmem:[%s3381_s17 + $0xf8] sm:$0xff] }
  0x6c   : > { %2089 = vmatprep.mubr.bf16.mxu1 %v2531_v54  ;;  %v2535_v45 = vcombine.high %v339_v43, %v347_v44  ;;  %v2534_v51 = vcombine.low %v339_v43, %v347_v44  ;;  %v370_v54 = vld [vmem:[%s3381_s17 + $0x1b0] sm:$0xff] }
  0x6d   : > { %2981 = vmatpush3.bf16.msra.mxu0 %v3184_v46  ;;  %v354_v46 = vld [vmem:[%s3381_s17 + $0x130] sm:$0xff] }
  0x6e   : > { %3021 = vmatpush3.bf16.msra.mxu1 %v3185_v47  ;;  %2982 = vmatprep.subr.bf16.mxu0 %v3186_v56  ;;  %v362_v47 = vld [vmem:[%s3381_s17 + $0x170] sm:$0xff]  ;;  %v371_v56 = vld [vmem:[%s3381_s17 + $0x1b8] sm:$0xff] }
  0x6f   : > { %3022 = vmatprep.subr.bf16.mxu1 %v3187_v57  ;;  %v2549_v52 = vcombine.high %v354_v46, %v362_v47  ;;  %v379_v57 = vld [vmem:[%s3381_s17 + $0x1f8] sm:$0xff] }
  0x70   : > { %2025 = vmatmul.mubr.bf16.gmra.mrb[36].mxu0 %v2528_v53  ;;  %v2551_v53 = vcombine.high %v355_v48, %v363_v49 }
  0x71   : > { %2090 = vmatmul.mubr.bf16.gmra.mrb[36].mxu1 %v2530_v55  ;;  %2983 = vmatpush3.bf16.msra.mxu0 %v3188_v58  ;;  %v378_v55 = vld [vmem:[%s3381_s17 + $0x1f0] sm:$0xff]  ;;  %v2548_v58 = vcombine.low %v354_v46, %v362_v47  ;;  %s2503_s17 = sshll.u32 %s3815_s6, 2 }
  0x72   : > { %3023 = vmatpush3.bf16.msra.mxu1 %v3189_v59  ;;  %2984 = vmatprep.subr.bf16.mxu0 %v3190_v60  ;;  %v2550_v59 = vcombine.low %v355_v48, %v363_v49  ;;  %v2565_v60 = vcombine.high %v370_v54, %v378_v55  ;;  %s3775_s15 = scalar_lea.vmem %s3807_s3, %s2503_s17 }
  0x73   : > { %3024 = vmatprep.subr.bf16.mxu1 %v3191_v61  ;;  %2032 = vmatprep.mubr.bf16.mxu0 %v2545_v2  ;;  %v2567_v61 = vcombine.high %v371_v56, %v379_v57 }
  0x74   : > { %2097 = vmatprep.mubr.bf16.mxu1 %v2547_v6 }
  0x75   : > { %2985 = vmatpush3.bf16.msra.mxu0 %v3192_v62  ;;  %v2564_v62 = vcombine.low %v370_v54, %v378_v55 }
  0x76   : > { %3025 = vmatpush3.bf16.msra.mxu1 %v3193_v63  ;;  %2986 = vmatprep.subr.bf16.mxu0 %v3194_v8  ;;  %v2566_v63 = vcombine.low %v371_v56, %v379_v57 }
  0x77   : > { %3026 = vmatprep.subr.bf16.mxu1 %v3195_v9 }
  0x78   : > { %2033 = vmatmul.mubr.bf16.gmra.mrb[40].mxu0 %v2544_v5 }
  0x79   : > { %2098 = vmatmul.mubr.bf16.gmra.mrb[40].mxu1 %v2546_v7  ;;  %2987 = vmatpush3.bf16.msra.mxu0 %v3196_v10 }
  0x7a   : > { %3027 = vmatpush3.bf16.msra.mxu1 %v3197_v11  ;;  %2988 = vmatprep.subr.bf16.mxu0 %v3198_v12 }
  0x7b   : > { %3028 = vmatprep.subr.bf16.mxu1 %v3199_v13  ;;  %2040 = vmatprep.mubr.bf16.mxu0 %v2561_v20 }
  0x7c   : > { %2105 = vmatprep.mubr.bf16.mxu1 %v2563_v21 }
  0x7d   : > { %2989 = vmatpush3.bf16.msra.mxu0 %v3200_v14 }
  0x7e   : > { %3029 = vmatpush3.bf16.msra.mxu1 %v3201_v15  ;;  %2990 = vmatprep.subr.bf16.mxu0 %v3202_v24 }
  0x7f   : > { %3030 = vmatprep.subr.bf16.mxu1 %v3203_v25 }
  0x80   : > { %2041 = vmatmul.mubr.bf16.gmra.mrb[44].mxu0 %v2560_v22 }
  0x81   : > { %2106 = vmatmul.mubr.bf16.gmra.mrb[44].mxu1 %v2562_v23  ;;  %2991 = vmatpush3.bf16.msra.mxu0 %v3204_v26 }
  0x82   : > { %3031 = vmatpush3.bf16.msra.mxu1 %v3205_v27  ;;  %2992 = vmatprep.subr.bf16.mxu0 %v3206_v28 }
  0x83   : > { %3032 = vmatprep.subr.bf16.mxu1 %v3207_v29  ;;  %2146 = vmatprep.mubr.bf16.mxu0 %v2517_v36 }
  0x84   : > { %2211 = vmatprep.mubr.bf16.mxu1 %v2519_v41 }
  0x85   : > { %2993 = vmatpush3.bf16.msra.mxu0 %v3208_v30 }
  0x86   : > { %3033 = vmatpush3.bf16.msra.mxu1 %v3209_v31 }
  0x88   : > { %2147 = vmatmul.mubr.bf16.vlgmr.msra.gmra.mrb[48].mxu0 %v2516_v35 }
  0x89   : > { %2212 = vmatmul.mubr.bf16.vlgmr.msra.gmra.mrb[48].mxu1 %v2518_v40  ;;  %2154 = vmatprep.mubr.bf16.mxu0 %v2533_v42 }
  0x8a   : > { %2219 = vmatprep.mubr.bf16.mxu1 %v2535_v45 }
  0x90   : > { %2155 = vmatmul.mubr.bf16.gmra.mrb[52].mxu0 %v2532_v50 }
  0x91   : > { %2220 = vmatmul.mubr.bf16.gmra.mrb[52].mxu1 %v2534_v51  ;;  %2162 = vmatprep.mubr.bf16.mxu0 %v2549_v52 }
  0x92   : > { %2227 = vmatprep.mubr.bf16.mxu1 %v2551_v53 }
  0x98   : > { %2163 = vmatmul.mubr.bf16.gmra.mrb[56].mxu0 %v2548_v58 }
  0x99   : > { %2228 = vmatmul.mubr.bf16.gmra.mrb[56].mxu1 %v2550_v59  ;;  %2170 = vmatprep.mubr.bf16.mxu0 %v2565_v60 }
  0x9a   : > { %2235 = vmatprep.mubr.bf16.mxu1 %v2567_v61 }
  0xa0   : > { %2171 = vmatmul.mubr.bf16.gmra.mrb[60].mxu0 %v2564_v62 }
  0xa1   : > { %2236 = vmatmul.mubr.bf16.gmra.mrb[60].mxu1 %v2566_v63 }
  0xfb   : > { %v2754_v0 = vpop.f32.mrb[0].mxu0 }
  0xfc   : > { %v2794_v1 = vpop.f32.mrb[0].mxu1  ;;  %v2755_v2 = vpop.f32.mrb[1].mxu0 }
  0xfd   : > { %v2756_v3 = vadd.f32 %v2755_v2, %v2754_v0  ;;  %v2795_v4 = vpop.f32.mrb[1].mxu1  ;;  %v2757_v5 = vpop.f32.mrb[2].mxu0 }
  0xfe   : > { %v2796_v6 = vadd.f32 %v2795_v4, %v2794_v1  ;;  %v2797_v7 = vpop.f32.mrb[2].mxu1  ;;  %v2758_v8 = vpop.f32.mrb[3].mxu0 }
  0xff   : > { %v2759_v9 = vadd.f32 %v2758_v8, %v2757_v5  ;;  %v2798_v10 = vpop.f32.mrb[3].mxu1 }
 0x100   : > { %v1824_v11 = vadd.f32 %v2796_v6, %v2756_v3  ;;  %v2799_v12 = vadd.f32 %v2798_v10, %v2797_v7 }
 0x102   : > { %v1827_v13 = vadd.f32 %v2799_v12, %v2759_v9 }
 0x103   : > { %v2760_v14 = vpop.f32.mrb[4].mxu0 }
 0x104   : > { %v2800_v15 = vpop.f32.mrb[4].mxu1  ;;  %v2761_v16 = vpop.f32.mrb[5].mxu0 }
 0x105   : > { %v2762_v17 = vadd.f32 %v2761_v16, %v2760_v14  ;;  %v2801_v18 = vpop.f32.mrb[5].mxu1  ;;  %v2763_v19 = vpop.f32.mrb[6].mxu0 }
 0x106   : > { %v2802_v20 = vadd.f32 %v2801_v18, %v2800_v15  ;;  %v2803_v21 = vpop.f32.mrb[6].mxu1  ;;  %v2764_v22 = vpop.f32.mrb[7].mxu0 }
 0x107   : > { %v2765_v23 = vadd.f32 %v2764_v22, %v2763_v19  ;;  %v2804_v24 = vpop.f32.mrb[7].mxu1 }
 0x108   : > { %v1832_v25 = vadd.f32 %v2802_v20, %v2762_v17  ;;  %v2805_v26 = vadd.f32 %v2804_v24, %v2803_v21 }
 0x10a   : > { %v1835_v27 = vadd.f32 %v2805_v26, %v2765_v23 }
 0x10b   : > { %v2766_v28 = vpop.f32.mrb[8].mxu0 }
 0x10c   : > { %v2806_v29 = vpop.f32.mrb[8].mxu1  ;;  %v2767_v30 = vpop.f32.mrb[9].mxu0 }
 0x10d   : > { %v2807_v31 = vpop.f32.mrb[9].mxu1  ;;  %v2768_v32 = vadd.f32 %v2767_v30, %v2766_v28  ;;  %v2769_v34 = vpop.f32.mrb[10].mxu0 }
 0x10e   : > { %v2808_v33 = vadd.f32 %v2807_v31, %v2806_v29  ;;  %v2809_v35 = vpop.f32.mrb[10].mxu1  ;;  %v2770_v36 = vpop.f32.mrb[11].mxu0 }
 0x10f   : > { %v2810_v37 = vpop.f32.mrb[11].mxu1  ;;  %v2771_v39 = vadd.f32 %v2770_v36, %v2769_v34 }
 0x110   : > { %v1840_v38 = vadd.f32 %v2808_v33, %v2768_v32  ;;  %v2811_v40 = vadd.f32 %v2810_v37, %v2809_v35 }
 0x112   : > { %v1843_v41 = vadd.f32 %v2811_v40, %v2771_v39 }
 0x113   : > { %v2772_v42 = vpop.f32.mrb[12].mxu0 }
 0x114   : > { %v2812_v43 = vpop.f32.mrb[12].mxu1  ;;  %v2773_v44 = vpop.f32.mrb[13].mxu0 }
 0x115   : > { %v2774_v45 = vadd.f32 %v2773_v44, %v2772_v42  ;;  %v2813_v46 = vpop.f32.mrb[13].mxu1  ;;  %v2775_v47 = vpop.f32.mrb[14].mxu0 }
 0x116   : > { %v2814_v48 = vadd.f32 %v2813_v46, %v2812_v43  ;;  %v2815_v49 = vpop.f32.mrb[14].mxu1  ;;  %v2776_v50 = vpop.f32.mrb[15].mxu0 }
 0x117   : > { %v2777_v51 = vadd.f32 %v2776_v50, %v2775_v47  ;;  %v2816_v52 = vpop.f32.mrb[15].mxu1 }
 0x118   : > { %v1848_v53 = vadd.f32 %v2814_v48, %v2774_v45  ;;  %v2817_v54 = vadd.f32 %v2816_v52, %v2815_v49 }
 0x11a   : > { %v3741_v55 = vadd.f32 %v2817_v54, %v2777_v51 }
 0x11b   : > { %v2834_v56 = vpop.f32.mrb[16].mxu0 }
 0x11c   : > { %v2874_v57 = vpop.f32.mrb[16].mxu1  ;;  %v2835_v58 = vpop.f32.mrb[17].mxu0 }
 0x11d   : > { %v2836_v59 = vadd.f32 %v2835_v58, %v2834_v56  ;;  %v2875_v60 = vpop.f32.mrb[17].mxu1  ;;  %v2837_v61 = vpop.f32.mrb[18].mxu0 }
 0x11e   : > { %v2876_v62 = vadd.f32 %v2875_v60, %v2874_v57  ;;  %v2877_v63 = vpop.f32.mrb[18].mxu1  ;;  %v2838_v0 = vpop.f32.mrb[19].mxu0 }
 0x11f   : > { %v1889_v1 = vadd.f32 %v2836_v59, %v1824_v11  ;;  %v2839_v2 = vadd.f32 %v2838_v0, %v2837_v61  ;;  %v2878_v3 = vpop.f32.mrb[19].mxu1 }
 0x120   : > { %v2879_v4 = vadd.f32 %v2878_v3, %v2877_v63 }
 0x121   : > { %v1954_v5 = vadd.f32 %v2876_v62, %v1889_v1  ;;  %v1892_v6 = vadd.f32 %v2839_v2, %v1827_v13 }
 0x123   : > { %v3743_v7 = vadd.f32 %v2879_v4, %v1892_v6  ;;  %v2840_v8 = vpop.f32.mrb[20].mxu0 }
 0x124   : > { %v2880_v9 = vpop.f32.mrb[20].mxu1  ;;  %v2841_v10 = vpop.f32.mrb[21].mxu0 }
 0x125   : > { %v2881_v12 = vpop.f32.mrb[21].mxu1  ;;  %v2842_v14 = vadd.f32 %v2841_v10, %v2840_v8  ;;  %v2843_v16 = vpop.f32.mrb[22].mxu0 }
 0x126   : > { %v2882_v15 = vadd.f32 %v2881_v12, %v2880_v9  ;;  %v2883_v17 = vpop.f32.mrb[22].mxu1  ;;  %v2844_v18 = vpop.f32.mrb[23].mxu0 }
 0x127   : > { %v2884_v19 = vpop.f32.mrb[23].mxu1  ;;  %v1897_v20 = vadd.f32 %v2842_v14, %v1832_v25  ;;  %v2845_v21 = vadd.f32 %v2844_v18, %v2843_v16 }
 0x128   : > { %v2885_v11 = vadd.f32 %v2884_v19, %v2883_v17 }
 0x129   : > { %v1962_v22 = vadd.f32 %v2882_v15, %v1897_v20  ;;  %v1900_v23 = vadd.f32 %v2845_v21, %v1835_v27 }
 0x12b   : > { %v3745_v24 = vadd.f32 %v2885_v11, %v1900_v23  ;;  %v2846_v13 = vpop.f32.mrb[24].mxu0 }
 0x12c   : > { %v2886_v26 = vpop.f32.mrb[24].mxu1  ;;  %v2847_v28 = vpop.f32.mrb[25].mxu0 }
 0x12d   : > { %v2848_v29 = vadd.f32 %v2847_v28, %v2846_v13  ;;  %v2887_v30 = vpop.f32.mrb[25].mxu1  ;;  %v2849_v31 = vpop.f32.mrb[26].mxu0 }
 0x12e   : > { %v2888_v32 = vadd.f32 %v2887_v30, %v2886_v26  ;;  %v2889_v33 = vpop.f32.mrb[26].mxu1  ;;  %v2850_v34 = vpop.f32.mrb[27].mxu0 }
 0x12f   : > { %v1905_v35 = vadd.f32 %v2848_v29, %v1840_v38  ;;  %v2851_v36 = vadd.f32 %v2850_v34, %v2849_v31  ;;  %v2890_v37 = vpop.f32.mrb[27].mxu1 }
 0x130   : > { %v2891_v39 = vadd.f32 %v2890_v37, %v2889_v33 }
 0x131   : > { %v1970_v25 = vadd.f32 %v2888_v32, %v1905_v35  ;;  %v1908_v40 = vadd.f32 %v2851_v36, %v1843_v41 }
 0x133   : > { %v3747_v42 = vadd.f32 %v2891_v39, %v1908_v40  ;;  %v2852_v27 = vpop.f32.mrb[28].mxu0 }
 0x134   : > { %v2892_v43 = vpop.f32.mrb[28].mxu1  ;;  %v2853_v44 = vpop.f32.mrb[29].mxu0 }
 0x135   : > { %v2854_v45 = vadd.f32 %v2853_v44, %v2852_v27  ;;  %v2893_v46 = vpop.f32.mrb[29].mxu1  ;;  %v2855_v47 = vpop.f32.mrb[30].mxu0 }
 0x136   : > { %v2894_v48 = vadd.f32 %v2893_v46, %v2892_v43  ;;  %v2895_v49 = vpop.f32.mrb[30].mxu1  ;;  %v2856_v50 = vpop.f32.mrb[31].mxu0 }
 0x137   : > { %v1913_v51 = vadd.f32 %v2854_v45, %v1848_v53  ;;  %v2857_v52 = vadd.f32 %v2856_v50, %v2855_v47  ;;  %v2896_v54 = vpop.f32.mrb[31].mxu1 }
 0x138   : > { %v2897_v38 = vadd.f32 %v2896_v54, %v2895_v49 }
 0x139   : > { %v1978_v56 = vadd.f32 %v2894_v48, %v1913_v51  ;;  %v1916_v57 = vadd.f32 %v2857_v52, %v3741_v55 }
 0x13b   : > { %v3750_v58 = vadd.f32 %v2897_v38, %v1916_v57  ;;  %v2914_v41 = vpop.f32.mrb[32].mxu0 }
 0x13c   : > { %v2954_v59 = vpop.f32.mrb[32].mxu1  ;;  %v2915_v60 = vpop.f32.mrb[33].mxu0 }
 0x13d   : > { %v2955_v61 = vpop.f32.mrb[33].mxu1  ;;  %v2916_v62 = vadd.f32 %v2915_v60, %v2914_v41  ;;  %v2917_v0 = vpop.f32.mrb[34].mxu0 }
 0x13e   : > { %v2956_v63 = vadd.f32 %v2955_v61, %v2954_v59  ;;  %v2957_v1 = vpop.f32.mrb[34].mxu1  ;;  %v2918_v2 = vpop.f32.mrb[35].mxu0 }
 0x13f   : > { %v2958_v3 = vpop.f32.mrb[35].mxu1  ;;  %v2019_v4 = vadd.f32 %v2916_v62, %v1954_v5  ;;  %v2919_v53 = vadd.f32 %v2918_v2, %v2917_v0 }
 0x140   : > { %v2959_v6 = vadd.f32 %v2958_v3, %v2957_v1 }
 0x141   : > { %v2084_v8 = vadd.f32 %v2956_v63, %v2019_v4  ;;  %v2022_v9 = vadd.f32 %v2919_v53, %v3743_v7 }
 0x143   : > { %v3753_v10 = vadd.f32 %v2959_v6, %v2022_v9  ;;  %v2920_v55 = vpop.f32.mrb[36].mxu0 }
 0x144   : > { %v2960_v12 = vpop.f32.mrb[36].mxu1  ;;  %v2921_v14 = vpop.f32.mrb[37].mxu0 }
 0x145   : > { %v2922_v15 = vadd.f32 %v2921_v14, %v2920_v55  ;;  %v2961_v16 = vpop.f32.mrb[37].mxu1  ;;  %v2923_v17 = vpop.f32.mrb[38].mxu0 }
 0x146   : > { %v2962_v18 = vadd.f32 %v2961_v16, %v2960_v12  ;;  %v2963_v19 = vpop.f32.mrb[38].mxu1  ;;  %v2924_v20 = vpop.f32.mrb[39].mxu0 }
 0x147   : > { %v2027_v21 = vadd.f32 %v2922_v15, %v1962_v22  ;;  %v2925_v11 = vadd.f32 %v2924_v20, %v2923_v17  ;;  %v2964_v23 = vpop.f32.mrb[39].mxu1 }
 0x148   : > { %v2965_v5 = vadd.f32 %v2964_v23, %v2963_v19 }
 0x149   : > { %v3755_v13 = vadd.f32 %v2962_v18, %v2027_v21  ;;  %v2030_v26 = vadd.f32 %v2925_v11, %v3745_v24 }
 0x14b   : > { %v3758_v7 = vadd.f32 %v2965_v5, %v2030_v26  ;;  %v2926_v28 = vpop.f32.mrb[40].mxu0 }
 0x14c   : > { %v2966_v29 = vpop.f32.mrb[40].mxu1  ;;  %v2927_v30 = vpop.f32.mrb[41].mxu0 }
 0x14d   : > { %v2928_v31 = vadd.f32 %v2927_v30, %v2926_v28  ;;  %v2967_v32 = vpop.f32.mrb[41].mxu1  ;;  %v2929_v33 = vpop.f32.mrb[42].mxu0 }
 0x14e   : > { %v2968_v34 = vadd.f32 %v2967_v32, %v2966_v29  ;;  %v2969_v35 = vpop.f32.mrb[42].mxu1  ;;  %v2930_v36 = vpop.f32.mrb[43].mxu0 }
 0x14f   : > { %v2035_v37 = vadd.f32 %v2928_v31, %v1970_v25  ;;  %v2931_v22 = vadd.f32 %v2930_v36, %v2929_v33  ;;  %v2970_v39 = vpop.f32.mrb[43].mxu1 }
 0x150   : > { %v2971_v40 = vadd.f32 %v2970_v39, %v2969_v35 }
 0x151   : > { %v3760_v27 = vadd.f32 %v2968_v34, %v2035_v37  ;;  %v2038_v43 = vadd.f32 %v2931_v22, %v3747_v42 }
 0x153   : > { %v3763_v24 = vadd.f32 %v2971_v40, %v2038_v43  ;;  %v2932_v44 = vpop.f32.mrb[44].mxu0 }
 0x154   : > { %v2972_v45 = vpop.f32.mrb[44].mxu1  ;;  %v2933_v46 = vpop.f32.mrb[45].mxu0 }
 0x155   : > { %v2973_v47 = vpop.f32.mrb[45].mxu1  ;;  %v2934_v48 = vadd.f32 %v2933_v46, %v2932_v44  ;;  %v2935_v50 = vpop.f32.mrb[46].mxu0 }
 0x156   : > { %v2974_v49 = vadd.f32 %v2973_v47, %v2972_v45  ;;  %v2975_v51 = vpop.f32.mrb[46].mxu1  ;;  %v2936_v52 = vpop.f32.mrb[47].mxu0 }
 0x157   : > { %v2976_v54 = vpop.f32.mrb[47].mxu1  ;;  %v2043_v25 = vadd.f32 %v2934_v48, %v1978_v56  ;;  %v2937_v38 = vadd.f32 %v2936_v52, %v2935_v50 }
 0x158   : > { %v2977_v57 = vadd.f32 %v2976_v54, %v2975_v51 }
 0x159   : > { %v3765_v41 = vadd.f32 %v2974_v49, %v2043_v25  ;;  %v2046_v59 = vadd.f32 %v2937_v38, %v3750_v58 }
 0x15b   : > { %v3768_v42 = vadd.f32 %v2977_v57, %v2046_v59  ;;  %v2994_v60 = vpop.f32.mrb[48].mxu0 }
 0x15c   : > { %v3034_v61 = vpop.f32.mrb[48].mxu1  ;;  %v2995_v62 = vpop.f32.mrb[49].mxu0 }
 0x15d   : > { %v2996_v63 = vadd.f32 %v2995_v62, %v2994_v60  ;;  %v3035_v0 = vpop.f32.mrb[49].mxu1  ;;  %v2997_v1 = vpop.f32.mrb[50].mxu0 }
 0x15e   : > { %v3036_v2 = vadd.f32 %v3035_v0, %v3034_v61  ;;  %v3037_v3 = vpop.f32.mrb[50].mxu1  ;;  %v2998_v4 = vpop.f32.mrb[51].mxu0 }
 0x15f   : > { %v2149_v53 = vadd.f32 %v2996_v63, %v2084_v8  ;;  %v2999_v56 = vadd.f32 %v2998_v4, %v2997_v1  ;;  %v3038_v6 = vpop.f32.mrb[51].mxu1 }
 0x160   : > { %v3039_v9 = vadd.f32 %v3038_v6, %v3037_v3 }
 0x161   : > { %v2214_v55 = vadd.f32 %v3036_v2, %v2149_v53  ;;  %v2152_v12 = vadd.f32 %v2999_v56, %v3753_v10 }
 0x163   : > { %v2217_v58 = vadd.f32 %v3039_v9, %v2152_v12  ;;  %v3000_v14 = vpop.f32.mrb[52].mxu0  ;;  %v2298_v15 = vmul.f32 %v2214_v55, %v2214_v55 }
 0x164   : > { %v3040_v16 = vpop.f32.mrb[52].mxu1  ;;  %v3001_v17 = vpop.f32.mrb[53].mxu0 }
 0x165   : > { %v2718_v18 = vpack.c.bf16 %v2217_v58, %v2214_v55  ;;  %v2284_v8 = vadd.f32 %v2217_v58, %v2214_v55  ;;  %v2299_v19 = vmul.f32 %v2217_v58, %v2217_v58  ;;  %v3002_v20 = vadd.f32 %v3001_v17, %v3000_v14  ;;  %v3041_v21 = vpop.f32.mrb[53].mxu1  ;;  %v3003_v11 = vpop.f32.mrb[54].mxu0 }
 0x166   : > { %v3042_v23 = vadd.f32 %v3041_v21, %v3040_v16  ;;  %v3043_v10 = vpop.f32.mrb[54].mxu1  ;;  %v3004_v5 = vpop.f32.mrb[55].mxu0 }
 0x167   : > { %2719 = vst [vmem:[%s3775_s15] sm:$0xff] %v2718_v18   ;;  %v2306_v26 = vadd.f32 %v2299_v19, %v2298_v15  ;;  %v2157_v28 = vadd.f32 %v3002_v20, %v3755_v13  ;;  %v3005_v29 = vadd.f32 %v3004_v5, %v3003_v11  ;;  %v3044_v30 = vpop.f32.mrb[55].mxu1 }
 0x168   : > { %v3045_v31 = vadd.f32 %v3044_v30, %v3043_v10 }
 0x169   : > { %v2222_v32 = vadd.f32 %v3042_v23, %v2157_v28  ;;  %v2160_v33 = vadd.f32 %v3005_v29, %v3758_v7 }
 0x16b   : > { %v2285_v34 = vadd.f32 %v2284_v8, %v2222_v32  ;;  %v2300_v35 = vmul.f32 %v2222_v32, %v2222_v32  ;;  %v2225_v36 = vadd.f32 %v3045_v31, %v2160_v33  ;;  %v3006_v37 = vpop.f32.mrb[56].mxu0 }
 0x16c   : > { %v3046_v22 = vpop.f32.mrb[56].mxu1  ;;  %v3007_v39 = vpop.f32.mrb[57].mxu0 }
 0x16d   : > { %v2307_v40 = vadd.f32 %v2306_v26, %v2300_v35  ;;  %v2723_v43 = vpack.c.bf16 %v2225_v36, %v2222_v32  ;;  %v2286_v44 = vadd.f32 %v2285_v34, %v2225_v36  ;;  %v2301_v45 = vmul.f32 %v2225_v36, %v2225_v36  ;;  %v3047_v46 = vpop.f32.mrb[57].mxu1  ;;  %v3009_v47 = vpop.f32.mrb[58].mxu0 }
 0x16e   : > { %v3008_v13 = vadd.f32 %v3007_v39, %v3006_v37  ;;  %v3048_v48 = vadd.f32 %v3047_v46, %v3046_v22  ;;  %v3049_v49 = vpop.f32.mrb[58].mxu1  ;;  %v3010_v50 = vpop.f32.mrb[59].mxu0 }
 0x16f   : > { %2735 = vst [vmem:[%s3775_s15 + $0x8] sm:$0xff] %v2723_v43   ;;  %v2308_v51 = vadd.f32 %v2307_v40, %v2301_v45  ;;  %v3011_v7 = vadd.f32 %v3010_v50, %v3009_v47  ;;  %v3050_v52 = vpop.f32.mrb[59].mxu1 }
 0x170   : > { %v2165_v54 = vadd.f32 %v3008_v13, %v3760_v27  ;;  %v3051_v25 = vadd.f32 %v3050_v52, %v3049_v49 }
 0x171   : > { %v2168_v38 = vadd.f32 %v3011_v7, %v3763_v24 }
 0x172   : > { %v2230_v57 = vadd.f32 %v3048_v48, %v2165_v54 }
 0x173   : > { %v2233_v59 = vadd.f32 %v3051_v25, %v2168_v38  ;;  %v3012_v60 = vpop.f32.mrb[60].mxu0 }
 0x174   : > { %v2287_v61 = vadd.f32 %v2286_v44, %v2230_v57  ;;  %v2302_v62 = vmul.f32 %v2230_v57, %v2230_v57  ;;  %v3052_v63 = vpop.f32.mrb[60].mxu1  ;;  %v3013_v0 = vpop.f32.mrb[61].mxu0 }
 0x175   : > { %v2728_v1 = vpack.c.bf16 %v2233_v59, %v2230_v57  ;;  %v2303_v2 = vmul.f32 %v2233_v59, %v2233_v59  ;;  %v3014_v3 = vadd.f32 %v3013_v0, %v3012_v60  ;;  %v3053_v4 = vpop.f32.mrb[61].mxu1  ;;  %v3015_v53 = vpop.f32.mrb[62].mxu0 }
 0x176   : > { %v2309_v56 = vadd.f32 %v2308_v51, %v2302_v62  ;;  %v2288_v6 = vadd.f32 %v2287_v61, %v2233_v59  ;;  %v3054_v9 = vadd.f32 %v3053_v4, %v3052_v63  ;;  %v3055_v27 = vpop.f32.mrb[62].mxu1  ;;  %v3016_v55 = vpop.f32.mrb[63].mxu0 }
 0x177   : > { %2736 = vst [vmem:[%s3775_s15 + $0x10] sm:$0xff] %v2728_v1   ;;  %v2173_v24 = vadd.f32 %v3014_v3, %v3765_v41  ;;  %v3017_v12 = vadd.f32 %v3016_v55, %v3015_v53  ;;  %v3056_v58 = vpop.f32.mrb[63].mxu1 }
 0x178   : > { %v2310_v14 = vadd.f32 %v2309_v56, %v2303_v2  ;;  %v3057_v15 = vadd.f32 %v3056_v58, %v3055_v27 }
 0x179   : > { %v2238_v16 = vadd.f32 %v3054_v9, %v2173_v24  ;;  %v2176_v17 = vadd.f32 %v3017_v12, %v3768_v42 }
 0x17b   : > { %v2289_v18 = vadd.f32 %v2288_v6, %v2238_v16  ;;  %v2304_v8 = vmul.f32 %v2238_v16, %v2238_v16  ;;  %v2241_v19 = vadd.f32 %v3057_v15, %v2176_v17 }
 0x17d   : > { %v2311_v20 = vadd.f32 %v2310_v14, %v2304_v8  ;;  %v2733_v21 = vpack.c.bf16 %v2241_v19, %v2238_v16  ;;  %v2290_v11 = vadd.f32 %v2289_v18, %v2241_v19  ;;  %v2305_v23 = vmul.f32 %v2241_v19, %v2241_v19 }
 0x17f   : > { %2737 = vst [vmem:[%s3775_s15 + $0x18] sm:$0xff] %v2733_v21   ;;  %v2291_v10 = vrot.slane %v2290_v11, 4  ;;  %v2312_v5 = vadd.f32 %v2311_v20, %v2305_v23 }
 0x181   : > { %v2292_v41 = vadd.f32 %v2291_v10, %v2290_v11  ;;  %v2313_v26 = vrot.slane %v2312_v5, 4 }
 0x183   : > { %v2293_v28 = vrot.slane %v2292_v41, 2  ;;  %v2314_v29 = vadd.f32 %v2313_v26, %v2312_v5 }
 0x185   : > { %v2294_v30 = vadd.f32 %v2293_v28, %v2292_v41  ;;  %v2315_v31 = vrot.slane %v2314_v29, 2 }
 0x187   : > { %v2295_v42 = vrot.slane %v2294_v30, 1  ;;  %v2316_v32 = vadd.f32 %v2315_v31, %v2314_v29 }
 0x189   : > { %v2296_v33 = vadd.f32 %v2295_v42, %v2294_v30  ;;  %v2317_v34 = vrot.slane %v2316_v32, 1 }
 0x18b   : > { %2297 = vst [vmem:[%s308_s21] sm:$0x1] %v2296_v33  ;;  %v2318_v35 = vadd.f32 %v2317_v34, %v2316_v32 }
 0x18d   : > { %2319 = vst [vmem:[%s314_s24] sm:$0x1] %v2318_v35 }
 0x18e PF: > { %s16_s20 = sadd.s32 1, %s3232_s20   ;;  %s3810_s18 = smov %s3228_s19 }
 0x18f   : > { %p13_p6 = scmp.ge.s32.totalorder %s16_s20, 4   ;;  %s3811_s19 = smov %s3813_s2 }
 0x191   :  { %15 = sbr.rel (!%p13_p6) target bundleno = 2 (0x2), region = 92 }

// kernel: _lambda_.12
= control target key start
LH: loop header
LB: loop body
LE: loop exit
PB: predicated region body
PF: predicated region fallthrough
CT: control target
= control target key end

     0   :  { %s148_s0 = inlined_call_operand.vmem [shape: bf16[32,128], index: 0, kind: input, shape index: {}]   ;;  %s149_s1 = inlined_call_operand.vmem [shape: f32[1,128], index: 1, kind: input, shape index: {}]   ;;  %s150_s2 = inlined_call_operand.vmem [shape: f32[1,128], index: 2, kind: input, shape index: {}]   ;;  %s151_s3 = inlined_call_operand.vmem [shape: bf16[32,128], index: 3, kind: output, shape index: {}]  }
   0x1   :  { %v91_v0 = vld [vmem:[%s148_s0] sm:$0xff]   ;;  %v108_v4 = vld [vmem:[%s148_s0 + $0x8] sm:$0xff]  }
   0x2   :  { %v80_v1 = vld [vmem:[%s149_s1] ss:$0 sm:$0xff]  ;;  %v92_v2 = vunpack.c.l.bf16 %v91_v0  ;;  %v93_v3 = vunpack.c.h.bf16 %v91_v0  ;;  %v96_v6 = vunpack.c.l.bf16 %v108_v4  ;;  %v97_v7 = vunpack.c.h.bf16 %v108_v4 }
   0x3   :  { %v81_v5 = vld [vmem:[%s150_s2] ss:$0 sm:$0xff] }
   0x4   :  { %v29_v8 = vmul.f32 %v92_v2, %v80_v1  ;;  %v30_v9 = vmul.f32 %v93_v3, %v80_v1  ;;  %v31_v10 = vmul.f32 %v96_v6, %v80_v1  ;;  %v32_v11 = vmul.f32 %v97_v7, %v80_v1 }
   0x6   :  { %v40_v12 = vadd.f32 %v81_v5, %v29_v8  ;;  %v41_v13 = vadd.f32 %v81_v5, %v30_v9  ;;  %v42_v14 = vadd.f32 %v81_v5, %v31_v10  ;;  %v43_v15 = vadd.f32 %v81_v5, %v32_v11 }
   0x8   :  { %vm44_vm0 = vcmp.gt.f32.partialorder %v40_v12, 0.0  ;;  %vm45_vm1 = vcmp.gt.f32.partialorder %v41_v13, 0.0  ;;  %v48_v16 = vmul.f32 0.2, %v40_v12  ;;  %v49_v17 = vmul.f32 0.2, %v41_v13 }
   0x9   :  { %vm46_vm2 = vcmp.gt.f32.partialorder %v42_v14, 0.0  ;;  %vm47_vm3 = vcmp.gt.f32.partialorder %v43_v15, 0.0  ;;  %v50_v18 = vmul.f32 0.2, %v42_v14  ;;  %v51_v19 = vmul.f32 0.2, %v43_v15 }
   0xa   :  { %v52_v20 = vsel %vm44_vm0, %v40_v12, %v48_v16  ;;  %v53_v21 = vsel %vm45_vm1, %v41_v13, %v49_v17 }
   0xb   :  { %v101_v22 = vpack.c.bf16 %v53_v21, %v52_v20  ;;  %v54_v23 = vsel %vm46_vm2, %v42_v14, %v50_v18  ;;  %v55_v24 = vsel %vm47_vm3, %v43_v15, %v51_v19 }
   0xc   :  { %v106_v25 = vpack.c.bf16 %v55_v24, %v54_v23 }
   0xd   :  { %102 = vst [vmem:[%s151_s3] sm:$0xff] %v101_v22  }
   0xe   :  { %109 = vst [vmem:[%s151_s3 + $0x8] sm:$0xff] %v106_v25  }

// kernel: _lambda_.11
= control target key start
LH: loop header
LB: loop body
LE: loop exit
PB: predicated region body
PF: predicated region fallthrough
CT: control target
= control target key end

     0   :  { %s2735_s1 = inlined_call_operand.vmem [shape: bf16[2048,128], index: 1, kind: input, shape index: {}]   ;;  %s2736_s2 = inlined_call_operand.vmem [shape: f32[1,128], index: 2, kind: input, shape index: {}]   ;;  %s2737_s0 = inlined_call_operand.vmem [shape: bf16[32,2048], index: 0, kind: input, shape index: {}]   ;;  %s2738_s3 = inlined_call_operand.vmem [shape: bf16[32,128], index: 3, kind: output, shape index: {0}]   ;;  %s2739_s4 = inlined_call_operand.vmem [shape: f32[1,1,128], index: 4, kind: output, shape index: {1}]   ;;  %s2740_s5 = inlined_call_operand.vmem [shape: f32[1,1,128], index: 5, kind: output, shape index: {2}]  }
   0x1   :  { %v2085_v0 = vld [vmem:[%s2735_s1 + $0x40] sm:$0xff]   ;;  %v2089_v4 = vld [vmem:[%s2735_s1 + $0x48] sm:$0xff]   ;;  %v2093_v8 = vld [vmem:[%s2735_s1 + $0x50] sm:$0xff]  }
   0x2   :  { %v2086_v1 = vld [vmem:[%s2735_s1 + $0xc0] sm:$0xff]   ;;  %1861 = vmatprep.subr.bf16.mxu0 %v2085_v0  ;;  %v2090_v5 = vld [vmem:[%s2735_s1 + $0xc8] sm:$0xff]   ;;  %v2094_v9 = vld [vmem:[%s2735_s1 + $0xd0] sm:$0xff]  }
   0x3   :  { %v2087_v2 = vld [vmem:[%s2735_s1] sm:$0xff]   ;;  %1889 = vmatprep.subr.bf16.mxu1 %v2086_v1  ;;  %v2091_v6 = vld [vmem:[%s2735_s1 + $0x8] sm:$0xff]   ;;  %v2095_v10 = vld [vmem:[%s2735_s1 + $0x10] sm:$0xff]  }
   0x4   :  { %v2088_v3 = vld [vmem:[%s2735_s1 + $0x80] sm:$0xff]   ;;  %1862 = vmatpush3.bf16.msra.mxu0 %v2087_v2  ;;  %v2092_v7 = vld [vmem:[%s2735_s1 + $0x88] sm:$0xff]   ;;  %v2096_v11 = vld [vmem:[%s2735_s1 + $0x90] sm:$0xff]  }
   0x5   :  { %1890 = vmatpush3.bf16.msra.mxu1 %v2088_v3  ;;  %1863 = vmatprep.subr.bf16.mxu0 %v2089_v4  ;;  %v2097_v12 = vld [vmem:[%s2735_s1 + $0x58] sm:$0xff]   ;;  %v2101_v16 = vld [vmem:[%s2735_s1 + $0x60] sm:$0xff]   ;;  %v2105_v20 = vld [vmem:[%s2735_s1 + $0x68] sm:$0xff]  }
   0x6   :  { %1891 = vmatprep.subr.bf16.mxu1 %v2090_v5  ;;  %v2098_v13 = vld [vmem:[%s2735_s1 + $0xd8] sm:$0xff]   ;;  %v2102_v17 = vld [vmem:[%s2735_s1 + $0xe0] sm:$0xff]   ;;  %v2106_v21 = vld [vmem:[%s2735_s1 + $0xe8] sm:$0xff]  }
   0x7   :  { %v2099_v14 = vld [vmem:[%s2735_s1 + $0x18] sm:$0xff]   ;;  %v2103_v18 = vld [vmem:[%s2735_s1 + $0x20] sm:$0xff]   ;;  %v2107_v22 = vld [vmem:[%s2735_s1 + $0x28] sm:$0xff]  }
   0x8   :  { %1864 = vmatpush3.bf16.msra.mxu0 %v2091_v6  ;;  %v2100_v15 = vld [vmem:[%s2735_s1 + $0x98] sm:$0xff]   ;;  %v2104_v19 = vld [vmem:[%s2735_s1 + $0xa0] sm:$0xff]   ;;  %v2108_v23 = vld [vmem:[%s2735_s1 + $0xa8] sm:$0xff]  }
   0x9   :  { %1892 = vmatpush3.bf16.msra.mxu1 %v2092_v7  ;;  %1865 = vmatprep.subr.bf16.mxu0 %v2093_v8  ;;  %v2109_v24 = vld [vmem:[%s2735_s1 + $0x70] sm:$0xff]   ;;  %v2113_v28 = vld [vmem:[%s2735_s1 + $0x78] sm:$0xff]   ;;  %v18_v32 = vld [vmem:[%s2737_s0] sm:$0xff] }
   0xa   :  { %1893 = vmatprep.subr.bf16.mxu1 %v2094_v9  ;;  %v2110_v25 = vld [vmem:[%s2735_s1 + $0xf0] sm:$0xff]   ;;  %v2114_v29 = vld [vmem:[%s2735_s1 + $0xf8] sm:$0xff]   ;;  %v26_v33 = vld [vmem:[%s2737_s0 + $0x40] sm:$0xff] }
   0xb   :  { %v2111_v26 = vld [vmem:[%s2735_s1 + $0x30] sm:$0xff]   ;;  %v2115_v30 = vld [vmem:[%s2735_s1 + $0x38] sm:$0xff]   ;;  %v19_v34 = vld [vmem:[%s2737_s0 + $0x8] sm:$0xff]  ;;  %v1682_v35 = vcombine.low %v18_v32, %v26_v33  ;;  %v1683_v36 = vcombine.high %v18_v32, %v26_v33 }
   0xc   :  { %1866 = vmatpush3.bf16.msra.mxu0 %v2095_v10  ;;  %v2112_v27 = vld [vmem:[%s2735_s1 + $0xb0] sm:$0xff]   ;;  %v2116_v31 = vld [vmem:[%s2735_s1 + $0xb8] sm:$0xff]   ;;  %v27_v37 = vld [vmem:[%s2737_s0 + $0x48] sm:$0xff] }
   0xd   :  { %1894 = vmatpush3.bf16.msra.mxu1 %v2096_v11  ;;  %1867 = vmatprep.subr.bf16.mxu0 %v2097_v12  ;;  %v1684_v38 = vcombine.low %v19_v34, %v27_v37  ;;  %v1685_v39 = vcombine.high %v19_v34, %v27_v37  ;;  %v2117_v40 = vld [vmem:[%s2735_s1 + $0x140] sm:$0xff]   ;;  %v2121_v44 = vld [vmem:[%s2735_s1 + $0x148] sm:$0xff]   ;;  %v2125_v48 = vld [vmem:[%s2735_s1 + $0x150] sm:$0xff]  }
   0xe   :  { %1895 = vmatprep.subr.bf16.mxu1 %v2098_v13  ;;  %1266 = vmatprep.mubr.bf16.mxu0 %v1683_v36  ;;  %v2118_v41 = vld [vmem:[%s2735_s1 + $0x1c0] sm:$0xff]   ;;  %v2122_v45 = vld [vmem:[%s2735_s1 + $0x1c8] sm:$0xff]   ;;  %v2126_v49 = vld [vmem:[%s2735_s1 + $0x1d0] sm:$0xff]  }
   0xf   :  { %1315 = vmatprep.mubr.bf16.mxu1 %v1685_v39  ;;  %v2119_v42 = vld [vmem:[%s2735_s1 + $0x100] sm:$0xff]   ;;  %v2123_v46 = vld [vmem:[%s2735_s1 + $0x108] sm:$0xff]   ;;  %v2127_v50 = vld [vmem:[%s2735_s1 + $0x110] sm:$0xff]  }
  0x10   :  { %1868 = vmatpush3.bf16.msra.mxu0 %v2099_v14  ;;  %v2120_v43 = vld [vmem:[%s2735_s1 + $0x180] sm:$0xff]   ;;  %v2124_v47 = vld [vmem:[%s2735_s1 + $0x188] sm:$0xff]   ;;  %v2128_v51 = vld [vmem:[%s2735_s1 + $0x190] sm:$0xff]  }
  0x11   :  { %1896 = vmatpush3.bf16.msra.mxu1 %v2100_v15  ;;  %1869 = vmatprep.subr.bf16.mxu0 %v2101_v16  ;;  %v2129_v52 = vld [vmem:[%s2735_s1 + $0x158] sm:$0xff]   ;;  %v2133_v56 = vld [vmem:[%s2735_s1 + $0x160] sm:$0xff]   ;;  %v2137_v60 = vld [vmem:[%s2735_s1 + $0x168] sm:$0xff]  }
  0x12   :  { %1897 = vmatprep.subr.bf16.mxu1 %v2102_v17  ;;  %v2130_v53 = vld [vmem:[%s2735_s1 + $0x1d8] sm:$0xff]   ;;  %v2134_v57 = vld [vmem:[%s2735_s1 + $0x1e0] sm:$0xff]   ;;  %v2138_v61 = vld [vmem:[%s2735_s1 + $0x1e8] sm:$0xff]  }
  0x13   :  { %v2131_v54 = vld [vmem:[%s2735_s1 + $0x118] sm:$0xff]   ;;  %v2135_v58 = vld [vmem:[%s2735_s1 + $0x120] sm:$0xff]   ;;  %v35_v1 = vld [vmem:[%s2737_s0 + $0x88] sm:$0xff] }
  0x14   :  { %1870 = vmatpush3.bf16.msra.mxu0 %v2103_v18  ;;  %v2132_v55 = vld [vmem:[%s2735_s1 + $0x198] sm:$0xff]   ;;  %v2136_v59 = vld [vmem:[%s2735_s1 + $0x1a0] sm:$0xff]   ;;  %v43_v2 = vld [vmem:[%s2737_s0 + $0xc8] sm:$0xff] }
  0x15   :  { %1898 = vmatpush3.bf16.msra.mxu1 %v2104_v19  ;;  %1871 = vmatprep.subr.bf16.mxu0 %v2105_v20  ;;  %v34_v62 = vld [vmem:[%s2737_s0 + $0x80] sm:$0xff]  ;;  %v1701_v4 = vcombine.high %v35_v1, %v43_v2  ;;  %v2139_v5 = vld [vmem:[%s2735_s1 + $0x128] sm:$0xff]   ;;  %v1700_v6 = vcombine.low %v35_v1, %v43_v2  ;;  %v2141_v8 = vld [vmem:[%s2735_s1 + $0x170] sm:$0xff]  }
  0x16   :  { %1899 = vmatprep.subr.bf16.mxu1 %v2106_v21  ;;  %v42_v63 = vld [vmem:[%s2737_s0 + $0xc0] sm:$0xff]  ;;  %v2140_v7 = vld [vmem:[%s2735_s1 + $0x1a8] sm:$0xff]   ;;  %v2142_v9 = vld [vmem:[%s2735_s1 + $0x1f0] sm:$0xff]  }
  0x17   :  { %v1699_v0 = vcombine.high %v34_v62, %v42_v63  ;;  %v1698_v3 = vcombine.low %v34_v62, %v42_v63  ;;  %v2143_v10 = vld [vmem:[%s2735_s1 + $0x130] sm:$0xff]   ;;  %v2145_v12 = vld [vmem:[%s2735_s1 + $0x178] sm:$0xff]   ;;  %v30_v1 = vld [vmem:[%s2737_s0 + $0x60] sm:$0xff] }
  0x18   :  { %1872 = vmatpush3.bf16.msra.mxu0 %v2107_v22  ;;  %v2144_v11 = vld [vmem:[%s2735_s1 + $0x1b0] sm:$0xff]   ;;  %v2146_v13 = vld [vmem:[%s2735_s1 + $0x1f8] sm:$0xff]  }
  0x19   :  { %1900 = vmatpush3.bf16.msra.mxu1 %v2108_v23  ;;  %1873 = vmatprep.subr.bf16.mxu0 %v2109_v24  ;;  %v2147_v14 = vld [vmem:[%s2735_s1 + $0x138] sm:$0xff]   ;;  %v20_v16 = vld [vmem:[%s2737_s0 + $0x10] sm:$0xff]  ;;  %v2149_v24 = vld [vmem:[%s2735_s1 + $0x240] sm:$0xff]  }
  0x1a   :  { %1901 = vmatprep.subr.bf16.mxu1 %v2110_v25  ;;  %v2148_v15 = vld [vmem:[%s2735_s1 + $0x1b8] sm:$0xff]   ;;  %v28_v17 = vld [vmem:[%s2737_s0 + $0x50] sm:$0xff]  ;;  %v2150_v25 = vld [vmem:[%s2735_s1 + $0x2c0] sm:$0xff]  }
  0x1b   :  { %v21_v18 = vld [vmem:[%s2737_s0 + $0x18] sm:$0xff]  ;;  %v1686_v20 = vcombine.low %v20_v16, %v28_v17  ;;  %v1687_v21 = vcombine.high %v20_v16, %v28_v17  ;;  %v36_v32 = vld [vmem:[%s2737_s0 + $0x90] sm:$0xff]  ;;  %v38_v16 = vld [vmem:[%s2737_s0 + $0xa0] sm:$0xff] }
  0x1c   :  { %1874 = vmatpush3.bf16.msra.mxu0 %v2111_v26  ;;  %v29_v19 = vld [vmem:[%s2737_s0 + $0x58] sm:$0xff]  ;;  %v2151_v26 = vld [vmem:[%s2735_s1 + $0x200] sm:$0xff]   ;;  %v44_v33 = vld [vmem:[%s2737_s0 + $0xd0] sm:$0xff] }
  0x1d   :  { %1902 = vmatpush3.bf16.msra.mxu1 %v2112_v27  ;;  %1875 = vmatprep.subr.bf16.mxu0 %v2113_v28  ;;  %v1688_v22 = vcombine.low %v21_v18, %v29_v19  ;;  %v1689_v23 = vcombine.high %v21_v18, %v29_v19  ;;  %v2152_v27 = vld [vmem:[%s2735_s1 + $0x280] sm:$0xff]   ;;  %v2153_v28 = vld [vmem:[%s2735_s1 + $0x248] sm:$0xff]   ;;  %v1703_v34 = vcombine.high %v36_v32, %v44_v33  ;;  %v2157_v36 = vld [vmem:[%s2735_s1 + $0x250] sm:$0xff]  }
  0x1e   :  { %1903 = vmatprep.subr.bf16.mxu1 %v2114_v29  ;;  %v2154_v29 = vld [vmem:[%s2735_s1 + $0x2c8] sm:$0xff]   ;;  %v2158_v37 = vld [vmem:[%s2735_s1 + $0x2d0] sm:$0xff]   ;;  %v45_v39 = vld [vmem:[%s2737_s0 + $0xd8] sm:$0xff] }
  0x1f   :  { %v2179_v62 = vld [vmem:[%s2735_s1 + $0x238] sm:$0xff]   ;;  %v46_v17 = vld [vmem:[%s2737_s0 + $0xe0] sm:$0xff] }
  0x20   :  { %1876 = vmatpush3.bf16.msra.mxu0 %v2115_v30  ;;  %v2155_v30 = vld [vmem:[%s2735_s1 + $0x208] sm:$0xff]   ;;  %v2180_v63 = vld [vmem:[%s2735_s1 + $0x2b8] sm:$0xff]   ;;  %v1707_v18 = vcombine.high %v38_v16, %v46_v17  ;;  %v1706_v19 = vcombine.low %v38_v16, %v46_v17 }
  0x21   :  { %1904 = vmatpush3.bf16.msra.mxu1 %v2116_v31  ;;  %1917 = vmatprep.subr.bf16.mxu0 %v2117_v40  ;;  %v2156_v31 = vld [vmem:[%s2735_s1 + $0x288] sm:$0xff]  }
  0x22   :  { %1945 = vmatprep.subr.bf16.mxu1 %v2118_v41  ;;  %v2159_v41 = vld [vmem:[%s2735_s1 + $0x210] sm:$0xff]  }
  0x23   :  { %1267 = vmatmul.mubr.bf16.vlgmr.msra.gmra.mrb[0].mxu0 %v1682_v35  ;;  %v1702_v35 = vcombine.low %v36_v32, %v44_v33  ;;  %v2197_v32 = vld [vmem:[%s2735_s1 + $0x360] sm:$0xff]  }
  0x24   :  { %1316 = vmatmul.mubr.bf16.vlgmr.msra.gmra.mrb[0].mxu1 %v1684_v38  ;;  %1918 = vmatpush3.bf16.msra.mxu0 %v2119_v42  ;;  %v37_v38 = vld [vmem:[%s2737_s0 + $0x98] sm:$0xff]  ;;  %v2198_v33 = vld [vmem:[%s2735_s1 + $0x3e0] sm:$0xff]  }
  0x25   :  { %1946 = vmatpush3.bf16.msra.mxu1 %v2120_v43  ;;  %1919 = vmatprep.subr.bf16.mxu0 %v2121_v44  ;;  %v1705_v40 = vcombine.high %v37_v38, %v45_v39  ;;  %v1704_v42 = vcombine.low %v37_v38, %v45_v39  ;;  %v2160_v43 = vld [vmem:[%s2735_s1 + $0x290] sm:$0xff]   ;;  %v2161_v44 = vld [vmem:[%s2735_s1 + $0x258] sm:$0xff]   ;;  %v2203_v38 = vld [vmem:[%s2735_s1 + $0x328] sm:$0xff]  }
  0x26   :  { %1947 = vmatprep.subr.bf16.mxu1 %v2122_v45  ;;  %1274 = vmatprep.mubr.bf16.mxu0 %v1699_v0  ;;  %v2162_v45 = vld [vmem:[%s2735_s1 + $0x2d8] sm:$0xff]   ;;  %v22_v0 = vld [vmem:[%s2737_s0 + $0x20] sm:$0xff]  ;;  %v2204_v39 = vld [vmem:[%s2735_s1 + $0x3a8] sm:$0xff]  }
  0x27   :  { %1323 = vmatprep.mubr.bf16.mxu1 %v1701_v4  ;;  %v1690_v2 = vcombine.low %v22_v0, %v30_v1  ;;  %v23_v4 = vld [vmem:[%s2737_s0 + $0x28] sm:$0xff] }
  0x28   :  { %1920 = vmatpush3.bf16.msra.mxu0 %v2123_v46  ;;  %v2163_v46 = vld [vmem:[%s2735_s1 + $0x218] sm:$0xff]  }
  0x29   :  { %1948 = vmatpush3.bf16.msra.mxu1 %v2124_v47  ;;  %1921 = vmatprep.subr.bf16.mxu0 %v2125_v48  ;;  %v2164_v47 = vld [vmem:[%s2735_s1 + $0x298] sm:$0xff]   ;;  %v2165_v48 = vld [vmem:[%s2735_s1 + $0x260] sm:$0xff]  }
  0x2a   :  { %1949 = vmatprep.subr.bf16.mxu1 %v2126_v49  ;;  %v2166_v49 = vld [vmem:[%s2735_s1 + $0x2e0] sm:$0xff]  }
  0x2b   :  { %1275 = vmatmul.mubr.bf16.gmra.mrb[4].mxu0 %v1698_v3  ;;  %v1691_v3 = vcombine.high %v22_v0, %v30_v1 }
  0x2c   :  { %1922 = vmatpush3.bf16.msra.mxu0 %v2127_v50  ;;  %1324 = vmatmul.mubr.bf16.gmra.mrb[4].mxu1 %v1700_v6  ;;  %v2167_v50 = vld [vmem:[%s2735_s1 + $0x220] sm:$0xff]  }
  0x2d   :  { %1950 = vmatpush3.bf16.msra.mxu1 %v2128_v51  ;;  %1923 = vmatprep.subr.bf16.mxu0 %v2129_v52  ;;  %v2168_v51 = vld [vmem:[%s2735_s1 + $0x2a0] sm:$0xff]   ;;  %v2169_v52 = vld [vmem:[%s2735_s1 + $0x268] sm:$0xff]  }
  0x2e   :  { %1951 = vmatprep.subr.bf16.mxu1 %v2130_v53  ;;  %1364 = vmatprep.mubr.bf16.mxu0 %v1687_v21  ;;  %v2170_v53 = vld [vmem:[%s2735_s1 + $0x2e8] sm:$0xff]   ;;  %v2190_v21 = vld [vmem:[%s2735_s1 + $0x3d0] sm:$0xff]  }
  0x2f   :  { %1413 = vmatprep.mubr.bf16.mxu1 %v1689_v23  ;;  %v47_v23 = vld [vmem:[%s2737_s0 + $0xe8] sm:$0xff] }
  0x30   :  { %1924 = vmatpush3.bf16.msra.mxu0 %v2131_v54  ;;  %v2171_v54 = vld [vmem:[%s2735_s1 + $0x228] sm:$0xff]  }
  0x31   :  { %1952 = vmatpush3.bf16.msra.mxu1 %v2132_v55  ;;  %1925 = vmatprep.subr.bf16.mxu0 %v2133_v56  ;;  %v2172_v55 = vld [vmem:[%s2735_s1 + $0x2a8] sm:$0xff]   ;;  %v2173_v56 = vld [vmem:[%s2735_s1 + $0x270] sm:$0xff]  }
  0x32   :  { %1953 = vmatprep.subr.bf16.mxu1 %v2134_v57  ;;  %v2174_v57 = vld [vmem:[%s2735_s1 + $0x2f0] sm:$0xff]  }
  0x34   :  { %1926 = vmatpush3.bf16.msra.mxu0 %v2135_v58  ;;  %v2175_v58 = vld [vmem:[%s2735_s1 + $0x230] sm:$0xff]  }
  0x35   :  { %1954 = vmatpush3.bf16.msra.mxu1 %v2136_v59  ;;  %1927 = vmatprep.subr.bf16.mxu0 %v2137_v60  ;;  %v2176_v59 = vld [vmem:[%s2735_s1 + $0x2b0] sm:$0xff]   ;;  %v2177_v60 = vld [vmem:[%s2735_s1 + $0x278] sm:$0xff]  }
  0x36   :  { %1955 = vmatprep.subr.bf16.mxu1 %v2138_v61  ;;  %v2178_v61 = vld [vmem:[%s2735_s1 + $0x2f8] sm:$0xff]  }
  0x38   :  { %1928 = vmatpush3.bf16.msra.mxu0 %v2139_v5  ;;  %v31_v5 = vld [vmem:[%s2737_s0 + $0x68] sm:$0xff] }
  0x39   :  { %1956 = vmatpush3.bf16.msra.mxu1 %v2140_v7  ;;  %1929 = vmatprep.subr.bf16.mxu0 %v2141_v8  ;;  %v1692_v6 = vcombine.low %v23_v4, %v31_v5  ;;  %v1693_v7 = vcombine.high %v23_v4, %v31_v5  ;;  %v2181_v8 = vld [vmem:[%s2735_s1 + $0x340] sm:$0xff]  }
  0x3a   :  { %1957 = vmatprep.subr.bf16.mxu1 %v2142_v9  ;;  %v2182_v9 = vld [vmem:[%s2735_s1 + $0x3c0] sm:$0xff]  }
  0x3c   :  { %1930 = vmatpush3.bf16.msra.mxu0 %v2143_v10  ;;  %v2183_v10 = vld [vmem:[%s2735_s1 + $0x300] sm:$0xff]  }
  0x3d   :  { %1958 = vmatpush3.bf16.msra.mxu1 %v2144_v11  ;;  %1931 = vmatprep.subr.bf16.mxu0 %v2145_v12  ;;  %v2184_v11 = vld [vmem:[%s2735_s1 + $0x380] sm:$0xff]   ;;  %v2185_v12 = vld [vmem:[%s2735_s1 + $0x348] sm:$0xff]  }
  0x3e   :  { %1959 = vmatprep.subr.bf16.mxu1 %v2146_v13  ;;  %v2186_v13 = vld [vmem:[%s2735_s1 + $0x3c8] sm:$0xff]  }
  0x40   :  { %1932 = vmatpush3.bf16.msra.mxu0 %v2147_v14  ;;  %v2187_v14 = vld [vmem:[%s2735_s1 + $0x308] sm:$0xff]  }
  0x41   :  { %1960 = vmatpush3.bf16.msra.mxu1 %v2148_v15  ;;  %1973 = vmatprep.subr.bf16.mxu0 %v2149_v24  ;;  %v2188_v15 = vld [vmem:[%s2735_s1 + $0x388] sm:$0xff]  }
  0x42   :  { %2001 = vmatprep.subr.bf16.mxu1 %v2150_v25  ;;  %v2191_v25 = vld [vmem:[%s2735_s1 + $0x310] sm:$0xff]  }
  0x43   :  { %1365 = vmatmul.mubr.bf16.vlgmr.msra.gmra.mrb[8].mxu0 %v1686_v20  ;;  %v2189_v20 = vld [vmem:[%s2735_s1 + $0x350] sm:$0xff]  }
  0x44   :  { %1414 = vmatmul.mubr.bf16.vlgmr.msra.gmra.mrb[8].mxu1 %v1688_v22  ;;  %1974 = vmatpush3.bf16.msra.mxu0 %v2151_v26  ;;  %v39_v22 = vld [vmem:[%s2737_s0 + $0xa8] sm:$0xff] }
  0x45   :  { %2002 = vmatpush3.bf16.msra.mxu1 %v2152_v27  ;;  %1975 = vmatprep.subr.bf16.mxu0 %v2153_v28  ;;  %v1709_v24 = vcombine.high %v39_v22, %v47_v23  ;;  %v1708_v26 = vcombine.low %v39_v22, %v47_v23  ;;  %v2192_v27 = vld [vmem:[%s2735_s1 + $0x390] sm:$0xff]   ;;  %v2193_v28 = vld [vmem:[%s2735_s1 + $0x358] sm:$0xff]  }
  0x46   :  { %2003 = vmatprep.subr.bf16.mxu1 %v2154_v29  ;;  %1372 = vmatprep.mubr.bf16.mxu0 %v1703_v34  ;;  %v2194_v29 = vld [vmem:[%s2735_s1 + $0x3d8] sm:$0xff]   ;;  %v2199_v34 = vld [vmem:[%s2735_s1 + $0x320] sm:$0xff]  }
  0x47   :  { %1421 = vmatprep.mubr.bf16.mxu1 %v1705_v40  ;;  %v2205_v40 = vld [vmem:[%s2735_s1 + $0x370] sm:$0xff]  }
  0x48   :  { %1976 = vmatpush3.bf16.msra.mxu0 %v2155_v30  ;;  %v2195_v30 = vld [vmem:[%s2735_s1 + $0x318] sm:$0xff]  }
  0x49   :  { %2004 = vmatpush3.bf16.msra.mxu1 %v2156_v31  ;;  %1977 = vmatprep.subr.bf16.mxu0 %v2157_v36  ;;  %v2196_v31 = vld [vmem:[%s2735_s1 + $0x398] sm:$0xff]   ;;  %v2201_v36 = vld [vmem:[%s2735_s1 + $0x368] sm:$0xff]  }
  0x4a   :  { %2005 = vmatprep.subr.bf16.mxu1 %v2158_v37  ;;  %v2202_v37 = vld [vmem:[%s2735_s1 + $0x3e8] sm:$0xff]  }
  0x4b   :  { %1373 = vmatmul.mubr.bf16.gmra.mrb[12].mxu0 %v1702_v35  ;;  %v2200_v35 = vld [vmem:[%s2735_s1 + $0x3a0] sm:$0xff]  }
  0x4c   :  { %1978 = vmatpush3.bf16.msra.mxu0 %v2159_v41  ;;  %1422 = vmatmul.mubr.bf16.gmra.mrb[12].mxu1 %v1704_v42  ;;  %v2206_v41 = vld [vmem:[%s2735_s1 + $0x3f0] sm:$0xff]  }
  0x4d   :  { %2006 = vmatpush3.bf16.msra.mxu1 %v2160_v43  ;;  %1979 = vmatprep.subr.bf16.mxu0 %v2161_v44  ;;  %v2207_v42 = vld [vmem:[%s2735_s1 + $0x330] sm:$0xff]   ;;  %v2209_v44 = vld [vmem:[%s2735_s1 + $0x378] sm:$0xff]  }
  0x4e   :  { %2007 = vmatprep.subr.bf16.mxu1 %v2162_v45  ;;  %1462 = vmatprep.mubr.bf16.mxu0 %v1691_v3  ;;  %v2208_v43 = vld [vmem:[%s2735_s1 + $0x3b0] sm:$0xff]   ;;  %v2210_v45 = vld [vmem:[%s2735_s1 + $0x3f8] sm:$0xff]  }
  0x4f   :  { %1511 = vmatprep.mubr.bf16.mxu1 %v1693_v7 }
  0x50   :  { %1980 = vmatpush3.bf16.msra.mxu0 %v2163_v46  ;;  %v2211_v46 = vld [vmem:[%s2735_s1 + $0x338] sm:$0xff]  }
  0x51   :  { %2008 = vmatpush3.bf16.msra.mxu1 %v2164_v47  ;;  %1981 = vmatprep.subr.bf16.mxu0 %v2165_v48  ;;  %v2212_v47 = vld [vmem:[%s2735_s1 + $0x3b8] sm:$0xff]   ;;  %v24_v48 = vld [vmem:[%s2737_s0 + $0x30] sm:$0xff] }
  0x52   :  { %2009 = vmatprep.subr.bf16.mxu1 %v2166_v49  ;;  %v32_v49 = vld [vmem:[%s2737_s0 + $0x70] sm:$0xff] }
  0x54   :  { %1982 = vmatpush3.bf16.msra.mxu0 %v2167_v50  ;;  %v25_v50 = vld [vmem:[%s2737_s0 + $0x38] sm:$0xff] }
  0x55   :  { %2010 = vmatpush3.bf16.msra.mxu1 %v2168_v51  ;;  %1983 = vmatprep.subr.bf16.mxu0 %v2169_v52  ;;  %v1694_v51 = vcombine.low %v24_v48, %v32_v49  ;;  %v1695_v52 = vcombine.high %v24_v48, %v32_v49 }
  0x56   :  { %2011 = vmatprep.subr.bf16.mxu1 %v2170_v53  ;;  %v33_v53 = vld [vmem:[%s2737_s0 + $0x78] sm:$0xff] }
  0x58   :  { %1984 = vmatpush3.bf16.msra.mxu0 %v2171_v54  ;;  %v40_v54 = vld [vmem:[%s2737_s0 + $0xb0] sm:$0xff] }
  0x59   :  { %2012 = vmatpush3.bf16.msra.mxu1 %v2172_v55  ;;  %1985 = vmatprep.subr.bf16.mxu0 %v2173_v56  ;;  %v48_v55 = vld [vmem:[%s2737_s0 + $0xf0] sm:$0xff]  ;;  %v1696_v56 = vcombine.low %v25_v50, %v33_v53 }
  0x5a   :  { %2013 = vmatprep.subr.bf16.mxu1 %v2174_v57  ;;  %v1697_v57 = vcombine.high %v25_v50, %v33_v53 }
  0x5c   :  { %1986 = vmatpush3.bf16.msra.mxu0 %v2175_v58  ;;  %v1711_v58 = vcombine.high %v40_v54, %v48_v55 }
  0x5d   :  { %2014 = vmatpush3.bf16.msra.mxu1 %v2176_v59  ;;  %1987 = vmatprep.subr.bf16.mxu0 %v2177_v60  ;;  %v41_v59 = vld [vmem:[%s2737_s0 + $0xb8] sm:$0xff] }
  0x5e   :  { %2015 = vmatprep.subr.bf16.mxu1 %v2178_v61  ;;  %v49_v60 = vld [vmem:[%s2737_s0 + $0xf8] sm:$0xff] }
  0x5f   :  { %v1713_v61 = vcombine.high %v41_v59, %v49_v60 }
  0x60   :  { %1988 = vmatpush3.bf16.msra.mxu0 %v2179_v62  ;;  %v1710_v62 = vcombine.low %v40_v54, %v48_v55 }
  0x61   :  { %2016 = vmatpush3.bf16.msra.mxu1 %v2180_v63  ;;  %2029 = vmatprep.subr.bf16.mxu0 %v2181_v8  ;;  %v1712_v63 = vcombine.low %v41_v59, %v49_v60 }
  0x62   :  { %2057 = vmatprep.subr.bf16.mxu1 %v2182_v9 }
  0x63   :  { %1463 = vmatmul.mubr.bf16.vlgmr.msra.gmra.mrb[16].mxu0 %v1690_v2 }
  0x64   :  { %1512 = vmatmul.mubr.bf16.vlgmr.msra.gmra.mrb[16].mxu1 %v1692_v6  ;;  %2030 = vmatpush3.bf16.msra.mxu0 %v2183_v10 }
  0x65   :  { %2058 = vmatpush3.bf16.msra.mxu1 %v2184_v11  ;;  %2031 = vmatprep.subr.bf16.mxu0 %v2185_v12 }
  0x66   :  { %2059 = vmatprep.subr.bf16.mxu1 %v2186_v13  ;;  %1470 = vmatprep.mubr.bf16.mxu0 %v1707_v18 }
  0x67   :  { %1519 = vmatprep.mubr.bf16.mxu1 %v1709_v24 }
  0x68   :  { %2032 = vmatpush3.bf16.msra.mxu0 %v2187_v14 }
  0x69   :  { %2060 = vmatpush3.bf16.msra.mxu1 %v2188_v15  ;;  %2033 = vmatprep.subr.bf16.mxu0 %v2189_v20 }
  0x6a   :  { %2061 = vmatprep.subr.bf16.mxu1 %v2190_v21 }
  0x6b   :  { %1471 = vmatmul.mubr.bf16.gmra.mrb[20].mxu0 %v1706_v19 }
  0x6c   :  { %2034 = vmatpush3.bf16.msra.mxu0 %v2191_v25  ;;  %1520 = vmatmul.mubr.bf16.gmra.mrb[20].mxu1 %v1708_v26 }
  0x6d   :  { %2062 = vmatpush3.bf16.msra.mxu1 %v2192_v27  ;;  %2035 = vmatprep.subr.bf16.mxu0 %v2193_v28 }
  0x6e   :  { %2063 = vmatprep.subr.bf16.mxu1 %v2194_v29  ;;  %1560 = vmatprep.mubr.bf16.mxu0 %v1695_v52 }
  0x6f   :  { %1609 = vmatprep.mubr.bf16.mxu1 %v1697_v57 }
  0x70   :  { %2036 = vmatpush3.bf16.msra.mxu0 %v2195_v30 }
  0x71   :  { %2064 = vmatpush3.bf16.msra.mxu1 %v2196_v31  ;;  %2037 = vmatprep.subr.bf16.mxu0 %v2197_v32 }
  0x72   :  { %2065 = vmatprep.subr.bf16.mxu1 %v2198_v33 }
  0x74   :  { %2038 = vmatpush3.bf16.msra.mxu0 %v2199_v34 }
  0x75   :  { %2066 = vmatpush3.bf16.msra.mxu1 %v2200_v35  ;;  %2039 = vmatprep.subr.bf16.mxu0 %v2201_v36 }
  0x76   :  { %2067 = vmatprep.subr.bf16.mxu1 %v2202_v37 }
  0x78   :  { %2040 = vmatpush3.bf16.msra.mxu0 %v2203_v38 }
  0x79   :  { %2068 = vmatpush3.bf16.msra.mxu1 %v2204_v39  ;;  %2041 = vmatprep.subr.bf16.mxu0 %v2205_v40 }
  0x7a   :  { %2069 = vmatprep.subr.bf16.mxu1 %v2206_v41 }
  0x7c   :  { %2042 = vmatpush3.bf16.msra.mxu0 %v2207_v42 }
  0x7d   :  { %2070 = vmatpush3.bf16.msra.mxu1 %v2208_v43  ;;  %2043 = vmatprep.subr.bf16.mxu0 %v2209_v44 }
  0x7e   :  { %2071 = vmatprep.subr.bf16.mxu1 %v2210_v45 }
  0x80   :  { %2044 = vmatpush3.bf16.msra.mxu0 %v2211_v46 }
  0x81   :  { %2072 = vmatpush3.bf16.msra.mxu1 %v2212_v47 }
  0x83   :  { %1561 = vmatmul.mubr.bf16.vlgmr.msra.gmra.mrb[24].mxu0 %v1694_v51 }
  0x84   :  { %1610 = vmatmul.mubr.bf16.vlgmr.msra.gmra.mrb[24].mxu1 %v1696_v56  ;;  %1568 = vmatprep.mubr.bf16.mxu0 %v1711_v58 }
  0x85   :  { %1617 = vmatprep.mubr.bf16.mxu1 %v1713_v61 }
  0x8b   :  { %1569 = vmatmul.mubr.bf16.gmra.mrb[28].mxu0 %v1710_v62 }
  0x8c   :  { %1618 = vmatmul.mubr.bf16.gmra.mrb[28].mxu1 %v1712_v63 }
  0xf6   :  { %v1877_v0 = vpop.f32.mrb[0].mxu0 }
  0xf7   :  { %v1905_v1 = vpop.f32.mrb[0].mxu1  ;;  %v1878_v2 = vpop.f32.mrb[1].mxu0 }
  0xf8   :  { %v1879_v3 = vadd.f32 %v1878_v2, %v1877_v0  ;;  %v1906_v4 = vpop.f32.mrb[1].mxu1  ;;  %v1880_v5 = vpop.f32.mrb[2].mxu0 }
  0xf9   :  { %v1907_v6 = vadd.f32 %v1906_v4, %v1905_v1  ;;  %v1908_v7 = vpop.f32.mrb[2].mxu1  ;;  %v1881_v8 = vpop.f32.mrb[3].mxu0 }
  0xfa   :  { %v1882_v9 = vadd.f32 %v1881_v8, %v1880_v5  ;;  %v1909_v10 = vpop.f32.mrb[3].mxu1 }
  0xfb   :  { %v1318_v11 = vadd.f32 %v1907_v6, %v1879_v3  ;;  %v1910_v12 = vadd.f32 %v1909_v10, %v1908_v7 }
  0xfd   :  { %v1321_v13 = vadd.f32 %v1910_v12, %v1882_v9 }
  0xfe   :  { %v1883_v14 = vpop.f32.mrb[4].mxu0 }
  0xff   :  { %v1911_v15 = vpop.f32.mrb[4].mxu1  ;;  %v1884_v16 = vpop.f32.mrb[5].mxu0 }
 0x100   :  { %v1885_v17 = vadd.f32 %v1884_v16, %v1883_v14  ;;  %v1912_v18 = vpop.f32.mrb[5].mxu1  ;;  %v1886_v19 = vpop.f32.mrb[6].mxu0 }
 0x101   :  { %v1913_v20 = vadd.f32 %v1912_v18, %v1911_v15  ;;  %v1914_v21 = vpop.f32.mrb[6].mxu1  ;;  %v1887_v22 = vpop.f32.mrb[7].mxu0 }
 0x102   :  { %v1888_v23 = vadd.f32 %v1887_v22, %v1886_v19  ;;  %v1915_v24 = vpop.f32.mrb[7].mxu1 }
 0x103   :  { %v1326_v25 = vadd.f32 %v1913_v20, %v1885_v17  ;;  %v1916_v26 = vadd.f32 %v1915_v24, %v1914_v21 }
 0x105   :  { %v1329_v27 = vadd.f32 %v1916_v26, %v1888_v23 }
 0x116   :  { %v1933_v28 = vpop.f32.mrb[8].mxu0 }
 0x117   :  { %v1961_v29 = vpop.f32.mrb[8].mxu1  ;;  %v1934_v30 = vpop.f32.mrb[9].mxu0 }
 0x118   :  { %v1962_v31 = vpop.f32.mrb[9].mxu1  ;;  %v1935_v32 = vadd.f32 %v1934_v30, %v1933_v28  ;;  %v1936_v34 = vpop.f32.mrb[10].mxu0 }
 0x119   :  { %v1963_v33 = vadd.f32 %v1962_v31, %v1961_v29  ;;  %v1964_v35 = vpop.f32.mrb[10].mxu1  ;;  %v1937_v36 = vpop.f32.mrb[11].mxu0 }
 0x11a   :  { %v1965_v37 = vpop.f32.mrb[11].mxu1  ;;  %v1367_v38 = vadd.f32 %v1935_v32, %v1318_v11  ;;  %v1938_v39 = vadd.f32 %v1937_v36, %v1936_v34 }
 0x11b   :  { %v1966_v40 = vadd.f32 %v1965_v37, %v1964_v35 }
 0x11c   :  { %v1416_v41 = vadd.f32 %v1963_v33, %v1367_v38  ;;  %v1370_v42 = vadd.f32 %v1938_v39, %v1321_v13 }
 0x11e   :  { %v1419_v43 = vadd.f32 %v1966_v40, %v1370_v42  ;;  %v1939_v44 = vpop.f32.mrb[12].mxu0 }
 0x11f   :  { %v1940_v45 = vpop.f32.mrb[13].mxu0  ;;  %v1967_v50 = vpop.f32.mrb[12].mxu1 }
 0x120   :  { %v1941_v46 = vadd.f32 %v1940_v45, %v1939_v44  ;;  %v1942_v47 = vpop.f32.mrb[14].mxu0  ;;  %v1968_v52 = vpop.f32.mrb[13].mxu1 }
 0x121   :  { %v1943_v48 = vpop.f32.mrb[15].mxu0  ;;  %v1969_v54 = vadd.f32 %v1968_v52, %v1967_v50  ;;  %v1970_v55 = vpop.f32.mrb[14].mxu1 }
 0x122   :  { %v1375_v49 = vadd.f32 %v1941_v46, %v1326_v25  ;;  %v1944_v51 = vadd.f32 %v1943_v48, %v1942_v47  ;;  %v1971_v56 = vpop.f32.mrb[15].mxu1 }
 0x123   :  { %v1972_v58 = vadd.f32 %v1971_v56, %v1970_v55 }
 0x124   :  { %v1378_v53 = vadd.f32 %v1944_v51, %v1329_v27  ;;  %v1424_v57 = vadd.f32 %v1969_v54, %v1375_v49 }
 0x126   :  { %v1427_v59 = vadd.f32 %v1972_v58, %v1378_v53 }
 0x136   :  { %v1989_v60 = vpop.f32.mrb[16].mxu0 }
 0x137   :  { %v2017_v61 = vpop.f32.mrb[16].mxu1  ;;  %v1990_v62 = vpop.f32.mrb[17].mxu0 }
 0x138   :  { %v1991_v63 = vadd.f32 %v1990_v62, %v1989_v60  ;;  %v2018_v0 = vpop.f32.mrb[17].mxu1  ;;  %v1992_v1 = vpop.f32.mrb[18].mxu0 }
 0x139   :  { %v2019_v2 = vadd.f32 %v2018_v0, %v2017_v61  ;;  %v2020_v3 = vpop.f32.mrb[18].mxu1  ;;  %v1993_v4 = vpop.f32.mrb[19].mxu0 }
 0x13a   :  { %v1465_v5 = vadd.f32 %v1991_v63, %v1416_v41  ;;  %v1994_v6 = vadd.f32 %v1993_v4, %v1992_v1  ;;  %v2021_v7 = vpop.f32.mrb[19].mxu1 }
 0x13b   :  { %v2022_v8 = vadd.f32 %v2021_v7, %v2020_v3 }
 0x13c   :  { %v1514_v9 = vadd.f32 %v2019_v2, %v1465_v5  ;;  %v1468_v10 = vadd.f32 %v1994_v6, %v1419_v43 }
 0x13e   :  { %v1517_v11 = vadd.f32 %v2022_v8, %v1468_v10  ;;  %v1995_v12 = vpop.f32.mrb[20].mxu0 }
 0x13f   :  { %v1996_v13 = vpop.f32.mrb[21].mxu0  ;;  %v2023_v16 = vpop.f32.mrb[20].mxu1 }
 0x140   :  { %v1997_v14 = vadd.f32 %v1996_v13, %v1995_v12  ;;  %v1998_v15 = vpop.f32.mrb[22].mxu0  ;;  %v2024_v20 = vpop.f32.mrb[21].mxu1 }
 0x141   :  { %v1999_v17 = vpop.f32.mrb[23].mxu0  ;;  %v2025_v21 = vadd.f32 %v2024_v20, %v2023_v16  ;;  %v2026_v22 = vpop.f32.mrb[22].mxu1 }
 0x142   :  { %v1473_v18 = vadd.f32 %v1997_v14, %v1424_v57  ;;  %v2000_v19 = vadd.f32 %v1999_v17, %v1998_v15  ;;  %v2027_v24 = vpop.f32.mrb[23].mxu1 }
 0x143   :  { %v2028_v26 = vadd.f32 %v2027_v24, %v2026_v22 }
 0x144   :  { %v1476_v23 = vadd.f32 %v2000_v19, %v1427_v59  ;;  %v1522_v25 = vadd.f32 %v2025_v21, %v1473_v18 }
 0x146   :  { %v1525_v27 = vadd.f32 %v2028_v26, %v1476_v23 }
 0x156   :  { %v2045_v28 = vpop.f32.mrb[24].mxu0 }
 0x157   :  { %v2073_v29 = vpop.f32.mrb[24].mxu1  ;;  %v2046_v30 = vpop.f32.mrb[25].mxu0 }
 0x158   :  { %v2047_v31 = vadd.f32 %v2046_v30, %v2045_v28  ;;  %v2074_v32 = vpop.f32.mrb[25].mxu1  ;;  %v2048_v33 = vpop.f32.mrb[26].mxu0 }
 0x159   :  { %v2075_v34 = vadd.f32 %v2074_v32, %v2073_v29  ;;  %v2076_v35 = vpop.f32.mrb[26].mxu1  ;;  %v2049_v36 = vpop.f32.mrb[27].mxu0 }
 0x15a   :  { %v1563_v37 = vadd.f32 %v2047_v31, %v1514_v9  ;;  %v2050_v38 = vadd.f32 %v2049_v36, %v2048_v33  ;;  %v2077_v39 = vpop.f32.mrb[27].mxu1 }
 0x15b   :  { %v2078_v40 = vadd.f32 %v2077_v39, %v2076_v35 }
 0x15c   :  { %v1612_v41 = vadd.f32 %v2075_v34, %v1563_v37  ;;  %v1566_v42 = vadd.f32 %v2050_v38, %v1517_v11 }
 0x15e   :  { %v1615_v43 = vadd.f32 %v2078_v40, %v1566_v42  ;;  %v2051_v44 = vpop.f32.mrb[28].mxu0  ;;  %v1656_v45 = vmul.f32 %v1612_v41, %v1612_v41 }
 0x15f   :  { %v2079_v46 = vpop.f32.mrb[28].mxu1  ;;  %v2052_v47 = vpop.f32.mrb[29].mxu0 }
 0x160   :  { %v1853_v48 = vpack.c.bf16 %v1615_v43, %v1612_v41  ;;  %v1646_v49 = vadd.f32 %v1615_v43, %v1612_v41  ;;  %v1657_v50 = vmul.f32 %v1615_v43, %v1615_v43  ;;  %v2053_v51 = vadd.f32 %v2052_v47, %v2051_v44  ;;  %v2080_v52 = vpop.f32.mrb[29].mxu1  ;;  %v2054_v53 = vpop.f32.mrb[30].mxu0 }
 0x161   :  { %v2081_v54 = vadd.f32 %v2080_v52, %v2079_v46  ;;  %v2082_v55 = vpop.f32.mrb[30].mxu1  ;;  %v2055_v56 = vpop.f32.mrb[31].mxu0 }
 0x162   :  { %1854 = vst [vmem:[%s2738_s3] sm:$0xff] %v1853_v48   ;;  %v1660_v57 = vadd.f32 %v1657_v50, %v1656_v45  ;;  %v1571_v58 = vadd.f32 %v2053_v51, %v1522_v25  ;;  %v2056_v59 = vadd.f32 %v2055_v56, %v2054_v53  ;;  %v2083_v60 = vpop.f32.mrb[31].mxu1 }
 0x163   :  { %v2084_v61 = vadd.f32 %v2083_v60, %v2082_v55 }
 0x164   :  { %v1620_v62 = vadd.f32 %v2081_v54, %v1571_v58  ;;  %v1574_v63 = vadd.f32 %v2056_v59, %v1525_v27 }
 0x166   :  { %v1647_v0 = vadd.f32 %v1646_v49, %v1620_v62  ;;  %v1658_v1 = vmul.f32 %v1620_v62, %v1620_v62  ;;  %v1623_v2 = vadd.f32 %v2084_v61, %v1574_v63 }
 0x168   :  { %v1661_v3 = vadd.f32 %v1660_v57, %v1658_v1  ;;  %v1858_v4 = vpack.c.bf16 %v1623_v2, %v1620_v62  ;;  %v1648_v5 = vadd.f32 %v1647_v0, %v1623_v2  ;;  %v1659_v6 = vmul.f32 %v1623_v2, %v1623_v2 }
 0x16a   :  { %1860 = vst [vmem:[%s2738_s3 + $0x8] sm:$0xff] %v1858_v4   ;;  %v1649_v7 = vrot.slane %v1648_v5, 4  ;;  %v1662_v8 = vadd.f32 %v1661_v3, %v1659_v6 }
 0x16c   :  { %v1650_v9 = vadd.f32 %v1649_v7, %v1648_v5  ;;  %v1663_v10 = vrot.slane %v1662_v8, 4 }
 0x16e   :  { %v1651_v11 = vrot.slane %v1650_v9, 2  ;;  %v1664_v12 = vadd.f32 %v1663_v10, %v1662_v8 }
 0x170   :  { %v1652_v13 = vadd.f32 %v1651_v11, %v1650_v9  ;;  %v1665_v14 = vrot.slane %v1664_v12, 2 }
 0x172   :  { %v1653_v15 = vrot.slane %v1652_v13, 1  ;;  %v1666_v16 = vadd.f32 %v1665_v14, %v1664_v12 }
 0x174   :  { %v1654_v17 = vadd.f32 %v1653_v15, %v1652_v13  ;;  %v1667_v18 = vrot.slane %v1666_v16, 1 }
 0x176   :  { %1655 = vst [vmem:[%s2739_s4] sm:$0x1] %v1654_v17  ;;  %v1668_v19 = vadd.f32 %v1667_v18, %v1666_v16 }
 0x178   :  { %1669 = vst [vmem:[%s2740_s5] sm:$0x1] %v1668_v19 }

// kernel: _lambda_.13
= control target key start
LH: loop header
LB: loop body
LE: loop exit
PB: predicated region body
PF: predicated region fallthrough
CT: control target
= control target key end

     0   :  { %s2754_s1 = inlined_call_operand.vmem [shape: bf16[2048,128], index: 1, kind: input, shape index: {}]   ;;  %s2755_s2 = inlined_call_operand.vmem [shape: f32[1,128], index: 2, kind: input, shape index: {}]   ;;  %s2756_s0 = inlined_call_operand.vmem [shape: bf16[32,2048], index: 0, kind: input, shape index: {}]   ;;  %s2757_s3 = inlined_call_operand.vmem [shape: bf16[32,128], index: 3, kind: output, shape index: {0}]   ;;  %s2758_s4 = inlined_call_operand.vmem [shape: f32[1,1,128], index: 4, kind: output, shape index: {1}]   ;;  %s2759_s5 = inlined_call_operand.vmem [shape: f32[1,1,128], index: 5, kind: output, shape index: {2}]  }
   0x1   :  { %v2104_v0 = vld [vmem:[%s2754_s1 + $0x40] sm:$0xff]   ;;  %v2108_v4 = vld [vmem:[%s2754_s1 + $0x48] sm:$0xff]   ;;  %v2112_v8 = vld [vmem:[%s2754_s1 + $0x50] sm:$0xff]  }
   0x2   :  { %v2105_v1 = vld [vmem:[%s2754_s1 + $0xc0] sm:$0xff]   ;;  %1880 = vmatprep.subr.bf16.mxu0 %v2104_v0  ;;  %v2109_v5 = vld [vmem:[%s2754_s1 + $0xc8] sm:$0xff]   ;;  %v2113_v9 = vld [vmem:[%s2754_s1 + $0xd0] sm:$0xff]  }
   0x3   :  { %v2106_v2 = vld [vmem:[%s2754_s1] sm:$0xff]   ;;  %1908 = vmatprep.subr.bf16.mxu1 %v2105_v1  ;;  %v2110_v6 = vld [vmem:[%s2754_s1 + $0x8] sm:$0xff]   ;;  %v2114_v10 = vld [vmem:[%s2754_s1 + $0x10] sm:$0xff]  }
   0x4   :  { %v2107_v3 = vld [vmem:[%s2754_s1 + $0x80] sm:$0xff]   ;;  %1881 = vmatpush3.bf16.msra.mxu0 %v2106_v2  ;;  %v2111_v7 = vld [vmem:[%s2754_s1 + $0x88] sm:$0xff]   ;;  %v2115_v11 = vld [vmem:[%s2754_s1 + $0x90] sm:$0xff]  }
   0x5   :  { %1909 = vmatpush3.bf16.msra.mxu1 %v2107_v3  ;;  %1882 = vmatprep.subr.bf16.mxu0 %v2108_v4  ;;  %v2116_v12 = vld [vmem:[%s2754_s1 + $0x58] sm:$0xff]   ;;  %v2120_v16 = vld [vmem:[%s2754_s1 + $0x60] sm:$0xff]   ;;  %v2124_v20 = vld [vmem:[%s2754_s1 + $0x68] sm:$0xff]  }
   0x6   :  { %1910 = vmatprep.subr.bf16.mxu1 %v2109_v5  ;;  %v2117_v13 = vld [vmem:[%s2754_s1 + $0xd8] sm:$0xff]   ;;  %v2121_v17 = vld [vmem:[%s2754_s1 + $0xe0] sm:$0xff]   ;;  %v2125_v21 = vld [vmem:[%s2754_s1 + $0xe8] sm:$0xff]  }
   0x7   :  { %v2118_v14 = vld [vmem:[%s2754_s1 + $0x18] sm:$0xff]   ;;  %v2122_v18 = vld [vmem:[%s2754_s1 + $0x20] sm:$0xff]   ;;  %v2126_v22 = vld [vmem:[%s2754_s1 + $0x28] sm:$0xff]  }
   0x8   :  { %1883 = vmatpush3.bf16.msra.mxu0 %v2110_v6  ;;  %v2119_v15 = vld [vmem:[%s2754_s1 + $0x98] sm:$0xff]   ;;  %v2123_v19 = vld [vmem:[%s2754_s1 + $0xa0] sm:$0xff]   ;;  %v2127_v23 = vld [vmem:[%s2754_s1 + $0xa8] sm:$0xff]  }
   0x9   :  { %1911 = vmatpush3.bf16.msra.mxu1 %v2111_v7  ;;  %1884 = vmatprep.subr.bf16.mxu0 %v2112_v8  ;;  %v2128_v24 = vld [vmem:[%s2754_s1 + $0x70] sm:$0xff]   ;;  %v2132_v28 = vld [vmem:[%s2754_s1 + $0x78] sm:$0xff]   ;;  %v19_v32 = vld [vmem:[%s2756_s0] sm:$0xff] }
   0xa   :  { %1912 = vmatprep.subr.bf16.mxu1 %v2113_v9  ;;  %v2129_v25 = vld [vmem:[%s2754_s1 + $0xf0] sm:$0xff]   ;;  %v2133_v29 = vld [vmem:[%s2754_s1 + $0xf8] sm:$0xff]   ;;  %v27_v33 = vld [vmem:[%s2756_s0 + $0x40] sm:$0xff] }
   0xb   :  { %v2130_v26 = vld [vmem:[%s2754_s1 + $0x30] sm:$0xff]   ;;  %v2134_v30 = vld [vmem:[%s2754_s1 + $0x38] sm:$0xff]   ;;  %v20_v34 = vld [vmem:[%s2756_s0 + $0x8] sm:$0xff]  ;;  %v1701_v35 = vcombine.low %v19_v32, %v27_v33  ;;  %v1702_v36 = vcombine.high %v19_v32, %v27_v33 }
   0xc   :  { %1885 = vmatpush3.bf16.msra.mxu0 %v2114_v10  ;;  %v2131_v27 = vld [vmem:[%s2754_s1 + $0xb0] sm:$0xff]   ;;  %v2135_v31 = vld [vmem:[%s2754_s1 + $0xb8] sm:$0xff]   ;;  %v28_v37 = vld [vmem:[%s2756_s0 + $0x48] sm:$0xff] }
   0xd   :  { %1913 = vmatpush3.bf16.msra.mxu1 %v2115_v11  ;;  %1886 = vmatprep.subr.bf16.mxu0 %v2116_v12  ;;  %v1703_v38 = vcombine.low %v20_v34, %v28_v37  ;;  %v1704_v39 = vcombine.high %v20_v34, %v28_v37  ;;  %v2136_v40 = vld [vmem:[%s2754_s1 + $0x140] sm:$0xff]   ;;  %v2140_v44 = vld [vmem:[%s2754_s1 + $0x148] sm:$0xff]   ;;  %v2144_v48 = vld [vmem:[%s2754_s1 + $0x150] sm:$0xff]  }
   0xe   :  { %1914 = vmatprep.subr.bf16.mxu1 %v2117_v13  ;;  %1267 = vmatprep.mubr.bf16.mxu0 %v1702_v36  ;;  %v2137_v41 = vld [vmem:[%s2754_s1 + $0x1c0] sm:$0xff]   ;;  %v2141_v45 = vld [vmem:[%s2754_s1 + $0x1c8] sm:$0xff]   ;;  %v2145_v49 = vld [vmem:[%s2754_s1 + $0x1d0] sm:$0xff]  }
   0xf   :  { %1316 = vmatprep.mubr.bf16.mxu1 %v1704_v39  ;;  %v2138_v42 = vld [vmem:[%s2754_s1 + $0x100] sm:$0xff]   ;;  %v2142_v46 = vld [vmem:[%s2754_s1 + $0x108] sm:$0xff]   ;;  %v2146_v50 = vld [vmem:[%s2754_s1 + $0x110] sm:$0xff]  }
  0x10   :  { %1887 = vmatpush3.bf16.msra.mxu0 %v2118_v14  ;;  %v2139_v43 = vld [vmem:[%s2754_s1 + $0x180] sm:$0xff]   ;;  %v2143_v47 = vld [vmem:[%s2754_s1 + $0x188] sm:$0xff]   ;;  %v2147_v51 = vld [vmem:[%s2754_s1 + $0x190] sm:$0xff]  }
  0x11   :  { %1915 = vmatpush3.bf16.msra.mxu1 %v2119_v15  ;;  %1888 = vmatprep.subr.bf16.mxu0 %v2120_v16  ;;  %v2148_v52 = vld [vmem:[%s2754_s1 + $0x158] sm:$0xff]   ;;  %v2152_v56 = vld [vmem:[%s2754_s1 + $0x160] sm:$0xff]   ;;  %v2156_v60 = vld [vmem:[%s2754_s1 + $0x168] sm:$0xff]  }
  0x12   :  { %1916 = vmatprep.subr.bf16.mxu1 %v2121_v17  ;;  %v2149_v53 = vld [vmem:[%s2754_s1 + $0x1d8] sm:$0xff]   ;;  %v2153_v57 = vld [vmem:[%s2754_s1 + $0x1e0] sm:$0xff]   ;;  %v2157_v61 = vld [vmem:[%s2754_s1 + $0x1e8] sm:$0xff]  }
  0x13   :  { %v2150_v54 = vld [vmem:[%s2754_s1 + $0x118] sm:$0xff]   ;;  %v2154_v58 = vld [vmem:[%s2754_s1 + $0x120] sm:$0xff]   ;;  %v36_v1 = vld [vmem:[%s2756_s0 + $0x88] sm:$0xff] }
  0x14   :  { %1889 = vmatpush3.bf16.msra.mxu0 %v2122_v18  ;;  %v2151_v55 = vld [vmem:[%s2754_s1 + $0x198] sm:$0xff]   ;;  %v2155_v59 = vld [vmem:[%s2754_s1 + $0x1a0] sm:$0xff]   ;;  %v44_v2 = vld [vmem:[%s2756_s0 + $0xc8] sm:$0xff] }
  0x15   :  { %1917 = vmatpush3.bf16.msra.mxu1 %v2123_v19  ;;  %1890 = vmatprep.subr.bf16.mxu0 %v2124_v20  ;;  %v35_v62 = vld [vmem:[%s2756_s0 + $0x80] sm:$0xff]  ;;  %v1720_v4 = vcombine.high %v36_v1, %v44_v2  ;;  %v2158_v5 = vld [vmem:[%s2754_s1 + $0x128] sm:$0xff]   ;;  %v1719_v6 = vcombine.low %v36_v1, %v44_v2  ;;  %v2160_v8 = vld [vmem:[%s2754_s1 + $0x170] sm:$0xff]  }
  0x16   :  { %1918 = vmatprep.subr.bf16.mxu1 %v2125_v21  ;;  %v43_v63 = vld [vmem:[%s2756_s0 + $0xc0] sm:$0xff]  ;;  %v2159_v7 = vld [vmem:[%s2754_s1 + $0x1a8] sm:$0xff]   ;;  %v2161_v9 = vld [vmem:[%s2754_s1 + $0x1f0] sm:$0xff]  }
  0x17   :  { %v1718_v0 = vcombine.high %v35_v62, %v43_v63  ;;  %v1717_v3 = vcombine.low %v35_v62, %v43_v63  ;;  %v2162_v10 = vld [vmem:[%s2754_s1 + $0x130] sm:$0xff]   ;;  %v2164_v12 = vld [vmem:[%s2754_s1 + $0x178] sm:$0xff]   ;;  %v31_v1 = vld [vmem:[%s2756_s0 + $0x60] sm:$0xff] }
  0x18   :  { %1891 = vmatpush3.bf16.msra.mxu0 %v2126_v22  ;;  %v2163_v11 = vld [vmem:[%s2754_s1 + $0x1b0] sm:$0xff]   ;;  %v2165_v13 = vld [vmem:[%s2754_s1 + $0x1f8] sm:$0xff]  }
  0x19   :  { %1919 = vmatpush3.bf16.msra.mxu1 %v2127_v23  ;;  %1892 = vmatprep.subr.bf16.mxu0 %v2128_v24  ;;  %v2166_v14 = vld [vmem:[%s2754_s1 + $0x138] sm:$0xff]   ;;  %v21_v16 = vld [vmem:[%s2756_s0 + $0x10] sm:$0xff]  ;;  %v2168_v24 = vld [vmem:[%s2754_s1 + $0x240] sm:$0xff]  }
  0x1a   :  { %1920 = vmatprep.subr.bf16.mxu1 %v2129_v25  ;;  %v2167_v15 = vld [vmem:[%s2754_s1 + $0x1b8] sm:$0xff]   ;;  %v29_v17 = vld [vmem:[%s2756_s0 + $0x50] sm:$0xff]  ;;  %v2169_v25 = vld [vmem:[%s2754_s1 + $0x2c0] sm:$0xff]  }
  0x1b   :  { %v22_v18 = vld [vmem:[%s2756_s0 + $0x18] sm:$0xff]  ;;  %v1705_v20 = vcombine.low %v21_v16, %v29_v17  ;;  %v1706_v21 = vcombine.high %v21_v16, %v29_v17  ;;  %v37_v32 = vld [vmem:[%s2756_s0 + $0x90] sm:$0xff]  ;;  %v39_v16 = vld [vmem:[%s2756_s0 + $0xa0] sm:$0xff] }
  0x1c   :  { %1893 = vmatpush3.bf16.msra.mxu0 %v2130_v26  ;;  %v30_v19 = vld [vmem:[%s2756_s0 + $0x58] sm:$0xff]  ;;  %v2170_v26 = vld [vmem:[%s2754_s1 + $0x200] sm:$0xff]   ;;  %v45_v33 = vld [vmem:[%s2756_s0 + $0xd0] sm:$0xff] }
  0x1d   :  { %1921 = vmatpush3.bf16.msra.mxu1 %v2131_v27  ;;  %1894 = vmatprep.subr.bf16.mxu0 %v2132_v28  ;;  %v1707_v22 = vcombine.low %v22_v18, %v30_v19  ;;  %v1708_v23 = vcombine.high %v22_v18, %v30_v19  ;;  %v2171_v27 = vld [vmem:[%s2754_s1 + $0x280] sm:$0xff]   ;;  %v2172_v28 = vld [vmem:[%s2754_s1 + $0x248] sm:$0xff]   ;;  %v1722_v34 = vcombine.high %v37_v32, %v45_v33  ;;  %v2176_v36 = vld [vmem:[%s2754_s1 + $0x250] sm:$0xff]  }
  0x1e   :  { %1922 = vmatprep.subr.bf16.mxu1 %v2133_v29  ;;  %v2173_v29 = vld [vmem:[%s2754_s1 + $0x2c8] sm:$0xff]   ;;  %v2177_v37 = vld [vmem:[%s2754_s1 + $0x2d0] sm:$0xff]   ;;  %v46_v39 = vld [vmem:[%s2756_s0 + $0xd8] sm:$0xff] }
  0x1f   :  { %v2198_v62 = vld [vmem:[%s2754_s1 + $0x238] sm:$0xff]   ;;  %v47_v17 = vld [vmem:[%s2756_s0 + $0xe0] sm:$0xff] }
  0x20   :  { %1895 = vmatpush3.bf16.msra.mxu0 %v2134_v30  ;;  %v2174_v30 = vld [vmem:[%s2754_s1 + $0x208] sm:$0xff]   ;;  %v2199_v63 = vld [vmem:[%s2754_s1 + $0x2b8] sm:$0xff]   ;;  %v1726_v18 = vcombine.high %v39_v16, %v47_v17  ;;  %v1725_v19 = vcombine.low %v39_v16, %v47_v17 }
  0x21   :  { %1923 = vmatpush3.bf16.msra.mxu1 %v2135_v31  ;;  %1936 = vmatprep.subr.bf16.mxu0 %v2136_v40  ;;  %v2175_v31 = vld [vmem:[%s2754_s1 + $0x288] sm:$0xff]  }
  0x22   :  { %1964 = vmatprep.subr.bf16.mxu1 %v2137_v41  ;;  %v2178_v41 = vld [vmem:[%s2754_s1 + $0x210] sm:$0xff]  }
  0x23   :  { %1268 = vmatmul.mubr.bf16.vlgmr.msra.gmra.mrb[0].mxu0 %v1701_v35  ;;  %v1721_v35 = vcombine.low %v37_v32, %v45_v33  ;;  %v2216_v32 = vld [vmem:[%s2754_s1 + $0x360] sm:$0xff]  }
  0x24   :  { %1317 = vmatmul.mubr.bf16.vlgmr.msra.gmra.mrb[0].mxu1 %v1703_v38  ;;  %1937 = vmatpush3.bf16.msra.mxu0 %v2138_v42  ;;  %v38_v38 = vld [vmem:[%s2756_s0 + $0x98] sm:$0xff]  ;;  %v2217_v33 = vld [vmem:[%s2754_s1 + $0x3e0] sm:$0xff]  }
  0x25   :  { %1965 = vmatpush3.bf16.msra.mxu1 %v2139_v43  ;;  %1938 = vmatprep.subr.bf16.mxu0 %v2140_v44  ;;  %v1724_v40 = vcombine.high %v38_v38, %v46_v39  ;;  %v1723_v42 = vcombine.low %v38_v38, %v46_v39  ;;  %v2179_v43 = vld [vmem:[%s2754_s1 + $0x290] sm:$0xff]   ;;  %v2180_v44 = vld [vmem:[%s2754_s1 + $0x258] sm:$0xff]   ;;  %v2222_v38 = vld [vmem:[%s2754_s1 + $0x328] sm:$0xff]  }
  0x26   :  { %1966 = vmatprep.subr.bf16.mxu1 %v2141_v45  ;;  %1275 = vmatprep.mubr.bf16.mxu0 %v1718_v0  ;;  %v2181_v45 = vld [vmem:[%s2754_s1 + $0x2d8] sm:$0xff]   ;;  %v23_v0 = vld [vmem:[%s2756_s0 + $0x20] sm:$0xff]  ;;  %v2223_v39 = vld [vmem:[%s2754_s1 + $0x3a8] sm:$0xff]  }
  0x27   :  { %1324 = vmatprep.mubr.bf16.mxu1 %v1720_v4  ;;  %v1709_v2 = vcombine.low %v23_v0, %v31_v1  ;;  %v24_v4 = vld [vmem:[%s2756_s0 + $0x28] sm:$0xff] }
  0x28   :  { %1939 = vmatpush3.bf16.msra.mxu0 %v2142_v46  ;;  %v2182_v46 = vld [vmem:[%s2754_s1 + $0x218] sm:$0xff]  }
  0x29   :  { %1967 = vmatpush3.bf16.msra.mxu1 %v2143_v47  ;;  %1940 = vmatprep.subr.bf16.mxu0 %v2144_v48  ;;  %v2183_v47 = vld [vmem:[%s2754_s1 + $0x298] sm:$0xff]   ;;  %v2184_v48 = vld [vmem:[%s2754_s1 + $0x260] sm:$0xff]  }
  0x2a   :  { %1968 = vmatprep.subr.bf16.mxu1 %v2145_v49  ;;  %v2185_v49 = vld [vmem:[%s2754_s1 + $0x2e0] sm:$0xff]  }
  0x2b   :  { %1276 = vmatmul.mubr.bf16.gmra.mrb[4].mxu0 %v1717_v3  ;;  %v1710_v3 = vcombine.high %v23_v0, %v31_v1 }
  0x2c   :  { %1941 = vmatpush3.bf16.msra.mxu0 %v2146_v50  ;;  %1325 = vmatmul.mubr.bf16.gmra.mrb[4].mxu1 %v1719_v6  ;;  %v2186_v50 = vld [vmem:[%s2754_s1 + $0x220] sm:$0xff]  }
  0x2d   :  { %1969 = vmatpush3.bf16.msra.mxu1 %v2147_v51  ;;  %1942 = vmatprep.subr.bf16.mxu0 %v2148_v52  ;;  %v2187_v51 = vld [vmem:[%s2754_s1 + $0x2a0] sm:$0xff]   ;;  %v2188_v52 = vld [vmem:[%s2754_s1 + $0x268] sm:$0xff]  }
  0x2e   :  { %1970 = vmatprep.subr.bf16.mxu1 %v2149_v53  ;;  %1365 = vmatprep.mubr.bf16.mxu0 %v1706_v21  ;;  %v2189_v53 = vld [vmem:[%s2754_s1 + $0x2e8] sm:$0xff]   ;;  %v2209_v21 = vld [vmem:[%s2754_s1 + $0x3d0] sm:$0xff]  }
  0x2f   :  { %1414 = vmatprep.mubr.bf16.mxu1 %v1708_v23  ;;  %v48_v23 = vld [vmem:[%s2756_s0 + $0xe8] sm:$0xff] }
  0x30   :  { %1943 = vmatpush3.bf16.msra.mxu0 %v2150_v54  ;;  %v2190_v54 = vld [vmem:[%s2754_s1 + $0x228] sm:$0xff]  }
  0x31   :  { %1971 = vmatpush3.bf16.msra.mxu1 %v2151_v55  ;;  %1944 = vmatprep.subr.bf16.mxu0 %v2152_v56  ;;  %v2191_v55 = vld [vmem:[%s2754_s1 + $0x2a8] sm:$0xff]   ;;  %v2192_v56 = vld [vmem:[%s2754_s1 + $0x270] sm:$0xff]  }
  0x32   :  { %1972 = vmatprep.subr.bf16.mxu1 %v2153_v57  ;;  %v2193_v57 = vld [vmem:[%s2754_s1 + $0x2f0] sm:$0xff]  }
  0x34   :  { %1945 = vmatpush3.bf16.msra.mxu0 %v2154_v58  ;;  %v2194_v58 = vld [vmem:[%s2754_s1 + $0x230] sm:$0xff]  }
  0x35   :  { %1973 = vmatpush3.bf16.msra.mxu1 %v2155_v59  ;;  %1946 = vmatprep.subr.bf16.mxu0 %v2156_v60  ;;  %v2195_v59 = vld [vmem:[%s2754_s1 + $0x2b0] sm:$0xff]   ;;  %v2196_v60 = vld [vmem:[%s2754_s1 + $0x278] sm:$0xff]  }
  0x36   :  { %1974 = vmatprep.subr.bf16.mxu1 %v2157_v61  ;;  %v2197_v61 = vld [vmem:[%s2754_s1 + $0x2f8] sm:$0xff]  }
  0x38   :  { %1947 = vmatpush3.bf16.msra.mxu0 %v2158_v5  ;;  %v32_v5 = vld [vmem:[%s2756_s0 + $0x68] sm:$0xff] }
  0x39   :  { %1975 = vmatpush3.bf16.msra.mxu1 %v2159_v7  ;;  %1948 = vmatprep.subr.bf16.mxu0 %v2160_v8  ;;  %v1711_v6 = vcombine.low %v24_v4, %v32_v5  ;;  %v1712_v7 = vcombine.high %v24_v4, %v32_v5  ;;  %v2200_v8 = vld [vmem:[%s2754_s1 + $0x340] sm:$0xff]  }
  0x3a   :  { %1976 = vmatprep.subr.bf16.mxu1 %v2161_v9  ;;  %v2201_v9 = vld [vmem:[%s2754_s1 + $0x3c0] sm:$0xff]  }
  0x3c   :  { %1949 = vmatpush3.bf16.msra.mxu0 %v2162_v10  ;;  %v2202_v10 = vld [vmem:[%s2754_s1 + $0x300] sm:$0xff]  }
  0x3d   :  { %1977 = vmatpush3.bf16.msra.mxu1 %v2163_v11  ;;  %1950 = vmatprep.subr.bf16.mxu0 %v2164_v12  ;;  %v2203_v11 = vld [vmem:[%s2754_s1 + $0x380] sm:$0xff]   ;;  %v2204_v12 = vld [vmem:[%s2754_s1 + $0x348] sm:$0xff]  }
  0x3e   :  { %1978 = vmatprep.subr.bf16.mxu1 %v2165_v13  ;;  %v2205_v13 = vld [vmem:[%s2754_s1 + $0x3c8] sm:$0xff]  }
  0x40   :  { %1951 = vmatpush3.bf16.msra.mxu0 %v2166_v14  ;;  %v2206_v14 = vld [vmem:[%s2754_s1 + $0x308] sm:$0xff]  }
  0x41   :  { %1979 = vmatpush3.bf16.msra.mxu1 %v2167_v15  ;;  %1992 = vmatprep.subr.bf16.mxu0 %v2168_v24  ;;  %v2207_v15 = vld [vmem:[%s2754_s1 + $0x388] sm:$0xff]  }
  0x42   :  { %2020 = vmatprep.subr.bf16.mxu1 %v2169_v25  ;;  %v2210_v25 = vld [vmem:[%s2754_s1 + $0x310] sm:$0xff]  }
  0x43   :  { %1366 = vmatmul.mubr.bf16.vlgmr.msra.gmra.mrb[8].mxu0 %v1705_v20  ;;  %v2208_v20 = vld [vmem:[%s2754_s1 + $0x350] sm:$0xff]  }
  0x44   :  { %1415 = vmatmul.mubr.bf16.vlgmr.msra.gmra.mrb[8].mxu1 %v1707_v22  ;;  %1993 = vmatpush3.bf16.msra.mxu0 %v2170_v26  ;;  %v40_v22 = vld [vmem:[%s2756_s0 + $0xa8] sm:$0xff] }
  0x45   :  { %2021 = vmatpush3.bf16.msra.mxu1 %v2171_v27  ;;  %1994 = vmatprep.subr.bf16.mxu0 %v2172_v28  ;;  %v1728_v24 = vcombine.high %v40_v22, %v48_v23  ;;  %v1727_v26 = vcombine.low %v40_v22, %v48_v23  ;;  %v2211_v27 = vld [vmem:[%s2754_s1 + $0x390] sm:$0xff]   ;;  %v2212_v28 = vld [vmem:[%s2754_s1 + $0x358] sm:$0xff]  }
  0x46   :  { %2022 = vmatprep.subr.bf16.mxu1 %v2173_v29  ;;  %1373 = vmatprep.mubr.bf16.mxu0 %v1722_v34  ;;  %v2213_v29 = vld [vmem:[%s2754_s1 + $0x3d8] sm:$0xff]   ;;  %v2218_v34 = vld [vmem:[%s2754_s1 + $0x320] sm:$0xff]  }
  0x47   :  { %1422 = vmatprep.mubr.bf16.mxu1 %v1724_v40  ;;  %v2224_v40 = vld [vmem:[%s2754_s1 + $0x370] sm:$0xff]  }
  0x48   :  { %1995 = vmatpush3.bf16.msra.mxu0 %v2174_v30  ;;  %v2214_v30 = vld [vmem:[%s2754_s1 + $0x318] sm:$0xff]  }
  0x49   :  { %2023 = vmatpush3.bf16.msra.mxu1 %v2175_v31  ;;  %1996 = vmatprep.subr.bf16.mxu0 %v2176_v36  ;;  %v2215_v31 = vld [vmem:[%s2754_s1 + $0x398] sm:$0xff]   ;;  %v2220_v36 = vld [vmem:[%s2754_s1 + $0x368] sm:$0xff]  }
  0x4a   :  { %2024 = vmatprep.subr.bf16.mxu1 %v2177_v37  ;;  %v2221_v37 = vld [vmem:[%s2754_s1 + $0x3e8] sm:$0xff]  }
  0x4b   :  { %1374 = vmatmul.mubr.bf16.gmra.mrb[12].mxu0 %v1721_v35  ;;  %v2219_v35 = vld [vmem:[%s2754_s1 + $0x3a0] sm:$0xff]  }
  0x4c   :  { %1997 = vmatpush3.bf16.msra.mxu0 %v2178_v41  ;;  %1423 = vmatmul.mubr.bf16.gmra.mrb[12].mxu1 %v1723_v42  ;;  %v2225_v41 = vld [vmem:[%s2754_s1 + $0x3f0] sm:$0xff]  }
  0x4d   :  { %2025 = vmatpush3.bf16.msra.mxu1 %v2179_v43  ;;  %1998 = vmatprep.subr.bf16.mxu0 %v2180_v44  ;;  %v2226_v42 = vld [vmem:[%s2754_s1 + $0x330] sm:$0xff]   ;;  %v2228_v44 = vld [vmem:[%s2754_s1 + $0x378] sm:$0xff]  }
  0x4e   :  { %2026 = vmatprep.subr.bf16.mxu1 %v2181_v45  ;;  %1463 = vmatprep.mubr.bf16.mxu0 %v1710_v3  ;;  %v2227_v43 = vld [vmem:[%s2754_s1 + $0x3b0] sm:$0xff]   ;;  %v2229_v45 = vld [vmem:[%s2754_s1 + $0x3f8] sm:$0xff]  }
  0x4f   :  { %1512 = vmatprep.mubr.bf16.mxu1 %v1712_v7 }
  0x50   :  { %1999 = vmatpush3.bf16.msra.mxu0 %v2182_v46  ;;  %v2230_v46 = vld [vmem:[%s2754_s1 + $0x338] sm:$0xff]  }
  0x51   :  { %2027 = vmatpush3.bf16.msra.mxu1 %v2183_v47  ;;  %2000 = vmatprep.subr.bf16.mxu0 %v2184_v48  ;;  %v2231_v47 = vld [vmem:[%s2754_s1 + $0x3b8] sm:$0xff]   ;;  %v25_v48 = vld [vmem:[%s2756_s0 + $0x30] sm:$0xff] }
  0x52   :  { %2028 = vmatprep.subr.bf16.mxu1 %v2185_v49  ;;  %v33_v49 = vld [vmem:[%s2756_s0 + $0x70] sm:$0xff] }
  0x54   :  { %2001 = vmatpush3.bf16.msra.mxu0 %v2186_v50  ;;  %v26_v50 = vld [vmem:[%s2756_s0 + $0x38] sm:$0xff] }
  0x55   :  { %2029 = vmatpush3.bf16.msra.mxu1 %v2187_v51  ;;  %2002 = vmatprep.subr.bf16.mxu0 %v2188_v52  ;;  %v1713_v51 = vcombine.low %v25_v48, %v33_v49  ;;  %v1714_v52 = vcombine.high %v25_v48, %v33_v49 }
  0x56   :  { %2030 = vmatprep.subr.bf16.mxu1 %v2189_v53  ;;  %v34_v53 = vld [vmem:[%s2756_s0 + $0x78] sm:$0xff] }
  0x58   :  { %2003 = vmatpush3.bf16.msra.mxu0 %v2190_v54  ;;  %v41_v54 = vld [vmem:[%s2756_s0 + $0xb0] sm:$0xff] }
  0x59   :  { %2031 = vmatpush3.bf16.msra.mxu1 %v2191_v55  ;;  %2004 = vmatprep.subr.bf16.mxu0 %v2192_v56  ;;  %v49_v55 = vld [vmem:[%s2756_s0 + $0xf0] sm:$0xff]  ;;  %v1715_v56 = vcombine.low %v26_v50, %v34_v53 }
  0x5a   :  { %2032 = vmatprep.subr.bf16.mxu1 %v2193_v57  ;;  %v1716_v57 = vcombine.high %v26_v50, %v34_v53 }
  0x5c   :  { %2005 = vmatpush3.bf16.msra.mxu0 %v2194_v58  ;;  %v1730_v58 = vcombine.high %v41_v54, %v49_v55 }
  0x5d   :  { %2033 = vmatpush3.bf16.msra.mxu1 %v2195_v59  ;;  %2006 = vmatprep.subr.bf16.mxu0 %v2196_v60  ;;  %v42_v59 = vld [vmem:[%s2756_s0 + $0xb8] sm:$0xff] }
  0x5e   :  { %2034 = vmatprep.subr.bf16.mxu1 %v2197_v61  ;;  %v50_v60 = vld [vmem:[%s2756_s0 + $0xf8] sm:$0xff] }
  0x5f   :  { %v1732_v61 = vcombine.high %v42_v59, %v50_v60 }
  0x60   :  { %2007 = vmatpush3.bf16.msra.mxu0 %v2198_v62  ;;  %v1729_v62 = vcombine.low %v41_v54, %v49_v55 }
  0x61   :  { %2035 = vmatpush3.bf16.msra.mxu1 %v2199_v63  ;;  %2048 = vmatprep.subr.bf16.mxu0 %v2200_v8  ;;  %v1731_v63 = vcombine.low %v42_v59, %v50_v60 }
  0x62   :  { %2076 = vmatprep.subr.bf16.mxu1 %v2201_v9 }
  0x63   :  { %1464 = vmatmul.mubr.bf16.vlgmr.msra.gmra.mrb[16].mxu0 %v1709_v2 }
  0x64   :  { %1513 = vmatmul.mubr.bf16.vlgmr.msra.gmra.mrb[16].mxu1 %v1711_v6  ;;  %2049 = vmatpush3.bf16.msra.mxu0 %v2202_v10 }
  0x65   :  { %2077 = vmatpush3.bf16.msra.mxu1 %v2203_v11  ;;  %2050 = vmatprep.subr.bf16.mxu0 %v2204_v12 }
  0x66   :  { %2078 = vmatprep.subr.bf16.mxu1 %v2205_v13  ;;  %1471 = vmatprep.mubr.bf16.mxu0 %v1726_v18 }
  0x67   :  { %1520 = vmatprep.mubr.bf16.mxu1 %v1728_v24 }
  0x68   :  { %2051 = vmatpush3.bf16.msra.mxu0 %v2206_v14 }
  0x69   :  { %2079 = vmatpush3.bf16.msra.mxu1 %v2207_v15  ;;  %2052 = vmatprep.subr.bf16.mxu0 %v2208_v20 }
  0x6a   :  { %2080 = vmatprep.subr.bf16.mxu1 %v2209_v21 }
  0x6b   :  { %1472 = vmatmul.mubr.bf16.gmra.mrb[20].mxu0 %v1725_v19 }
  0x6c   :  { %2053 = vmatpush3.bf16.msra.mxu0 %v2210_v25  ;;  %1521 = vmatmul.mubr.bf16.gmra.mrb[20].mxu1 %v1727_v26 }
  0x6d   :  { %2081 = vmatpush3.bf16.msra.mxu1 %v2211_v27  ;;  %2054 = vmatprep.subr.bf16.mxu0 %v2212_v28 }
  0x6e   :  { %2082 = vmatprep.subr.bf16.mxu1 %v2213_v29  ;;  %1561 = vmatprep.mubr.bf16.mxu0 %v1714_v52 }
  0x6f   :  { %1610 = vmatprep.mubr.bf16.mxu1 %v1716_v57 }
  0x70   :  { %2055 = vmatpush3.bf16.msra.mxu0 %v2214_v30 }
  0x71   :  { %2083 = vmatpush3.bf16.msra.mxu1 %v2215_v31  ;;  %2056 = vmatprep.subr.bf16.mxu0 %v2216_v32 }
  0x72   :  { %2084 = vmatprep.subr.bf16.mxu1 %v2217_v33 }
  0x74   :  { %2057 = vmatpush3.bf16.msra.mxu0 %v2218_v34 }
  0x75   :  { %2085 = vmatpush3.bf16.msra.mxu1 %v2219_v35  ;;  %2058 = vmatprep.subr.bf16.mxu0 %v2220_v36 }
  0x76   :  { %2086 = vmatprep.subr.bf16.mxu1 %v2221_v37 }
  0x78   :  { %2059 = vmatpush3.bf16.msra.mxu0 %v2222_v38 }
  0x79   :  { %2087 = vmatpush3.bf16.msra.mxu1 %v2223_v39  ;;  %2060 = vmatprep.subr.bf16.mxu0 %v2224_v40 }
  0x7a   :  { %2088 = vmatprep.subr.bf16.mxu1 %v2225_v41 }
  0x7c   :  { %2061 = vmatpush3.bf16.msra.mxu0 %v2226_v42 }
  0x7d   :  { %2089 = vmatpush3.bf16.msra.mxu1 %v2227_v43  ;;  %2062 = vmatprep.subr.bf16.mxu0 %v2228_v44 }
  0x7e   :  { %2090 = vmatprep.subr.bf16.mxu1 %v2229_v45 }
  0x80   :  { %2063 = vmatpush3.bf16.msra.mxu0 %v2230_v46 }
  0x81   :  { %2091 = vmatpush3.bf16.msra.mxu1 %v2231_v47 }
  0x83   :  { %1562 = vmatmul.mubr.bf16.vlgmr.msra.gmra.mrb[24].mxu0 %v1713_v51 }
  0x84   :  { %1611 = vmatmul.mubr.bf16.vlgmr.msra.gmra.mrb[24].mxu1 %v1715_v56  ;;  %1569 = vmatprep.mubr.bf16.mxu0 %v1730_v58 }
  0x85   :  { %1618 = vmatprep.mubr.bf16.mxu1 %v1732_v61 }
  0x8b   :  { %1570 = vmatmul.mubr.bf16.gmra.mrb[28].mxu0 %v1729_v62 }
  0x8c   :  { %1619 = vmatmul.mubr.bf16.gmra.mrb[28].mxu1 %v1731_v63 }
  0xf6   :  { %v1896_v0 = vpop.f32.mrb[0].mxu0 }
  0xf7   :  { %v1924_v1 = vpop.f32.mrb[0].mxu1  ;;  %v1897_v2 = vpop.f32.mrb[1].mxu0 }
  0xf8   :  { %v1898_v3 = vadd.f32 %v1897_v2, %v1896_v0  ;;  %v1925_v4 = vpop.f32.mrb[1].mxu1  ;;  %v1899_v5 = vpop.f32.mrb[2].mxu0 }
  0xf9   :  { %v1926_v6 = vadd.f32 %v1925_v4, %v1924_v1  ;;  %v1927_v7 = vpop.f32.mrb[2].mxu1  ;;  %v1900_v8 = vpop.f32.mrb[3].mxu0 }
  0xfa   :  { %v1901_v9 = vadd.f32 %v1900_v8, %v1899_v5  ;;  %v1928_v10 = vpop.f32.mrb[3].mxu1 }
  0xfb   :  { %v1319_v11 = vadd.f32 %v1926_v6, %v1898_v3  ;;  %v1929_v12 = vadd.f32 %v1928_v10, %v1927_v7 }
  0xfd   :  { %v1322_v13 = vadd.f32 %v1929_v12, %v1901_v9 }
  0xfe   :  { %v1902_v14 = vpop.f32.mrb[4].mxu0 }
  0xff   :  { %v1930_v15 = vpop.f32.mrb[4].mxu1  ;;  %v1903_v16 = vpop.f32.mrb[5].mxu0 }
 0x100   :  { %v1904_v17 = vadd.f32 %v1903_v16, %v1902_v14  ;;  %v1931_v18 = vpop.f32.mrb[5].mxu1  ;;  %v1905_v19 = vpop.f32.mrb[6].mxu0 }
 0x101   :  { %v1932_v20 = vadd.f32 %v1931_v18, %v1930_v15  ;;  %v1933_v21 = vpop.f32.mrb[6].mxu1  ;;  %v1906_v22 = vpop.f32.mrb[7].mxu0 }
 0x102   :  { %v1907_v23 = vadd.f32 %v1906_v22, %v1905_v19  ;;  %v1934_v24 = vpop.f32.mrb[7].mxu1 }
 0x103   :  { %v1327_v25 = vadd.f32 %v1932_v20, %v1904_v17  ;;  %v1935_v26 = vadd.f32 %v1934_v24, %v1933_v21 }
 0x105   :  { %v1330_v27 = vadd.f32 %v1935_v26, %v1907_v23 }
 0x116   :  { %v1952_v28 = vpop.f32.mrb[8].mxu0 }
 0x117   :  { %v1980_v29 = vpop.f32.mrb[8].mxu1  ;;  %v1953_v30 = vpop.f32.mrb[9].mxu0 }
 0x118   :  { %v1981_v31 = vpop.f32.mrb[9].mxu1  ;;  %v1954_v32 = vadd.f32 %v1953_v30, %v1952_v28  ;;  %v1955_v34 = vpop.f32.mrb[10].mxu0 }
 0x119   :  { %v1982_v33 = vadd.f32 %v1981_v31, %v1980_v29  ;;  %v1983_v35 = vpop.f32.mrb[10].mxu1  ;;  %v1956_v36 = vpop.f32.mrb[11].mxu0  ;;  %v1647_v31 = vlaneseq }
 0x11a   :  { %v1984_v37 = vpop.f32.mrb[11].mxu1  ;;  %v1368_v38 = vadd.f32 %v1954_v32, %v1319_v11  ;;  %v1957_v39 = vadd.f32 %v1956_v36, %v1955_v34 }
 0x11b   :  { %v1985_v40 = vadd.f32 %v1984_v37, %v1983_v35 }
 0x11c   :  { %v1417_v41 = vadd.f32 %v1982_v33, %v1368_v38  ;;  %v1371_v42 = vadd.f32 %v1957_v39, %v1322_v13 }
 0x11e   :  { %v1420_v43 = vadd.f32 %v1985_v40, %v1371_v42  ;;  %v1958_v44 = vpop.f32.mrb[12].mxu0  ;;  %v1648_v42 = vshrl.u32 %v1647_v31, 7 }
 0x11f   :  { %v1959_v45 = vpop.f32.mrb[13].mxu0  ;;  %v1986_v50 = vpop.f32.mrb[12].mxu1 }
 0x120   :  { %v1960_v46 = vadd.f32 %v1959_v45, %v1958_v44  ;;  %v1961_v47 = vpop.f32.mrb[14].mxu0  ;;  %v1987_v52 = vpop.f32.mrb[13].mxu1 }
 0x121   :  { %v1962_v48 = vpop.f32.mrb[15].mxu0  ;;  %v1988_v54 = vadd.f32 %v1987_v52, %v1986_v50  ;;  %v1989_v55 = vpop.f32.mrb[14].mxu1  ;;  %v1650_v50 = vadd.s32 16, %v1648_v42 }
 0x122   :  { %v1376_v49 = vadd.f32 %v1960_v46, %v1327_v25  ;;  %v1963_v51 = vadd.f32 %v1962_v48, %v1961_v47  ;;  %v1990_v56 = vpop.f32.mrb[15].mxu1 }
 0x123   :  { %v1991_v58 = vadd.f32 %v1990_v56, %v1989_v55  ;;  %vm1659_vm0 = vcmp.lt.s32.totalorder %v1650_v50, 18 }
 0x124   :  { %v1379_v53 = vadd.f32 %v1963_v51, %v1330_v27  ;;  %v1425_v57 = vadd.f32 %v1988_v54, %v1376_v49 }
 0x126   :  { %v1428_v59 = vadd.f32 %v1991_v58, %v1379_v53 }
 0x136   :  { %v2008_v60 = vpop.f32.mrb[16].mxu0 }
 0x137   :  { %v2036_v61 = vpop.f32.mrb[16].mxu1  ;;  %v2009_v62 = vpop.f32.mrb[17].mxu0 }
 0x138   :  { %v2010_v63 = vadd.f32 %v2009_v62, %v2008_v60  ;;  %v2037_v0 = vpop.f32.mrb[17].mxu1  ;;  %v2011_v1 = vpop.f32.mrb[18].mxu0 }
 0x139   :  { %v2038_v2 = vadd.f32 %v2037_v0, %v2036_v61  ;;  %v2039_v3 = vpop.f32.mrb[18].mxu1  ;;  %v2012_v4 = vpop.f32.mrb[19].mxu0 }
 0x13a   :  { %v1466_v5 = vadd.f32 %v2010_v63, %v1417_v41  ;;  %v2013_v6 = vadd.f32 %v2012_v4, %v2011_v1  ;;  %v2040_v7 = vpop.f32.mrb[19].mxu1 }
 0x13b   :  { %v2041_v8 = vadd.f32 %v2040_v7, %v2039_v3 }
 0x13c   :  { %v1515_v9 = vadd.f32 %v2038_v2, %v1466_v5  ;;  %v1469_v10 = vadd.f32 %v2013_v6, %v1420_v43 }
 0x13e   :  { %v1518_v11 = vadd.f32 %v2041_v8, %v1469_v10  ;;  %v2014_v12 = vpop.f32.mrb[20].mxu0 }
 0x13f   :  { %v2015_v13 = vpop.f32.mrb[21].mxu0  ;;  %v2042_v16 = vpop.f32.mrb[20].mxu1 }
 0x140   :  { %v2016_v14 = vadd.f32 %v2015_v13, %v2014_v12  ;;  %v2017_v15 = vpop.f32.mrb[22].mxu0  ;;  %v2043_v20 = vpop.f32.mrb[21].mxu1 }
 0x141   :  { %v2018_v17 = vpop.f32.mrb[23].mxu0  ;;  %v2044_v21 = vadd.f32 %v2043_v20, %v2042_v16  ;;  %v2045_v22 = vpop.f32.mrb[22].mxu1 }
 0x142   :  { %v1474_v18 = vadd.f32 %v2016_v14, %v1425_v57  ;;  %v2019_v19 = vadd.f32 %v2018_v17, %v2017_v15  ;;  %v2046_v24 = vpop.f32.mrb[23].mxu1 }
 0x143   :  { %v2047_v26 = vadd.f32 %v2046_v24, %v2045_v22 }
 0x144   :  { %v1477_v23 = vadd.f32 %v2019_v19, %v1428_v59  ;;  %v1523_v25 = vadd.f32 %v2044_v21, %v1474_v18 }
 0x146   :  { %v1526_v27 = vadd.f32 %v2047_v26, %v1477_v23 }
 0x156   :  { %v2064_v28 = vpop.f32.mrb[24].mxu0 }
 0x157   :  { %v2092_v29 = vpop.f32.mrb[24].mxu1  ;;  %v2065_v30 = vpop.f32.mrb[25].mxu0 }
 0x158   :  { %v2066_v32 = vadd.f32 %v2065_v30, %v2064_v28  ;;  %v2093_v33 = vpop.f32.mrb[25].mxu1  ;;  %v2067_v34 = vpop.f32.mrb[26].mxu0 }
 0x159   :  { %v2094_v35 = vadd.f32 %v2093_v33, %v2092_v29  ;;  %v2095_v36 = vpop.f32.mrb[26].mxu1  ;;  %v2068_v37 = vpop.f32.mrb[27].mxu0 }
 0x15a   :  { %v1564_v38 = vadd.f32 %v2066_v32, %v1515_v9  ;;  %v2069_v39 = vadd.f32 %v2068_v37, %v2067_v34  ;;  %v2096_v40 = vpop.f32.mrb[27].mxu1 }
 0x15b   :  { %v2097_v41 = vadd.f32 %v2096_v40, %v2095_v36 }
 0x15c   :  { %v1613_v43 = vadd.f32 %v2094_v35, %v1564_v38  ;;  %v1567_v44 = vadd.f32 %v2069_v39, %v1518_v11 }
 0x15e   :  { %v1616_v45 = vadd.f32 %v2097_v41, %v1567_v44  ;;  %v2070_v46 = vpop.f32.mrb[28].mxu0  ;;  %v1675_v47 = vmul.f32 %v1613_v43, %v1613_v43 }
 0x15f   :  { %v2098_v48 = vpop.f32.mrb[28].mxu1  ;;  %v2071_v49 = vpop.f32.mrb[29].mxu0 }
 0x160   :  { %v1872_v51 = vpack.c.bf16 %v1616_v45, %v1613_v43  ;;  %v1665_v52 = vadd.f32 %v1616_v45, %v1613_v43  ;;  %v1676_v53 = vmul.f32 %v1616_v45, %v1616_v45  ;;  %v2072_v54 = vadd.f32 %v2071_v49, %v2070_v46  ;;  %v2099_v55 = vpop.f32.mrb[29].mxu1  ;;  %v2073_v56 = vpop.f32.mrb[30].mxu0 }
 0x161   :  { %v2100_v57 = vadd.f32 %v2099_v55, %v2098_v48  ;;  %v2101_v58 = vpop.f32.mrb[30].mxu1  ;;  %v2074_v59 = vpop.f32.mrb[31].mxu0 }
 0x162   :  { %v1679_v60 = vadd.f32 %v1676_v53, %v1675_v47  ;;  %v1572_v61 = vadd.f32 %v2072_v54, %v1523_v25  ;;  %v2075_v62 = vadd.f32 %v2074_v59, %v2073_v56  ;;  %v2102_v63 = vpop.f32.mrb[31].mxu1  ;;  %1873 = vst [vmem:[%s2757_s3] sm:$0xff] %v1872_v51  }
 0x163   :  { %v2103_v0 = vadd.f32 %v2102_v63, %v2101_v58 }
 0x164   :  { %v1621_v1 = vadd.f32 %v2100_v57, %v1572_v61  ;;  %v1575_v2 = vadd.f32 %v2075_v62, %v1526_v27 }
 0x166   :  { %v1663_v3 = vsel %vm1659_vm0, %v1621_v1, 0.0  ;;  %v1624_v4 = vadd.f32 %v2103_v0, %v1575_v2 }
 0x167   :  { %v1666_v5 = vadd.f32 %v1665_v52, %v1663_v3  ;;  %v1677_v6 = vmul.f32 %v1663_v3, %v1663_v3 }
 0x168   :  { %v1877_v7 = vpack.c.bf16 %v1624_v4, %v1621_v1 }
 0x169   :  { %v1668_v8 = vrot.slane %v1666_v5, 4  ;;  %v1680_v9 = vadd.f32 %v1679_v60, %v1677_v6 }
 0x16a   :  { %1879 = vst [vmem:[%s2757_s3 + $0x8] sm:$0xff] %v1877_v7  }
 0x16b   :  { %v1669_v10 = vadd.f32 %v1668_v8, %v1666_v5  ;;  %v1682_v11 = vrot.slane %v1680_v9, 4 }
 0x16d   :  { %v1670_v12 = vrot.slane %v1669_v10, 2  ;;  %v1683_v13 = vadd.f32 %v1682_v11, %v1680_v9 }
 0x16f   :  { %v1671_v14 = vadd.f32 %v1670_v12, %v1669_v10  ;;  %v1684_v15 = vrot.slane %v1683_v13, 2 }
 0x171   :  { %v1672_v16 = vrot.slane %v1671_v14, 1  ;;  %v1685_v17 = vadd.f32 %v1684_v15, %v1683_v13 }
 0x173   :  { %v1673_v18 = vadd.f32 %v1672_v16, %v1671_v14  ;;  %v1686_v19 = vrot.slane %v1685_v17, 1 }
 0x175   :  { %1674 = vst [vmem:[%s2758_s4] sm:$0x1] %v1673_v18  ;;  %v1687_v20 = vadd.f32 %v1686_v19, %v1685_v17 }
 0x177   :  { %1688 = vst [vmem:[%s2759_s5] sm:$0x1] %v1687_v20 }

// kernel: _lambda_.15
= control target key start
LH: loop header
LB: loop body
LE: loop exit
PB: predicated region body
PF: predicated region fallthrough
CT: control target
= control target key end

     0   :  { %s2400_s1 = inlined_call_operand.vmem [shape: bf16[2048,128], index: 1, kind: input, shape index: {}]   ;;  %s2401_s0 = inlined_call_operand.vmem [shape: bf16[16,2048], index: 0, kind: input, shape index: {}]   ;;  %s2402_s2 = inlined_call_operand.vmem [shape: f32[1,128], index: 2, kind: input, shape index: {}]   ;;  %s2403_s3 = inlined_call_operand.vmem [shape: bf16[16,128], index: 3, kind: output, shape index: {}]  }
   0x1   :  { %v1814_v0 = vld [vmem:[%s2400_s1 + $0x40] sm:$0xff]   ;;  %v1818_v4 = vld [vmem:[%s2400_s1 + $0x48] sm:$0xff]   ;;  %v1822_v8 = vld [vmem:[%s2400_s1 + $0x50] sm:$0xff]  }
   0x2   :  { %v1815_v1 = vld [vmem:[%s2400_s1 + $0xc0] sm:$0xff]   ;;  %1638 = vmatprep.subr.bf16.mxu0 %v1814_v0  ;;  %v1819_v5 = vld [vmem:[%s2400_s1 + $0xc8] sm:$0xff]   ;;  %v1823_v9 = vld [vmem:[%s2400_s1 + $0xd0] sm:$0xff]  }
   0x3   :  { %v1816_v2 = vld [vmem:[%s2400_s1] sm:$0xff]   ;;  %1660 = vmatprep.subr.bf16.mxu1 %v1815_v1  ;;  %v1820_v6 = vld [vmem:[%s2400_s1 + $0x8] sm:$0xff]   ;;  %v1824_v10 = vld [vmem:[%s2400_s1 + $0x10] sm:$0xff]  }
   0x4   :  { %v1817_v3 = vld [vmem:[%s2400_s1 + $0x80] sm:$0xff]   ;;  %1639 = vmatpush3.bf16.msra.mxu0 %v1816_v2  ;;  %v1821_v7 = vld [vmem:[%s2400_s1 + $0x88] sm:$0xff]   ;;  %v1825_v11 = vld [vmem:[%s2400_s1 + $0x90] sm:$0xff]  }
   0x5   :  { %1661 = vmatpush3.bf16.msra.mxu1 %v1817_v3  ;;  %1640 = vmatprep.subr.bf16.mxu0 %v1818_v4  ;;  %v1826_v12 = vld [vmem:[%s2400_s1 + $0x58] sm:$0xff]   ;;  %v1830_v16 = vld [vmem:[%s2400_s1 + $0x60] sm:$0xff]   ;;  %v1834_v20 = vld [vmem:[%s2400_s1 + $0x68] sm:$0xff]  }
   0x6   :  { %1662 = vmatprep.subr.bf16.mxu1 %v1819_v5  ;;  %v1827_v13 = vld [vmem:[%s2400_s1 + $0xd8] sm:$0xff]   ;;  %v1831_v17 = vld [vmem:[%s2400_s1 + $0xe0] sm:$0xff]   ;;  %v1835_v21 = vld [vmem:[%s2400_s1 + $0xe8] sm:$0xff]  }
   0x7   :  { %v1828_v14 = vld [vmem:[%s2400_s1 + $0x18] sm:$0xff]   ;;  %v1832_v18 = vld [vmem:[%s2400_s1 + $0x20] sm:$0xff]   ;;  %v1836_v22 = vld [vmem:[%s2400_s1 + $0x28] sm:$0xff]  }
   0x8   :  { %1641 = vmatpush3.bf16.msra.mxu0 %v1820_v6  ;;  %v1829_v15 = vld [vmem:[%s2400_s1 + $0x98] sm:$0xff]   ;;  %v1833_v19 = vld [vmem:[%s2400_s1 + $0xa0] sm:$0xff]   ;;  %v1837_v23 = vld [vmem:[%s2400_s1 + $0xa8] sm:$0xff]  }
   0x9   :  { %1663 = vmatpush3.bf16.msra.mxu1 %v1821_v7  ;;  %1642 = vmatprep.subr.bf16.mxu0 %v1822_v8  ;;  %v1838_v24 = vld [vmem:[%s2400_s1 + $0x70] sm:$0xff]   ;;  %v1842_v28 = vld [vmem:[%s2400_s1 + $0x78] sm:$0xff]   ;;  %v15_v32 = vld [vmem:[%s2401_s0] sm:$0xff] }
   0xa   :  { %1664 = vmatprep.subr.bf16.mxu1 %v1823_v9  ;;  %v1839_v25 = vld [vmem:[%s2400_s1 + $0xf0] sm:$0xff]   ;;  %v1843_v29 = vld [vmem:[%s2400_s1 + $0xf8] sm:$0xff]   ;;  %v23_v33 = vld [vmem:[%s2401_s0 + $0x40] sm:$0xff] }
   0xb   :  { %v1840_v26 = vld [vmem:[%s2400_s1 + $0x30] sm:$0xff]   ;;  %v1844_v30 = vld [vmem:[%s2400_s1 + $0x38] sm:$0xff]   ;;  %v16_v34 = vld [vmem:[%s2401_s0 + $0x8] sm:$0xff]  ;;  %v1485_v35 = vcombine.low %v15_v32, %v23_v33  ;;  %v1486_v36 = vcombine.high %v15_v32, %v23_v33 }
   0xc   :  { %1643 = vmatpush3.bf16.msra.mxu0 %v1824_v10  ;;  %v1841_v27 = vld [vmem:[%s2400_s1 + $0xb0] sm:$0xff]   ;;  %v1845_v31 = vld [vmem:[%s2400_s1 + $0xb8] sm:$0xff]   ;;  %v24_v37 = vld [vmem:[%s2401_s0 + $0x48] sm:$0xff] }
   0xd   :  { %1665 = vmatpush3.bf16.msra.mxu1 %v1825_v11  ;;  %1644 = vmatprep.subr.bf16.mxu0 %v1826_v12  ;;  %v1487_v38 = vcombine.low %v16_v34, %v24_v37  ;;  %v1488_v39 = vcombine.high %v16_v34, %v24_v37  ;;  %v1846_v40 = vld [vmem:[%s2400_s1 + $0x140] sm:$0xff]   ;;  %v1850_v44 = vld [vmem:[%s2400_s1 + $0x148] sm:$0xff]   ;;  %v1854_v48 = vld [vmem:[%s2400_s1 + $0x150] sm:$0xff]  }
   0xe   :  { %1666 = vmatprep.subr.bf16.mxu1 %v1827_v13  ;;  %1174 = vmatprep.mubr.bf16.mxu0 %v1486_v36  ;;  %v1847_v41 = vld [vmem:[%s2400_s1 + $0x1c0] sm:$0xff]   ;;  %v1851_v45 = vld [vmem:[%s2400_s1 + $0x1c8] sm:$0xff]   ;;  %v1855_v49 = vld [vmem:[%s2400_s1 + $0x1d0] sm:$0xff]  }
   0xf   :  { %1215 = vmatprep.mubr.bf16.mxu1 %v1488_v39  ;;  %v1848_v42 = vld [vmem:[%s2400_s1 + $0x100] sm:$0xff]   ;;  %v1852_v46 = vld [vmem:[%s2400_s1 + $0x108] sm:$0xff]   ;;  %v1856_v50 = vld [vmem:[%s2400_s1 + $0x110] sm:$0xff]  }
  0x10   :  { %1645 = vmatpush3.bf16.msra.mxu0 %v1828_v14  ;;  %v1849_v43 = vld [vmem:[%s2400_s1 + $0x180] sm:$0xff]   ;;  %v1853_v47 = vld [vmem:[%s2400_s1 + $0x188] sm:$0xff]   ;;  %v1857_v51 = vld [vmem:[%s2400_s1 + $0x190] sm:$0xff]  }
  0x11   :  { %1667 = vmatpush3.bf16.msra.mxu1 %v1829_v15  ;;  %1646 = vmatprep.subr.bf16.mxu0 %v1830_v16  ;;  %v1858_v52 = vld [vmem:[%s2400_s1 + $0x158] sm:$0xff]   ;;  %v1862_v56 = vld [vmem:[%s2400_s1 + $0x160] sm:$0xff]   ;;  %v1866_v60 = vld [vmem:[%s2400_s1 + $0x168] sm:$0xff]  }
  0x12   :  { %1668 = vmatprep.subr.bf16.mxu1 %v1831_v17  ;;  %v1859_v53 = vld [vmem:[%s2400_s1 + $0x1d8] sm:$0xff]   ;;  %v1863_v57 = vld [vmem:[%s2400_s1 + $0x1e0] sm:$0xff]   ;;  %v1867_v61 = vld [vmem:[%s2400_s1 + $0x1e8] sm:$0xff]  }
  0x13   :  { %v1860_v54 = vld [vmem:[%s2400_s1 + $0x118] sm:$0xff]   ;;  %v1864_v58 = vld [vmem:[%s2400_s1 + $0x120] sm:$0xff]   ;;  %v1868_v62 = vld [vmem:[%s2400_s1 + $0x128] sm:$0xff]  }
  0x14   :  { %1647 = vmatpush3.bf16.msra.mxu0 %v1832_v18  ;;  %v1861_v55 = vld [vmem:[%s2400_s1 + $0x198] sm:$0xff]   ;;  %v1865_v59 = vld [vmem:[%s2400_s1 + $0x1a0] sm:$0xff]   ;;  %v1869_v63 = vld [vmem:[%s2400_s1 + $0x1a8] sm:$0xff]  }
  0x15   :  { %1669 = vmatpush3.bf16.msra.mxu1 %v1833_v19  ;;  %1648 = vmatprep.subr.bf16.mxu0 %v1834_v20  ;;  %v1870_v0 = vld [vmem:[%s2400_s1 + $0x170] sm:$0xff]   ;;  %v1874_v4 = vld [vmem:[%s2400_s1 + $0x178] sm:$0xff]   ;;  %v1878_v16 = vld [vmem:[%s2400_s1 + $0x240] sm:$0xff]  }
  0x16   :  { %1670 = vmatprep.subr.bf16.mxu1 %v1835_v21  ;;  %v1871_v1 = vld [vmem:[%s2400_s1 + $0x1f0] sm:$0xff]   ;;  %v1875_v5 = vld [vmem:[%s2400_s1 + $0x1f8] sm:$0xff]   ;;  %v1879_v17 = vld [vmem:[%s2400_s1 + $0x2c0] sm:$0xff]  }
  0x17   :  { %v1872_v2 = vld [vmem:[%s2400_s1 + $0x130] sm:$0xff]   ;;  %v1876_v6 = vld [vmem:[%s2400_s1 + $0x138] sm:$0xff]   ;;  %v1880_v18 = vld [vmem:[%s2400_s1 + $0x200] sm:$0xff]  }
  0x18   :  { %1649 = vmatpush3.bf16.msra.mxu0 %v1836_v22  ;;  %v1873_v3 = vld [vmem:[%s2400_s1 + $0x1b0] sm:$0xff]   ;;  %v1877_v7 = vld [vmem:[%s2400_s1 + $0x1b8] sm:$0xff]   ;;  %v1881_v19 = vld [vmem:[%s2400_s1 + $0x280] sm:$0xff]  }
  0x19   :  { %1671 = vmatpush3.bf16.msra.mxu1 %v1837_v23  ;;  %1650 = vmatprep.subr.bf16.mxu0 %v1838_v24  ;;  %v17_v8 = vld [vmem:[%s2401_s0 + $0x10] sm:$0xff]  ;;  %v18_v12 = vld [vmem:[%s2401_s0 + $0x18] sm:$0xff]  ;;  %v1882_v20 = vld [vmem:[%s2400_s1 + $0x248] sm:$0xff]  }
  0x1a   :  { %1672 = vmatprep.subr.bf16.mxu1 %v1839_v25  ;;  %v25_v9 = vld [vmem:[%s2401_s0 + $0x50] sm:$0xff]  ;;  %v26_v13 = vld [vmem:[%s2401_s0 + $0x58] sm:$0xff]  ;;  %v1883_v21 = vld [vmem:[%s2400_s1 + $0x2c8] sm:$0xff]  }
  0x1b   :  { %v1489_v10 = vcombine.low %v17_v8, %v25_v9  ;;  %v1490_v11 = vcombine.high %v17_v8, %v25_v9  ;;  %v1491_v14 = vcombine.low %v18_v12, %v26_v13  ;;  %v1492_v15 = vcombine.high %v18_v12, %v26_v13  ;;  %v1884_v22 = vld [vmem:[%s2400_s1 + $0x208] sm:$0xff]   ;;  %v1886_v24 = vld [vmem:[%s2400_s1 + $0x250] sm:$0xff]   ;;  %v1894_v32 = vld [vmem:[%s2400_s1 + $0x260] sm:$0xff]  }
  0x1c   :  { %1651 = vmatpush3.bf16.msra.mxu0 %v1840_v26  ;;  %v1885_v23 = vld [vmem:[%s2400_s1 + $0x288] sm:$0xff]   ;;  %v1887_v25 = vld [vmem:[%s2400_s1 + $0x2d0] sm:$0xff]   ;;  %v1895_v33 = vld [vmem:[%s2400_s1 + $0x2e0] sm:$0xff]  }
  0x1d   :  { %1673 = vmatpush3.bf16.msra.mxu1 %v1841_v27  ;;  %1652 = vmatprep.subr.bf16.mxu0 %v1842_v28  ;;  %v1888_v26 = vld [vmem:[%s2400_s1 + $0x210] sm:$0xff]   ;;  %v1890_v28 = vld [vmem:[%s2400_s1 + $0x258] sm:$0xff]   ;;  %v1896_v34 = vld [vmem:[%s2400_s1 + $0x220] sm:$0xff]  }
  0x1e   :  { %1674 = vmatprep.subr.bf16.mxu1 %v1843_v29  ;;  %v1889_v27 = vld [vmem:[%s2400_s1 + $0x290] sm:$0xff]   ;;  %v1891_v29 = vld [vmem:[%s2400_s1 + $0x2d8] sm:$0xff]   ;;  %v1898_v36 = vld [vmem:[%s2400_s1 + $0x268] sm:$0xff]  }
  0x1f   :  { %v1899_v37 = vld [vmem:[%s2400_s1 + $0x2e8] sm:$0xff]   ;;  %v1926_v8 = vld [vmem:[%s2400_s1 + $0x360] sm:$0xff]  }
  0x20   :  { %1653 = vmatpush3.bf16.msra.mxu0 %v1844_v30  ;;  %v1892_v30 = vld [vmem:[%s2400_s1 + $0x218] sm:$0xff]   ;;  %v1901_v39 = vld [vmem:[%s2400_s1 + $0x2a8] sm:$0xff]   ;;  %v1927_v9 = vld [vmem:[%s2400_s1 + $0x3e0] sm:$0xff]  }
  0x21   :  { %1675 = vmatpush3.bf16.msra.mxu1 %v1845_v31  ;;  %1682 = vmatprep.subr.bf16.mxu0 %v1846_v40  ;;  %v1893_v31 = vld [vmem:[%s2400_s1 + $0x298] sm:$0xff]   ;;  %v1902_v40 = vld [vmem:[%s2400_s1 + $0x270] sm:$0xff]   ;;  %v1930_v12 = vld [vmem:[%s2400_s1 + $0x368] sm:$0xff]  }
  0x22   :  { %1704 = vmatprep.subr.bf16.mxu1 %v1847_v41  ;;  %v1903_v41 = vld [vmem:[%s2400_s1 + $0x2f0] sm:$0xff]   ;;  %v1931_v13 = vld [vmem:[%s2400_s1 + $0x3e8] sm:$0xff]  }
  0x23   :  { %1175 = vmatmul.mubr.bf16.vlgmr.msra.gmra.mrb[0].mxu0 %v1485_v35  ;;  %v1897_v35 = vld [vmem:[%s2400_s1 + $0x2a0] sm:$0xff]  }
  0x24   :  { %1216 = vmatmul.mubr.bf16.vlgmr.msra.gmra.mrb[0].mxu1 %v1487_v38  ;;  %1683 = vmatpush3.bf16.msra.mxu0 %v1848_v42  ;;  %v1900_v38 = vld [vmem:[%s2400_s1 + $0x228] sm:$0xff]   ;;  %v1904_v42 = vld [vmem:[%s2400_s1 + $0x230] sm:$0xff]  }
  0x25   :  { %1705 = vmatpush3.bf16.msra.mxu1 %v1849_v43  ;;  %1684 = vmatprep.subr.bf16.mxu0 %v1850_v44  ;;  %v1905_v43 = vld [vmem:[%s2400_s1 + $0x2b0] sm:$0xff]   ;;  %v1906_v44 = vld [vmem:[%s2400_s1 + $0x278] sm:$0xff]  }
  0x26   :  { %1706 = vmatprep.subr.bf16.mxu1 %v1851_v45  ;;  %1256 = vmatprep.mubr.bf16.mxu0 %v1490_v11  ;;  %v1907_v45 = vld [vmem:[%s2400_s1 + $0x2f8] sm:$0xff]   ;;  %v1929_v11 = vld [vmem:[%s2400_s1 + $0x3a0] sm:$0xff]  }
  0x27   :  { %1297 = vmatprep.mubr.bf16.mxu1 %v1492_v15  ;;  %v1933_v15 = vld [vmem:[%s2400_s1 + $0x3a8] sm:$0xff]  }
  0x28   :  { %1685 = vmatpush3.bf16.msra.mxu0 %v1852_v46  ;;  %v1908_v46 = vld [vmem:[%s2400_s1 + $0x238] sm:$0xff]  }
  0x29   :  { %1707 = vmatpush3.bf16.msra.mxu1 %v1853_v47  ;;  %1686 = vmatprep.subr.bf16.mxu0 %v1854_v48  ;;  %v1909_v47 = vld [vmem:[%s2400_s1 + $0x2b8] sm:$0xff]   ;;  %v19_v48 = vld [vmem:[%s2401_s0 + $0x20] sm:$0xff] }
  0x2a   :  { %1708 = vmatprep.subr.bf16.mxu1 %v1855_v49  ;;  %v27_v49 = vld [vmem:[%s2401_s0 + $0x60] sm:$0xff] }
  0x2c   :  { %1687 = vmatpush3.bf16.msra.mxu0 %v1856_v50  ;;  %v20_v50 = vld [vmem:[%s2401_s0 + $0x28] sm:$0xff] }
  0x2d   :  { %1709 = vmatpush3.bf16.msra.mxu1 %v1857_v51  ;;  %1688 = vmatprep.subr.bf16.mxu0 %v1858_v52  ;;  %v28_v51 = vld [vmem:[%s2401_s0 + $0x68] sm:$0xff]  ;;  %v1493_v52 = vcombine.low %v19_v48, %v27_v49 }
  0x2e   :  { %1710 = vmatprep.subr.bf16.mxu1 %v1859_v53  ;;  %v1494_v53 = vcombine.high %v19_v48, %v27_v49 }
  0x30   :  { %1689 = vmatpush3.bf16.msra.mxu0 %v1860_v54  ;;  %v1495_v54 = vcombine.low %v20_v50, %v28_v51 }
  0x31   :  { %1711 = vmatpush3.bf16.msra.mxu1 %v1861_v55  ;;  %1690 = vmatprep.subr.bf16.mxu0 %v1862_v56  ;;  %v1496_v55 = vcombine.high %v20_v50, %v28_v51  ;;  %v1910_v56 = vld [vmem:[%s2400_s1 + $0x340] sm:$0xff]  }
  0x32   :  { %1712 = vmatprep.subr.bf16.mxu1 %v1863_v57  ;;  %v1911_v57 = vld [vmem:[%s2400_s1 + $0x3c0] sm:$0xff]  }
  0x34   :  { %1691 = vmatpush3.bf16.msra.mxu0 %v1864_v58  ;;  %v1912_v58 = vld [vmem:[%s2400_s1 + $0x300] sm:$0xff]  }
  0x35   :  { %1713 = vmatpush3.bf16.msra.mxu1 %v1865_v59  ;;  %1692 = vmatprep.subr.bf16.mxu0 %v1866_v60  ;;  %v1913_v59 = vld [vmem:[%s2400_s1 + $0x380] sm:$0xff]   ;;  %v1914_v60 = vld [vmem:[%s2400_s1 + $0x348] sm:$0xff]  }
  0x36   :  { %1714 = vmatprep.subr.bf16.mxu1 %v1867_v61  ;;  %v1915_v61 = vld [vmem:[%s2400_s1 + $0x3c8] sm:$0xff]  }
  0x38   :  { %1693 = vmatpush3.bf16.msra.mxu0 %v1868_v62  ;;  %v1916_v62 = vld [vmem:[%s2400_s1 + $0x308] sm:$0xff]  }
  0x39   :  { %1715 = vmatpush3.bf16.msra.mxu1 %v1869_v63  ;;  %1694 = vmatprep.subr.bf16.mxu0 %v1870_v0  ;;  %v1917_v63 = vld [vmem:[%s2400_s1 + $0x388] sm:$0xff]   ;;  %v1918_v0 = vld [vmem:[%s2400_s1 + $0x350] sm:$0xff]  }
  0x3a   :  { %1716 = vmatprep.subr.bf16.mxu1 %v1871_v1  ;;  %v1919_v1 = vld [vmem:[%s2400_s1 + $0x3d0] sm:$0xff]  }
  0x3c   :  { %1695 = vmatpush3.bf16.msra.mxu0 %v1872_v2  ;;  %v1920_v2 = vld [vmem:[%s2400_s1 + $0x310] sm:$0xff]  }
  0x3d   :  { %1717 = vmatpush3.bf16.msra.mxu1 %v1873_v3  ;;  %1696 = vmatprep.subr.bf16.mxu0 %v1874_v4  ;;  %v1921_v3 = vld [vmem:[%s2400_s1 + $0x390] sm:$0xff]   ;;  %v1922_v4 = vld [vmem:[%s2400_s1 + $0x358] sm:$0xff]  }
  0x3e   :  { %1718 = vmatprep.subr.bf16.mxu1 %v1875_v5  ;;  %v1923_v5 = vld [vmem:[%s2400_s1 + $0x3d8] sm:$0xff]  }
  0x40   :  { %1697 = vmatpush3.bf16.msra.mxu0 %v1876_v6  ;;  %v1924_v6 = vld [vmem:[%s2400_s1 + $0x318] sm:$0xff]  }
  0x41   :  { %1719 = vmatpush3.bf16.msra.mxu1 %v1877_v7  ;;  %1726 = vmatprep.subr.bf16.mxu0 %v1878_v16  ;;  %v1925_v7 = vld [vmem:[%s2400_s1 + $0x398] sm:$0xff]   ;;  %v1934_v16 = vld [vmem:[%s2400_s1 + $0x370] sm:$0xff]  }
  0x42   :  { %1748 = vmatprep.subr.bf16.mxu1 %v1879_v17  ;;  %v1935_v17 = vld [vmem:[%s2400_s1 + $0x3f0] sm:$0xff]  }
  0x43   :  { %1257 = vmatmul.mubr.bf16.vlgmr.msra.gmra.mrb[4].mxu0 %v1489_v10  ;;  %v1928_v10 = vld [vmem:[%s2400_s1 + $0x320] sm:$0xff]  }
  0x44   :  { %1298 = vmatmul.mubr.bf16.vlgmr.msra.gmra.mrb[4].mxu1 %v1491_v14  ;;  %1727 = vmatpush3.bf16.msra.mxu0 %v1880_v18  ;;  %v1932_v14 = vld [vmem:[%s2400_s1 + $0x328] sm:$0xff]   ;;  %v1936_v18 = vld [vmem:[%s2400_s1 + $0x330] sm:$0xff]  }
  0x45   :  { %1749 = vmatpush3.bf16.msra.mxu1 %v1881_v19  ;;  %1728 = vmatprep.subr.bf16.mxu0 %v1882_v20  ;;  %v1937_v19 = vld [vmem:[%s2400_s1 + $0x3b0] sm:$0xff]   ;;  %v1938_v20 = vld [vmem:[%s2400_s1 + $0x378] sm:$0xff]  }
  0x46   :  { %1750 = vmatprep.subr.bf16.mxu1 %v1883_v21  ;;  %1338 = vmatprep.mubr.bf16.mxu0 %v1494_v53  ;;  %v1939_v21 = vld [vmem:[%s2400_s1 + $0x3f8] sm:$0xff]  }
  0x47   :  { %1379 = vmatprep.mubr.bf16.mxu1 %v1496_v55 }
  0x48   :  { %1729 = vmatpush3.bf16.msra.mxu0 %v1884_v22  ;;  %v1940_v22 = vld [vmem:[%s2400_s1 + $0x338] sm:$0xff]  }
  0x49   :  { %1751 = vmatpush3.bf16.msra.mxu1 %v1885_v23  ;;  %1730 = vmatprep.subr.bf16.mxu0 %v1886_v24  ;;  %v1941_v23 = vld [vmem:[%s2400_s1 + $0x3b8] sm:$0xff]   ;;  %v21_v24 = vld [vmem:[%s2401_s0 + $0x30] sm:$0xff] }
  0x4a   :  { %1752 = vmatprep.subr.bf16.mxu1 %v1887_v25  ;;  %v29_v25 = vld [vmem:[%s2401_s0 + $0x70] sm:$0xff] }
  0x4c   :  { %1731 = vmatpush3.bf16.msra.mxu0 %v1888_v26  ;;  %v22_v26 = vld [vmem:[%s2401_s0 + $0x38] sm:$0xff] }
  0x4d   :  { %1753 = vmatpush3.bf16.msra.mxu1 %v1889_v27  ;;  %1732 = vmatprep.subr.bf16.mxu0 %v1890_v28  ;;  %v1497_v27 = vcombine.low %v21_v24, %v29_v25  ;;  %v1498_v28 = vcombine.high %v21_v24, %v29_v25 }
  0x4e   :  { %1754 = vmatprep.subr.bf16.mxu1 %v1891_v29  ;;  %v30_v29 = vld [vmem:[%s2401_s0 + $0x78] sm:$0xff] }
  0x50   :  { %1733 = vmatpush3.bf16.msra.mxu0 %v1892_v30  ;;  %v1499_v30 = vcombine.low %v22_v26, %v30_v29 }
  0x51   :  { %1755 = vmatpush3.bf16.msra.mxu1 %v1893_v31  ;;  %1734 = vmatprep.subr.bf16.mxu0 %v1894_v32  ;;  %v1500_v31 = vcombine.high %v22_v26, %v30_v29 }
  0x52   :  { %1756 = vmatprep.subr.bf16.mxu1 %v1895_v33 }
  0x54   :  { %1735 = vmatpush3.bf16.msra.mxu0 %v1896_v34  ;;  %v1484_v34 = vld [vmem:[%s2402_s2] ss:$0 sm:$0xff] }
  0x55   :  { %1757 = vmatpush3.bf16.msra.mxu1 %v1897_v35  ;;  %1736 = vmatprep.subr.bf16.mxu0 %v1898_v36 }
  0x56   :  { %1758 = vmatprep.subr.bf16.mxu1 %v1899_v37 }
  0x58   :  { %1737 = vmatpush3.bf16.msra.mxu0 %v1900_v38 }
  0x59   :  { %1759 = vmatpush3.bf16.msra.mxu1 %v1901_v39  ;;  %1738 = vmatprep.subr.bf16.mxu0 %v1902_v40 }
  0x5a   :  { %1760 = vmatprep.subr.bf16.mxu1 %v1903_v41 }
  0x5c   :  { %1739 = vmatpush3.bf16.msra.mxu0 %v1904_v42 }
  0x5d   :  { %1761 = vmatpush3.bf16.msra.mxu1 %v1905_v43  ;;  %1740 = vmatprep.subr.bf16.mxu0 %v1906_v44 }
  0x5e   :  { %1762 = vmatprep.subr.bf16.mxu1 %v1907_v45 }
  0x60   :  { %1741 = vmatpush3.bf16.msra.mxu0 %v1908_v46 }
  0x61   :  { %1763 = vmatpush3.bf16.msra.mxu1 %v1909_v47  ;;  %1770 = vmatprep.subr.bf16.mxu0 %v1910_v56 }
  0x62   :  { %1792 = vmatprep.subr.bf16.mxu1 %v1911_v57 }
  0x63   :  { %1339 = vmatmul.mubr.bf16.vlgmr.msra.gmra.mrb[8].mxu0 %v1493_v52 }
  0x64   :  { %1380 = vmatmul.mubr.bf16.vlgmr.msra.gmra.mrb[8].mxu1 %v1495_v54  ;;  %1771 = vmatpush3.bf16.msra.mxu0 %v1912_v58 }
  0x65   :  { %1793 = vmatpush3.bf16.msra.mxu1 %v1913_v59  ;;  %1772 = vmatprep.subr.bf16.mxu0 %v1914_v60 }
  0x66   :  { %1794 = vmatprep.subr.bf16.mxu1 %v1915_v61  ;;  %1420 = vmatprep.mubr.bf16.mxu0 %v1498_v28 }
  0x67   :  { %1461 = vmatprep.mubr.bf16.mxu1 %v1500_v31 }
  0x68   :  { %1773 = vmatpush3.bf16.msra.mxu0 %v1916_v62 }
  0x69   :  { %1795 = vmatpush3.bf16.msra.mxu1 %v1917_v63  ;;  %1774 = vmatprep.subr.bf16.mxu0 %v1918_v0 }
  0x6a   :  { %1796 = vmatprep.subr.bf16.mxu1 %v1919_v1 }
  0x6c   :  { %1775 = vmatpush3.bf16.msra.mxu0 %v1920_v2 }
  0x6d   :  { %1797 = vmatpush3.bf16.msra.mxu1 %v1921_v3  ;;  %1776 = vmatprep.subr.bf16.mxu0 %v1922_v4 }
  0x6e   :  { %1798 = vmatprep.subr.bf16.mxu1 %v1923_v5 }
  0x70   :  { %1777 = vmatpush3.bf16.msra.mxu0 %v1924_v6 }
  0x71   :  { %1799 = vmatpush3.bf16.msra.mxu1 %v1925_v7  ;;  %1778 = vmatprep.subr.bf16.mxu0 %v1926_v8 }
  0x72   :  { %1800 = vmatprep.subr.bf16.mxu1 %v1927_v9 }
  0x74   :  { %1779 = vmatpush3.bf16.msra.mxu0 %v1928_v10 }
  0x75   :  { %1801 = vmatpush3.bf16.msra.mxu1 %v1929_v11  ;;  %1780 = vmatprep.subr.bf16.mxu0 %v1930_v12 }
  0x76   :  { %1802 = vmatprep.subr.bf16.mxu1 %v1931_v13 }
  0x78   :  { %1781 = vmatpush3.bf16.msra.mxu0 %v1932_v14 }
  0x79   :  { %1803 = vmatpush3.bf16.msra.mxu1 %v1933_v15  ;;  %1782 = vmatprep.subr.bf16.mxu0 %v1934_v16 }
  0x7a   :  { %1804 = vmatprep.subr.bf16.mxu1 %v1935_v17 }
  0x7c   :  { %1783 = vmatpush3.bf16.msra.mxu0 %v1936_v18 }
  0x7d   :  { %1805 = vmatpush3.bf16.msra.mxu1 %v1937_v19  ;;  %1784 = vmatprep.subr.bf16.mxu0 %v1938_v20 }
  0x7e   :  { %1806 = vmatprep.subr.bf16.mxu1 %v1939_v21 }
  0x80   :  { %1785 = vmatpush3.bf16.msra.mxu0 %v1940_v22 }
  0x81   :  { %1807 = vmatpush3.bf16.msra.mxu1 %v1941_v23 }
  0x83   :  { %1421 = vmatmul.mubr.bf16.vlgmr.msra.gmra.mrb[12].mxu0 %v1497_v27 }
  0x84   :  { %1462 = vmatmul.mubr.bf16.vlgmr.msra.gmra.mrb[12].mxu1 %v1499_v30 }
  0xf6   :  { %v1654_v32 = vpop.f32.mrb[0].mxu0 }
  0xf7   :  { %v1676_v33 = vpop.f32.mrb[0].mxu1  ;;  %v1655_v35 = vpop.f32.mrb[1].mxu0 }
  0xf8   :  { %v1656_v36 = vadd.f32 %v1655_v35, %v1654_v32  ;;  %v1677_v37 = vpop.f32.mrb[1].mxu1  ;;  %v1657_v38 = vpop.f32.mrb[2].mxu0 }
  0xf9   :  { %v1678_v39 = vadd.f32 %v1677_v37, %v1676_v33  ;;  %v1679_v40 = vpop.f32.mrb[2].mxu1  ;;  %v1658_v41 = vpop.f32.mrb[3].mxu0 }
  0xfa   :  { %v1177_v42 = vadd.f32 %v1656_v36, %v1484_v34  ;;  %v1659_v43 = vadd.f32 %v1658_v41, %v1657_v38  ;;  %v1680_v44 = vpop.f32.mrb[3].mxu1 }
  0xfb   :  { %v1681_v45 = vadd.f32 %v1680_v44, %v1679_v40 }
  0xfc   :  { %v1218_v46 = vadd.f32 %v1678_v39, %v1177_v42  ;;  %v1180_v47 = vadd.f32 %v1659_v43, %v1484_v34 }
  0xfe   :  { %v1221_v48 = vadd.f32 %v1681_v45, %v1180_v47 }
 0x116   :  { %v1698_v49 = vpop.f32.mrb[4].mxu0 }
 0x117   :  { %v1720_v50 = vpop.f32.mrb[4].mxu1  ;;  %v1699_v51 = vpop.f32.mrb[5].mxu0 }
 0x118   :  { %v1700_v52 = vadd.f32 %v1699_v51, %v1698_v49  ;;  %v1721_v53 = vpop.f32.mrb[5].mxu1  ;;  %v1701_v54 = vpop.f32.mrb[6].mxu0 }
 0x119   :  { %v1722_v55 = vadd.f32 %v1721_v53, %v1720_v50  ;;  %v1723_v56 = vpop.f32.mrb[6].mxu1  ;;  %v1702_v57 = vpop.f32.mrb[7].mxu0 }
 0x11a   :  { %v1259_v58 = vadd.f32 %v1700_v52, %v1218_v46  ;;  %v1703_v59 = vadd.f32 %v1702_v57, %v1701_v54  ;;  %v1724_v60 = vpop.f32.mrb[7].mxu1 }
 0x11b   :  { %v1725_v61 = vadd.f32 %v1724_v60, %v1723_v56 }
 0x11c   :  { %v1300_v62 = vadd.f32 %v1722_v55, %v1259_v58  ;;  %v1262_v63 = vadd.f32 %v1703_v59, %v1221_v48 }
 0x11e   :  { %v1303_v0 = vadd.f32 %v1725_v61, %v1262_v63 }
 0x136   :  { %v1742_v1 = vpop.f32.mrb[8].mxu0 }
 0x137   :  { %v1764_v2 = vpop.f32.mrb[8].mxu1  ;;  %v1743_v3 = vpop.f32.mrb[9].mxu0 }
 0x138   :  { %v1765_v4 = vpop.f32.mrb[9].mxu1  ;;  %v1744_v5 = vadd.f32 %v1743_v3, %v1742_v1  ;;  %v1745_v7 = vpop.f32.mrb[10].mxu0 }
 0x139   :  { %v1766_v6 = vadd.f32 %v1765_v4, %v1764_v2  ;;  %v1767_v8 = vpop.f32.mrb[10].mxu1  ;;  %v1746_v9 = vpop.f32.mrb[11].mxu0 }
 0x13a   :  { %v1768_v10 = vpop.f32.mrb[11].mxu1  ;;  %v1341_v11 = vadd.f32 %v1744_v5, %v1300_v62  ;;  %v1747_v12 = vadd.f32 %v1746_v9, %v1745_v7 }
 0x13b   :  { %v1769_v13 = vadd.f32 %v1768_v10, %v1767_v8 }
 0x13c   :  { %v1382_v14 = vadd.f32 %v1766_v6, %v1341_v11  ;;  %v1344_v15 = vadd.f32 %v1747_v12, %v1303_v0 }
 0x13e   :  { %v1385_v16 = vadd.f32 %v1769_v13, %v1344_v15 }
 0x156   :  { %v1786_v17 = vpop.f32.mrb[12].mxu0 }
 0x157   :  { %v1808_v18 = vpop.f32.mrb[12].mxu1  ;;  %v1787_v19 = vpop.f32.mrb[13].mxu0 }
 0x158   :  { %v1788_v20 = vadd.f32 %v1787_v19, %v1786_v17  ;;  %v1809_v21 = vpop.f32.mrb[13].mxu1  ;;  %v1789_v22 = vpop.f32.mrb[14].mxu0 }
 0x159   :  { %v1810_v23 = vadd.f32 %v1809_v21, %v1808_v18  ;;  %v1811_v24 = vpop.f32.mrb[14].mxu1  ;;  %v1790_v25 = vpop.f32.mrb[15].mxu0 }
 0x15a   :  { %v1423_v26 = vadd.f32 %v1788_v20, %v1382_v14  ;;  %v1791_v27 = vadd.f32 %v1790_v25, %v1789_v22  ;;  %v1812_v28 = vpop.f32.mrb[15].mxu1 }
 0x15b   :  { %v1813_v29 = vadd.f32 %v1812_v28, %v1811_v24 }
 0x15c   :  { %v1464_v30 = vadd.f32 %v1810_v23, %v1423_v26  ;;  %v1426_v31 = vadd.f32 %v1791_v27, %v1385_v16 }
 0x15e   :  { %v1467_v32 = vadd.f32 %v1813_v29, %v1426_v31 }
 0x160   :  { %v1636_v33 = vpack.c.bf16 %v1467_v32, %v1464_v30 }
 0x162   :  { %1637 = vst [vmem:[%s2403_s3] sm:$0xff] %v1636_v33  }

</bundles_post_ra>
